<compile_context>
chip_gen: v6e
topology: v6e:2x2x1
jax: 0.10.0
libtpu: 0.0.40
codegen_flags: <defaults>
</compile_context>

<pallas_src>
import jax
import jax.numpy as jnp
from jax.experimental import pallas as pl
from jax.experimental.pallas import tpu as pltpu

LANE = 128  # TPU lane width; feature dims are zero-padded to a multiple of it


def _round_up(x, m):
    return (x + m - 1) // m * m


def _pick_batch_tile(batch, max_tile=8):
    """Largest divisor of `batch` (<= max_tile) that still leaves >= 2 grid
    steps (so both v7x TensorCores get work); otherwise the largest divisor."""
    cands = [d for d in range(1, min(batch, max_tile) + 1) if batch % d == 0]
    good = [d for d in cands if batch // d >= 2]
    return max(good) if good else max(cands)


def _make_gbsn_kernel(L, Bt, N, Dp):
    bf16 = jnp.bfloat16

    def kernel(*refs):
        a_ref, xp_ref, xc_ref = refs[0:3]
        i = 3
        wp_refs = refs[i:i + L]; i += L          # (N, N) per GBSL layer
        wc_refs = refs[i:i + L]; i += L          # (N, N) per GBSL layer
        w1_refs = refs[i:i + L]; i += L          # (Dp, Dp) half acting on y_p
        w2_refs = refs[i:i + L]; i += L          # (Dp, Dp) half acting on y_c
        bcat_refs = refs[i:i + L]; i += L        # (1, Dp)
        wh_refs = refs[i:i + L - 1]; i += L - 1  # MLP hidden weights
        bh_refs = refs[i:i + L - 1]; i += L - 1
        wout_ref = refs[i]; i += 1
        bout_ref = refs[i]; i += 1
        o_ref = refs[i]

        A = a_ref[...]                                   # (Bt, N, N) f32
        rs = jnp.sum(A, axis=-1)                         # (Bt, N) row sums
        # approx reciprocals run on the EUP slot (effectively free vs VPU div)
        inv_p = pl.reciprocal(rs + (1.0 + 1e-12), approx=True)  # rowsum(A+I)+eps
        inv_c = pl.reciprocal(rs + 1e-12, approx=True)          # rowsum(A)+eps

        # Normalized adjacencies are layer-invariant: compute once, reuse in
        # every GBSL layer.  Row j of (A[+I]) is scaled by inv[j].
        eye = (jax.lax.broadcasted_iota(jnp.int32, (N, N), 0) ==
               jax.lax.broadcasted_iota(jnp.int32, (N, N), 1)
               ).astype(jnp.float32)
        Ap_n = (A + eye) * inv_p[:, :, None]             # (Bt, N, N)
        Ac_n = A * inv_c[:, :, None]                     # (Bt, N, N)

        def row_softmax(z):
            m = jnp.max(z, axis=-1, keepdims=True)
            e = jnp.exp(z - m)
            return e * pl.reciprocal(jnp.sum(e, axis=-1, keepdims=True),
                                     approx=True)

        y = xp_ref[...]                                  # (Bt, N, Dp) f32
        xc_bf = xc_ref[...].astype(bf16)

        for l in range(L):
            Wp = jnp.broadcast_to(wp_refs[l][...], (Bt, N, N))
            Wc = jnp.broadcast_to(wc_refs[l][...], (Bt, N, N))
            logit_p = jnp.einsum('bij,bjk->bik', Wp, Ap_n,
                                 preferred_element_type=jnp.float32)
            logit_c = jnp.einsum('bij,bjk->bik', Wc, Ac_n,
                                 preferred_element_type=jnp.float32)
            WAp = row_softmax(logit_p).astype(bf16)
            WAc = row_softmax(logit_c).astype(bf16)
            # message passing on the MXU: bf16 operands, f32 accumulate
            y_p = jnp.einsum('bij,bjd->bid', WAp, y.astype(bf16),
                             preferred_element_type=jnp.float32)
            y_c = jnp.einsum('bij,bjd->bid', WAc, xc_bf,
                             preferred_element_type=jnp.float32)
            # Linear(concat([y_p, y_c])) + ReLU, split into two matmuls so no
            # (Bt*N, 2*Dp) concat copy is materialized in VMEM.
            z = (jnp.dot(y_p.reshape(Bt * N, Dp).astype(bf16), w1_refs[l][...],
                         preferred_element_type=jnp.float32)
                 + jnp.dot(y_c.reshape(Bt * N, Dp).astype(bf16), w2_refs[l][...],
                           preferred_element_type=jnp.float32)
                 + bcat_refs[l][...])
            y = jnp.maximum(z, 0.0).reshape(Bt, N, Dp)

        # net2 head: (num_hidden - 1) x (Linear + ReLU), then the final Linear
        h = y.reshape(Bt * N, Dp)
        for l in range(L - 1):
            h = jnp.dot(h.astype(bf16), wh_refs[l][...],
                        preferred_element_type=jnp.float32) + bh_refs[l][...]
            h = jnp.maximum(h, 0.0)
        h = jnp.dot(h.astype(bf16), wout_ref[...],
                    preferred_element_type=jnp.float32) + bout_ref[...]
        # lane-dense store: last dim is a multiple of 128
        o_ref[...] = h.reshape(Bt, N, Dp).astype(o_ref.dtype)

    return kernel


def gbsn_forward(x_p, x_c, A_c, params, *, single_buffer_weights=True):
    """Full GBSN forward: num_hidden GBSL layers followed by the Linear/ReLU
    stack, fused into a single pallas_call gridded over batch tiles."""
    B, N, dim_in = x_p.shape
    gbsl_params = params['gbsl']
    mlp_params = params['mlp']
    L = len(gbsl_params)
    dim_hidden = mlp_params[-1]['W'].shape[1]
    dim_out = mlp_params[-1]['W'].shape[0]

    # single padded feature width so activations stay lane-dense end-to-end
    Dp = _round_up(max(dim_in, dim_hidden, dim_out), LANE)
    Bt = _pick_batch_tile(B)
    bf16 = jnp.bfloat16

    def pad2(w, rows, cols):
        return jnp.pad(w, ((0, rows - w.shape[0]), (0, cols - w.shape[1])))

    def pad_bias(b):
        return jnp.pad(b, (0, Dp - b.shape[0])).reshape(1, Dp).astype(jnp.float32)

    xp_pad = jnp.pad(x_p, ((0, 0), (0, 0), (0, Dp - dim_in)))
    xc_pad = jnp.pad(x_c, ((0, 0), (0, 0), (0, Dp - dim_in)))

    args = [A_c, xp_pad, xc_pad]
    in_specs = [
        pl.BlockSpec((Bt, N, N), lambda b: (b, 0, 0)),
        pl.BlockSpec((Bt, N, Dp), lambda b: (b, 0, 0)),
        pl.BlockSpec((Bt, N, Dp), lambda b: (b, 0, 0)),
    ]

    # batch-invariant weights: single-buffer them (halves their VMEM footprint;
    # matters most under v7x's 64 MiB VMEM)
    wkw = dict(pipeline_mode=pl.Buffered(1)) if single_buffer_weights else {}

    def add_weight(w):
        args.append(w)
        in_specs.append(pl.BlockSpec(w.shape, lambda b: (0,) * w.ndim, **wkw))

    for p in gbsl_params:
        add_weight(p['W_p'][0].astype(jnp.float32))                 # (N, N)
    for p in gbsl_params:
        add_weight(p['W_c'][0].astype(jnp.float32))                 # (N, N)
    for p in gbsl_params:                                           # y_p half
        add_weight(pad2(p['W'][:, :dim_in].T, Dp, Dp).astype(bf16))
    for p in gbsl_params:                                           # y_c half
        add_weight(pad2(p['W'][:, dim_in:].T, Dp, Dp).astype(bf16))
    for p in gbsl_params:
        add_weight(pad_bias(p['b']))                                # (1, Dp)
    for p in mlp_params[:-1]:
        add_weight(pad2(p['W'].T, Dp, Dp).astype(bf16))             # (Dp, Dp)
    for p in mlp_params[:-1]:
        add_weight(pad_bias(p['b']))
    add_weight(pad2(mlp_params[-1]['W'].T, Dp, Dp).astype(bf16))
    add_weight(pad_bias(mlp_params[-1]['b']))

    # TODO(synk): for very large num_node on v7x (64 MiB VMEM), tile the
    # softmax/message-passing over output rows and set vmem_limit_bytes.
    out = pl.pallas_call(
        _make_gbsn_kernel(L, Bt, N, Dp),
        out_shape=jax.ShapeDtypeStruct((B, N, Dp), x_p.dtype),
        grid_spec=pltpu.PrefetchScalarGridSpec(
            num_scalar_prefetch=0,
            grid=(B // Bt,),
            in_specs=in_specs,
            out_specs=pl.BlockSpec((Bt, N, Dp), lambda b: (b, 0, 0)),
        ),
        compiler_params=pltpu.CompilerParams(
            dimension_semantics=("parallel",)),
    )(*args)
    return out[..., :dim_out]


def gbsn_reference(x_p, x_c, A_c, params):
    """Pure-JAX transcription of the PyTorch GBSN forward (validation only)."""
    def gbsl_ref(xp, xc, A, p):
        n = A.shape[-1]
        A_p = A + jnp.eye(n, dtype=A.dtype)
        A_p = A_p / (A_p.sum(-1, keepdims=True) + 1e-12)
        WA_p = jax.nn.softmax(jnp.matmul(p['W_p'], A_p), axis=-1)
        y_p = jnp.matmul(WA_p, xp)
        A_cn = A / (A.sum(-1, keepdims=True) + 1e-12)
        WA_c = jax.nn.softmax(jnp.matmul(p['W_c'], A_cn), axis=-1)
        y_c = jnp.matmul(WA_c, xc)
        y = jnp.concatenate([y_p, y_c], axis=-1)
        return jax.nn.relu(jnp.matmul(y, p['W'].T) + p['b'])

    y = x_p
    for p in params['gbsl']:
        y = gbsl_ref(y, x_c, A_c, p)
    for i, p in enumerate(params['mlp']):
        y = jnp.matmul(y, p['W'].T) + p['b']
        if i < len(params['mlp']) - 1:
            y = jax.nn.relu(y)
    return y


def init_params(key, dim_in, dim_hidden, dim_out, num_hidden, num_node):
    """Synthetic parameters matching the PyTorch GBSN.__init__ shapes."""
    def linear_init(k, fan_in, fan_out):
        lim = 1.0 / float(fan_in) ** 0.5
        kw, kb = jax.random.split(k)
        W = jax.random.uniform(kw, (fan_out, fan_in), jnp.float32, -lim, lim)
        b = jax.random.uniform(kb, (fan_out,), jnp.float32, -lim, lim)
        return W, b

    keys = jax.random.split(key, 4 * num_hidden)
    ki = 0
    gbsl = []
    for l in range(num_hidden):
        d_out_l = dim_in if l < num_hidden - 1 else dim_hidden
        W_p = 0.01 * jax.random.normal(keys[ki], (1, num_node, num_node),
                                       jnp.float32); ki += 1
        W_c = 0.01 * jax.random.normal(keys[ki], (1, num_node, num_node),
                                       jnp.float32); ki += 1
        W, b = linear_init(keys[ki], 2 * dim_in, d_out_l); ki += 1
        gbsl.append({'W_p': W_p, 'W_c': W_c, 'W': W, 'b': b})
    mlp = []
    for _ in range(num_hidden - 1):
        W, b = linear_init(keys[ki], dim_hidden, dim_hidden); ki += 1
        mlp.append({'W': W, 'b': b})
    W, b = linear_init(keys[ki], dim_hidden, dim_out); ki += 1
    mlp.append({'W': W, 'b': b})
    return {'gbsl': gbsl, 'mlp': mlp}


if __name__ == "__main__":
    B, N = 4, 8
    dim_in, dim_hidden, dim_out, num_hidden = 16, 32, 16, 2

    key = jax.random.PRNGKey(0)
    k_xp, k_xc, k_a, k_par = jax.random.split(key, 4)
    x_p = jax.random.normal(k_xp, (B, N, dim_in), dtype=jnp.float32)
    x_c = jax.random.normal(k_xc, (B, N, dim_in), dtype=jnp.float32)
    # non-negative adjacency so the row normalization is well behaved
    A_c = jax.random.uniform(k_a, (B, N, N), dtype=jnp.float32)
    params = init_params(k_par, dim_in, dim_hidden, dim_out, num_hidden, N)

    try:
        out = jax.block_until_ready(
            gbsn_forward(x_p, x_c, A_c, params, single_buffer_weights=True))
    except Exception:
        # fall back if pl.Buffered(1) pipeline_mode is unsupported on this build
        out = jax.block_until_ready(
            gbsn_forward(x_p, x_c, A_c, params, single_buffer_weights=False))

    ref = gbsn_reference(x_p, x_c, A_c, params)
    assert out.shape == (B, N, dim_out), out.shape
    err = float(jnp.max(jnp.abs(out - ref)))
    scale = float(jnp.max(jnp.abs(ref)))
    # tolerance relaxed for bf16 MXU operands + approx-reciprocal (EUP) ops
    assert err <= 3e-2 * (1.0 + scale), f"max abs err {err} (ref scale {scale})"

    print("KERNEL_OK")
</pallas_src>

<mosaic_0001>
module attributes {stable_mosaic.version = 11 : i64} {
  func.func @kernel(%arg0: i32, %arg1: memref<2x8x8xf32, #tpu.memory_space<vmem>>, %arg2: memref<2x8x128xf32, #tpu.memory_space<vmem>>, %arg3: memref<2x8x128xf32, #tpu.memory_space<vmem>>, %arg4: memref<8x8xf32, #tpu.memory_space<vmem>>, %arg5: memref<8x8xf32, #tpu.memory_space<vmem>>, %arg6: memref<8x8xf32, #tpu.memory_space<vmem>>, %arg7: memref<8x8xf32, #tpu.memory_space<vmem>>, %arg8: memref<128x128xbf16, #tpu.memory_space<vmem>>, %arg9: memref<128x128xbf16, #tpu.memory_space<vmem>>, %arg10: memref<128x128xbf16, #tpu.memory_space<vmem>>, %arg11: memref<128x128xbf16, #tpu.memory_space<vmem>>, %arg12: memref<1x128xf32, #tpu.memory_space<vmem>>, %arg13: memref<1x128xf32, #tpu.memory_space<vmem>>, %arg14: memref<128x128xbf16, #tpu.memory_space<vmem>>, %arg15: memref<1x128xf32, #tpu.memory_space<vmem>>, %arg16: memref<128x128xbf16, #tpu.memory_space<vmem>>, %arg17: memref<1x128xf32, #tpu.memory_space<vmem>>, %arg18: memref<2x8x128xf32, #tpu.memory_space<vmem>>) attributes {dimension_semantics = [#tpu.dimension_semantics<parallel>], iteration_bounds = array<i64: 2>, scalar_prefetch = 0 : i64, scratch_operands = 0 : i64, tpu.core_type = #tpu.core_type<tc>, window_params = [{transform_indices = @transform_0, window_bounds = array<i64: 2, 8, 8>}, {transform_indices = @transform_1, window_bounds = array<i64: 2, 8, 128>}, {transform_indices = @transform_2, window_bounds = array<i64: 2, 8, 128>}, {pipeline_mode = #tpu.pipeline_mode<synchronous>, transform_indices = @transform_3, window_bounds = array<i64: 8, 8>}, {pipeline_mode = #tpu.pipeline_mode<synchronous>, transform_indices = @transform_4, window_bounds = array<i64: 8, 8>}, {pipeline_mode = #tpu.pipeline_mode<synchronous>, transform_indices = @transform_5, window_bounds = array<i64: 8, 8>}, {pipeline_mode = #tpu.pipeline_mode<synchronous>, transform_indices = @transform_6, window_bounds = array<i64: 8, 8>}, {pipeline_mode = #tpu.pipeline_mode<synchronous>, transform_indices = @transform_7, window_bounds = array<i64: 128, 128>}, {pipeline_mode = #tpu.pipeline_mode<synchronous>, transform_indices = @transform_8, window_bounds = array<i64: 128, 128>}, {pipeline_mode = #tpu.pipeline_mode<synchronous>, transform_indices = @transform_9, window_bounds = array<i64: 128, 128>}, {pipeline_mode = #tpu.pipeline_mode<synchronous>, transform_indices = @transform_10, window_bounds = array<i64: 128, 128>}, {pipeline_mode = #tpu.pipeline_mode<synchronous>, transform_indices = @transform_11, window_bounds = array<i64: 1, 128>}, {pipeline_mode = #tpu.pipeline_mode<synchronous>, transform_indices = @transform_12, window_bounds = array<i64: 1, 128>}, {pipeline_mode = #tpu.pipeline_mode<synchronous>, transform_indices = @transform_13, window_bounds = array<i64: 128, 128>}, {pipeline_mode = #tpu.pipeline_mode<synchronous>, transform_indices = @transform_14, window_bounds = array<i64: 1, 128>}, {pipeline_mode = #tpu.pipeline_mode<synchronous>, transform_indices = @transform_15, window_bounds = array<i64: 128, 128>}, {pipeline_mode = #tpu.pipeline_mode<synchronous>, transform_indices = @transform_16, window_bounds = array<i64: 1, 128>}, {transform_indices = @transform_17, window_bounds = array<i64: 2, 8, 128>}]} {
    %c0 = arith.constant 0 : index
    %c0_0 = arith.constant 0 : index
    %c0_1 = arith.constant 0 : index
    %0 = vector.load %arg1[%c0, %c0_0, %c0_1] : memref<2x8x8xf32, #tpu.memory_space<vmem>>, vector<2x8x8xf32>
    %cst = arith.constant dense<0.000000e+00> : vector<2x8xf32>
    %1 = vector.multi_reduction <add>, %0, %cst [2] : vector<2x8x8xf32> to vector<2x8xf32>
    %cst_2 = arith.constant 1.000000e+00 : f32
    %2 = vector.broadcast %cst_2 : f32 to vector<2x8xf32>
    %3 = arith.addf %1, %2 : vector<2x8xf32>
    %4 = tpu.reciprocal %3 {approx = true} : vector<2x8xf32> -> vector<2x8xf32>
    %cst_3 = arith.constant 9.99999996E-13 : f32
    %5 = vector.broadcast %cst_3 : f32 to vector<2x8xf32>
    %6 = arith.addf %1, %5 : vector<2x8xf32>
    %7 = tpu.reciprocal %6 {approx = true} : vector<2x8xf32> -> vector<2x8xf32>
    %8 = tpu.iota {dimensions = array<i32: 0>} : vector<8x8xi32>
    %9 = tpu.iota {dimensions = array<i32: 1>} : vector<8x8xi32>
    %10 = arith.cmpi eq, %8, %9 : vector<8x8xi32>
    %11 = arith.extui %10 : vector<8x8xi1> to vector<8x8xi32>
    %12 = arith.sitofp %11 : vector<8x8xi32> to vector<8x8xf32>
    %13 = vector.shape_cast %12 : vector<8x8xf32> to vector<1x8x8xf32>
    %14 = vector.broadcast %13 : vector<1x8x8xf32> to vector<2x8x8xf32>
    %15 = arith.addf %0, %14 : vector<2x8x8xf32>
    %16 = vector.shape_cast %4 : vector<2x8xf32> to vector<2x8x1xf32>
    %17 = vector.broadcast %16 : vector<2x8x1xf32> to vector<2x8x8xf32>
    %18 = arith.mulf %15, %17 : vector<2x8x8xf32>
    %19 = vector.shape_cast %7 : vector<2x8xf32> to vector<2x8x1xf32>
    %20 = vector.broadcast %19 : vector<2x8x1xf32> to vector<2x8x8xf32>
    %21 = arith.mulf %0, %20 : vector<2x8x8xf32>
    %c0_4 = arith.constant 0 : index
    %c0_5 = arith.constant 0 : index
    %c0_6 = arith.constant 0 : index
    %22 = vector.load %arg2[%c0_4, %c0_5, %c0_6] : memref<2x8x128xf32, #tpu.memory_space<vmem>>, vector<2x8x128xf32>
    %c0_7 = arith.constant 0 : index
    %c0_8 = arith.constant 0 : index
    %c0_9 = arith.constant 0 : index
    %23 = vector.load %arg3[%c0_7, %c0_8, %c0_9] : memref<2x8x128xf32, #tpu.memory_space<vmem>>, vector<2x8x128xf32>
    %24 = arith.truncf %23 : vector<2x8x128xf32> to vector<2x8x128xbf16>
    %c0_10 = arith.constant 0 : index
    %c0_11 = arith.constant 0 : index
    %25 = vector.load %arg4[%c0_10, %c0_11] : memref<8x8xf32, #tpu.memory_space<vmem>>, vector<8x8xf32>
    %26 = vector.shape_cast %25 : vector<8x8xf32> to vector<1x8x8xf32>
    %27 = vector.broadcast %26 : vector<1x8x8xf32> to vector<2x8x8xf32>
    %c0_12 = arith.constant 0 : index
    %c0_13 = arith.constant 0 : index
    %28 = vector.load %arg6[%c0_12, %c0_13] : memref<8x8xf32, #tpu.memory_space<vmem>>, vector<8x8xf32>
    %29 = vector.shape_cast %28 : vector<8x8xf32> to vector<1x8x8xf32>
    %30 = vector.broadcast %29 : vector<1x8x8xf32> to vector<2x8x8xf32>
    "tpu.trace_start"() <{level = 10 : i32, message = "bij,bjk->bik"}> : () -> ()
    %cst_14 = arith.constant dense<0.000000e+00> : vector<2x8x8xf32>
    %31 = tpu.matmul %27, %18, %cst_14 {dimension_numbers = #tpu.dot_dimension_numbers<[2], [1], [1], [2], [0, 0, 0, 1, 1, 2], [0], [0]>} : vector<2x8x8xf32>, vector<2x8x8xf32>, vector<2x8x8xf32> -> vector<2x8x8xf32>
    %cst_15 = arith.constant dense<0.000000e+00> : vector<2x8x8xf32>
    %32 = tpu.matmul %30, %21, %cst_15 {dimension_numbers = #tpu.dot_dimension_numbers<[2], [1], [1], [2], [0, 0, 0, 1, 1, 2], [0], [0]>} : vector<2x8x8xf32>, vector<2x8x8xf32>, vector<2x8x8xf32> -> vector<2x8x8xf32>
    "tpu.trace_stop"() : () -> ()
    %cst_16 = arith.constant dense<0xFF800000> : vector<2x8xf32>
    %33 = vector.multi_reduction <maximumf>, %31, %cst_16 [2] : vector<2x8x8xf32> to vector<2x8xf32>
    %34 = vector.shape_cast %33 : vector<2x8xf32> to vector<2x8x1xf32>
    %35 = vector.broadcast %34 : vector<2x8x1xf32> to vector<2x8x8xf32>
    %36 = arith.subf %31, %35 : vector<2x8x8xf32>
    %37 = math.exp %36 : vector<2x8x8xf32>
    %cst_17 = arith.constant dense<0.000000e+00> : vector<2x8xf32>
    %38 = vector.multi_reduction <add>, %37, %cst_17 [2] : vector<2x8x8xf32> to vector<2x8xf32>
    %39 = vector.shape_cast %38 : vector<2x8xf32> to vector<2x8x1xf32>
    %40 = tpu.reciprocal %39 {approx = true} : vector<2x8x1xf32> -> vector<2x8x1xf32>
    %41 = vector.broadcast %40 : vector<2x8x1xf32> to vector<2x8x8xf32>
    %42 = arith.mulf %37, %41 : vector<2x8x8xf32>
    %43 = arith.truncf %42 : vector<2x8x8xf32> to vector<2x8x8xbf16>
    %cst_18 = arith.constant dense<0xFF800000> : vector<2x8xf32>
    %44 = vector.multi_reduction <maximumf>, %32, %cst_18 [2] : vector<2x8x8xf32> to vector<2x8xf32>
    %45 = vector.shape_cast %44 : vector<2x8xf32> to vector<2x8x1xf32>
    %46 = vector.broadcast %45 : vector<2x8x1xf32> to vector<2x8x8xf32>
    %47 = arith.subf %32, %46 : vector<2x8x8xf32>
    %48 = math.exp %47 : vector<2x8x8xf32>
    %cst_19 = arith.constant dense<0.000000e+00> : vector<2x8xf32>
    %49 = vector.multi_reduction <add>, %48, %cst_19 [2] : vector<2x8x8xf32> to vector<2x8xf32>
    %50 = vector.shape_cast %49 : vector<2x8xf32> to vector<2x8x1xf32>
    %51 = tpu.reciprocal %50 {approx = true} : vector<2x8x1xf32> -> vector<2x8x1xf32>
    %52 = vector.broadcast %51 : vector<2x8x1xf32> to vector<2x8x8xf32>
    %53 = arith.mulf %48, %52 : vector<2x8x8xf32>
    %54 = arith.truncf %53 : vector<2x8x8xf32> to vector<2x8x8xbf16>
    %55 = arith.truncf %22 : vector<2x8x128xf32> to vector<2x8x128xbf16>
    "tpu.trace_start"() <{level = 10 : i32, message = "bij,bjd->bid"}> : () -> ()
    %cst_20 = arith.constant dense<0.000000e+00> : vector<2x8x128xf32>
    %56 = tpu.matmul %43, %55, %cst_20 {dimension_numbers = #tpu.dot_dimension_numbers<[2], [1], [1], [2], [0, 0, 0, 1, 1, 2], [0], [0]>} : vector<2x8x8xbf16>, vector<2x8x128xbf16>, vector<2x8x128xf32> -> vector<2x8x128xf32>
    %cst_21 = arith.constant dense<0.000000e+00> : vector<2x8x128xf32>
    %57 = tpu.matmul %54, %24, %cst_21 {dimension_numbers = #tpu.dot_dimension_numbers<[2], [1], [1], [2], [0, 0, 0, 1, 1, 2], [0], [0]>} : vector<2x8x8xbf16>, vector<2x8x128xbf16>, vector<2x8x128xf32> -> vector<2x8x128xf32>
    "tpu.trace_stop"() : () -> ()
    %58 = vector.shape_cast %56 : vector<2x8x128xf32> to vector<16x128xf32>
    %59 = arith.truncf %58 : vector<16x128xf32> to vector<16x128xbf16>
    %c0_22 = arith.constant 0 : index
    %c0_23 = arith.constant 0 : index
    %60 = vector.load %arg8[%c0_22, %c0_23] : memref<128x128xbf16, #tpu.memory_space<vmem>>, vector<128x128xbf16>
    %cst_24 = arith.constant dense<0.000000e+00> : vector<16x128xf32>
    %61 = tpu.matmul %59, %60, %cst_24 {dimension_numbers = #tpu.dot_dimension_numbers<[1], [0], [0], [1], [0, 0, 1, 1], [], []>} : vector<16x128xbf16>, vector<128x128xbf16>, vector<16x128xf32> -> vector<16x128xf32>
    %62 = vector.shape_cast %57 : vector<2x8x128xf32> to vector<16x128xf32>
    %63 = arith.truncf %62 : vector<16x128xf32> to vector<16x128xbf16>
    %c0_25 = arith.constant 0 : index
    %c0_26 = arith.constant 0 : index
    %64 = vector.load %arg10[%c0_25, %c0_26] : memref<128x128xbf16, #tpu.memory_space<vmem>>, vector<128x128xbf16>
    %cst_27 = arith.constant dense<0.000000e+00> : vector<16x128xf32>
    %65 = tpu.matmul %63, %64, %cst_27 {dimension_numbers = #tpu.dot_dimension_numbers<[1], [0], [0], [1], [0, 0, 1, 1], [], []>} : vector<16x128xbf16>, vector<128x128xbf16>, vector<16x128xf32> -> vector<16x128xf32>
    %66 = arith.addf %61, %65 : vector<16x128xf32>
    %c0_28 = arith.constant 0 : index
    %c0_29 = arith.constant 0 : index
    %67 = vector.load %arg12[%c0_28, %c0_29] : memref<1x128xf32, #tpu.memory_space<vmem>>, vector<1x128xf32>
    %68 = vector.broadcast %67 : vector<1x128xf32> to vector<16x128xf32>
    %69 = arith.addf %66, %68 : vector<16x128xf32>
    %cst_30 = arith.constant 0.000000e+00 : f32
    %70 = vector.broadcast %cst_30 : f32 to vector<16x128xf32>
    %71 = arith.maximumf %69, %70 : vector<16x128xf32>
    %72 = vector.shape_cast %71 : vector<16x128xf32> to vector<2x8x128xf32>
    %c0_31 = arith.constant 0 : index
    %c0_32 = arith.constant 0 : index
    %73 = vector.load %arg5[%c0_31, %c0_32] : memref<8x8xf32, #tpu.memory_space<vmem>>, vector<8x8xf32>
    %74 = vector.shape_cast %73 : vector<8x8xf32> to vector<1x8x8xf32>
    %75 = vector.broadcast %74 : vector<1x8x8xf32> to vector<2x8x8xf32>
    %c0_33 = arith.constant 0 : index
    %c0_34 = arith.constant 0 : index
    %76 = vector.load %arg7[%c0_33, %c0_34] : memref<8x8xf32, #tpu.memory_space<vmem>>, vector<8x8xf32>
    %77 = vector.shape_cast %76 : vector<8x8xf32> to vector<1x8x8xf32>
    %78 = vector.broadcast %77 : vector<1x8x8xf32> to vector<2x8x8xf32>
    "tpu.trace_start"() <{level = 10 : i32, message = "bij,bjk->bik"}> : () -> ()
    %cst_35 = arith.constant dense<0.000000e+00> : vector<2x8x8xf32>
    %79 = tpu.matmul %75, %18, %cst_35 {dimension_numbers = #tpu.dot_dimension_numbers<[2], [1], [1], [2], [0, 0, 0, 1, 1, 2], [0], [0]>} : vector<2x8x8xf32>, vector<2x8x8xf32>, vector<2x8x8xf32> -> vector<2x8x8xf32>
    %cst_36 = arith.constant dense<0.000000e+00> : vector<2x8x8xf32>
    %80 = tpu.matmul %78, %21, %cst_36 {dimension_numbers = #tpu.dot_dimension_numbers<[2], [1], [1], [2], [0, 0, 0, 1, 1, 2], [0], [0]>} : vector<2x8x8xf32>, vector<2x8x8xf32>, vector<2x8x8xf32> -> vector<2x8x8xf32>
    "tpu.trace_stop"() : () -> ()
    %cst_37 = arith.constant dense<0xFF800000> : vector<2x8xf32>
    %81 = vector.multi_reduction <maximumf>, %79, %cst_37 [2] : vector<2x8x8xf32> to vector<2x8xf32>
    %82 = vector.shape_cast %81 : vector<2x8xf32> to vector<2x8x1xf32>
    %83 = vector.broadcast %82 : vector<2x8x1xf32> to vector<2x8x8xf32>
    %84 = arith.subf %79, %83 : vector<2x8x8xf32>
    %85 = math.exp %84 : vector<2x8x8xf32>
    %cst_38 = arith.constant dense<0.000000e+00> : vector<2x8xf32>
    %86 = vector.multi_reduction <add>, %85, %cst_38 [2] : vector<2x8x8xf32> to vector<2x8xf32>
    %87 = vector.shape_cast %86 : vector<2x8xf32> to vector<2x8x1xf32>
    %88 = tpu.reciprocal %87 {approx = true} : vector<2x8x1xf32> -> vector<2x8x1xf32>
    %89 = vector.broadcast %88 : vector<2x8x1xf32> to vector<2x8x8xf32>
    %90 = arith.mulf %85, %89 : vector<2x8x8xf32>
    %91 = arith.truncf %90 : vector<2x8x8xf32> to vector<2x8x8xbf16>
    %cst_39 = arith.constant dense<0xFF800000> : vector<2x8xf32>
    %92 = vector.multi_reduction <maximumf>, %80, %cst_39 [2] : vector<2x8x8xf32> to vector<2x8xf32>
    %93 = vector.shape_cast %92 : vector<2x8xf32> to vector<2x8x1xf32>
    %94 = vector.broadcast %93 : vector<2x8x1xf32> to vector<2x8x8xf32>
    %95 = arith.subf %80, %94 : vector<2x8x8xf32>
    %96 = math.exp %95 : vector<2x8x8xf32>
    %cst_40 = arith.constant dense<0.000000e+00> : vector<2x8xf32>
    %97 = vector.multi_reduction <add>, %96, %cst_40 [2] : vector<2x8x8xf32> to vector<2x8xf32>
    %98 = vector.shape_cast %97 : vector<2x8xf32> to vector<2x8x1xf32>
    %99 = tpu.reciprocal %98 {approx = true} : vector<2x8x1xf32> -> vector<2x8x1xf32>
    %100 = vector.broadcast %99 : vector<2x8x1xf32> to vector<2x8x8xf32>
    %101 = arith.mulf %96, %100 : vector<2x8x8xf32>
    %102 = arith.truncf %101 : vector<2x8x8xf32> to vector<2x8x8xbf16>
    %103 = arith.truncf %72 : vector<2x8x128xf32> to vector<2x8x128xbf16>
    "tpu.trace_start"() <{level = 10 : i32, message = "bij,bjd->bid"}> : () -> ()
    %cst_41 = arith.constant dense<0.000000e+00> : vector<2x8x128xf32>
    %104 = tpu.matmul %91, %103, %cst_41 {dimension_numbers = #tpu.dot_dimension_numbers<[2], [1], [1], [2], [0, 0, 0, 1, 1, 2], [0], [0]>} : vector<2x8x8xbf16>, vector<2x8x128xbf16>, vector<2x8x128xf32> -> vector<2x8x128xf32>
    %cst_42 = arith.constant dense<0.000000e+00> : vector<2x8x128xf32>
    %105 = tpu.matmul %102, %24, %cst_42 {dimension_numbers = #tpu.dot_dimension_numbers<[2], [1], [1], [2], [0, 0, 0, 1, 1, 2], [0], [0]>} : vector<2x8x8xbf16>, vector<2x8x128xbf16>, vector<2x8x128xf32> -> vector<2x8x128xf32>
    "tpu.trace_stop"() : () -> ()
    %106 = vector.shape_cast %104 : vector<2x8x128xf32> to vector<16x128xf32>
    %107 = arith.truncf %106 : vector<16x128xf32> to vector<16x128xbf16>
    %c0_43 = arith.constant 0 : index
    %c0_44 = arith.constant 0 : index
    %108 = vector.load %arg9[%c0_43, %c0_44] : memref<128x128xbf16, #tpu.memory_space<vmem>>, vector<128x128xbf16>
    %cst_45 = arith.constant dense<0.000000e+00> : vector<16x128xf32>
    %109 = tpu.matmul %107, %108, %cst_45 {dimension_numbers = #tpu.dot_dimension_numbers<[1], [0], [0], [1], [0, 0, 1, 1], [], []>} : vector<16x128xbf16>, vector<128x128xbf16>, vector<16x128xf32> -> vector<16x128xf32>
    %110 = vector.shape_cast %105 : vector<2x8x128xf32> to vector<16x128xf32>
    %111 = arith.truncf %110 : vector<16x128xf32> to vector<16x128xbf16>
    %c0_46 = arith.constant 0 : index
    %c0_47 = arith.constant 0 : index
    %112 = vector.load %arg11[%c0_46, %c0_47] : memref<128x128xbf16, #tpu.memory_space<vmem>>, vector<128x128xbf16>
    %cst_48 = arith.constant dense<0.000000e+00> : vector<16x128xf32>
    %113 = tpu.matmul %111, %112, %cst_48 {dimension_numbers = #tpu.dot_dimension_numbers<[1], [0], [0], [1], [0, 0, 1, 1], [], []>} : vector<16x128xbf16>, vector<128x128xbf16>, vector<16x128xf32> -> vector<16x128xf32>
    %114 = arith.addf %109, %113 : vector<16x128xf32>
    %c0_49 = arith.constant 0 : index
    %c0_50 = arith.constant 0 : index
    %115 = vector.load %arg13[%c0_49, %c0_50] : memref<1x128xf32, #tpu.memory_space<vmem>>, vector<1x128xf32>
    %116 = vector.broadcast %115 : vector<1x128xf32> to vector<16x128xf32>
    %117 = arith.addf %114, %116 : vector<16x128xf32>
    %cst_51 = arith.constant 0.000000e+00 : f32
    %118 = vector.broadcast %cst_51 : f32 to vector<16x128xf32>
    %119 = arith.maximumf %117, %118 : vector<16x128xf32>
    %120 = vector.shape_cast %119 : vector<16x128xf32> to vector<2x8x128xf32>
    %121 = vector.shape_cast %120 : vector<2x8x128xf32> to vector<16x128xf32>
    %122 = arith.truncf %121 : vector<16x128xf32> to vector<16x128xbf16>
    %c0_52 = arith.constant 0 : index
    %c0_53 = arith.constant 0 : index
    %123 = vector.load %arg14[%c0_52, %c0_53] : memref<128x128xbf16, #tpu.memory_space<vmem>>, vector<128x128xbf16>
    %cst_54 = arith.constant dense<0.000000e+00> : vector<16x128xf32>
    %124 = tpu.matmul %122, %123, %cst_54 {dimension_numbers = #tpu.dot_dimension_numbers<[1], [0], [0], [1], [0, 0, 1, 1], [], []>} : vector<16x128xbf16>, vector<128x128xbf16>, vector<16x128xf32> -> vector<16x128xf32>
    %c0_55 = arith.constant 0 : index
    %c0_56 = arith.constant 0 : index
    %125 = vector.load %arg15[%c0_55, %c0_56] : memref<1x128xf32, #tpu.memory_space<vmem>>, vector<1x128xf32>
    %126 = vector.broadcast %125 : vector<1x128xf32> to vector<16x128xf32>
    %127 = arith.addf %124, %126 : vector<16x128xf32>
    %cst_57 = arith.constant 0.000000e+00 : f32
    %128 = vector.broadcast %cst_57 : f32 to vector<16x128xf32>
    %129 = arith.maximumf %127, %128 : vector<16x128xf32>
    %130 = arith.truncf %129 : vector<16x128xf32> to vector<16x128xbf16>
    %c0_58 = arith.constant 0 : index
    %c0_59 = arith.constant 0 : index
    %131 = vector.load %arg16[%c0_58, %c0_59] : memref<128x128xbf16, #tpu.memory_space<vmem>>, vector<128x128xbf16>
    %cst_60 = arith.constant dense<0.000000e+00> : vector<16x128xf32>
    %132 = tpu.matmul %130, %131, %cst_60 {dimension_numbers = #tpu.dot_dimension_numbers<[1], [0], [0], [1], [0, 0, 1, 1], [], []>} : vector<16x128xbf16>, vector<128x128xbf16>, vector<16x128xf32> -> vector<16x128xf32>
    %c0_61 = arith.constant 0 : index
    %c0_62 = arith.constant 0 : index
    %133 = vector.load %arg17[%c0_61, %c0_62] : memref<1x128xf32, #tpu.memory_space<vmem>>, vector<1x128xf32>
    %134 = vector.broadcast %133 : vector<1x128xf32> to vector<16x128xf32>
    %135 = arith.addf %132, %134 : vector<16x128xf32>
    %136 = vector.shape_cast %135 : vector<16x128xf32> to vector<2x8x128xf32>
    %c0_63 = arith.constant 0 : index
    %c0_64 = arith.constant 0 : index
    %c0_65 = arith.constant 0 : index
    %137 = vector.load %arg18[%c0_63, %c0_64, %c0_65] : memref<2x8x128xf32, #tpu.memory_space<vmem>>, vector<2x8x128xf32>
    tpu.vector_store %arg18[%c0_63, %c0_64, %c0_65], %136 {strides = array<i32>} : memref<2x8x128xf32, #tpu.memory_space<vmem>>, vector<2x8x128xf32>,
    return
  }
  func.func @transform_0(%arg0: i32) -> (i32, i32, i32) {
    %c0_i32 = arith.constant 0 : i32
    %c0_i32_0 = arith.constant 0 : i32
    %c0_i32_1 = arith.constant 0 : i32
    return %arg0, %c0_i32, %c0_i32_0 : i32, i32, i32
  }
  func.func @transform_1(%arg0: i32) -> (i32, i32, i32) {
    %c0_i32 = arith.constant 0 : i32
    %c0_i32_0 = arith.constant 0 : i32
    %c0_i32_1 = arith.constant 0 : i32
    return %arg0, %c0_i32, %c0_i32_0 : i32, i32, i32
  }
  func.func @transform_2(%arg0: i32) -> (i32, i32, i32) {
    %c0_i32 = arith.constant 0 : i32
    %c0_i32_0 = arith.constant 0 : i32
    %c0_i32_1 = arith.constant 0 : i32
    return %arg0, %c0_i32, %c0_i32_0 : i32, i32, i32
  }
  func.func @transform_3(%arg0: i32) -> (i32, i32) {
    %c0_i32 = arith.constant 0 : i32
    %c0_i32_0 = arith.constant 0 : i32
    %c0_i32_1 = arith.constant 0 : i32
    return %c0_i32, %c0_i32_0 : i32, i32
  }
  func.func @transform_4(%arg0: i32) -> (i32, i32) {
    %c0_i32 = arith.constant 0 : i32
    %c0_i32_0 = arith.constant 0 : i32
    %c0_i32_1 = arith.constant 0 : i32
    return %c0_i32, %c0_i32_0 : i32, i32
  }
  func.func @transform_5(%arg0: i32) -> (i32, i32) {
    %c0_i32 = arith.constant 0 : i32
    %c0_i32_0 = arith.constant 0 : i32
    %c0_i32_1 = arith.constant 0 : i32
    return %c0_i32, %c0_i32_0 : i32, i32
  }
  func.func @transform_6(%arg0: i32) -> (i32, i32) {
    %c0_i32 = arith.constant 0 : i32
    %c0_i32_0 = arith.constant 0 : i32
    %c0_i32_1 = arith.constant 0 : i32
    return %c0_i32, %c0_i32_0 : i32, i32
  }
  func.func @transform_7(%arg0: i32) -> (i32, i32) {
    %c0_i32 = arith.constant 0 : i32
    %c0_i32_0 = arith.constant 0 : i32
    %c0_i32_1 = arith.constant 0 : i32
    return %c0_i32, %c0_i32_0 : i32, i32
  }
  func.func @transform_8(%arg0: i32) -> (i32, i32) {
    %c0_i32 = arith.constant 0 : i32
    %c0_i32_0 = arith.constant 0 : i32
    %c0_i32_1 = arith.constant 0 : i32
    return %c0_i32, %c0_i32_0 : i32, i32
  }
  func.func @transform_9(%arg0: i32) -> (i32, i32) {
    %c0_i32 = arith.constant 0 : i32
    %c0_i32_0 = arith.constant 0 : i32
    %c0_i32_1 = arith.constant 0 : i32
    return %c0_i32, %c0_i32_0 : i32, i32
  }
  func.func @transform_10(%arg0: i32) -> (i32, i32) {
    %c0_i32 = arith.constant 0 : i32
    %c0_i32_0 = arith.constant 0 : i32
    %c0_i32_1 = arith.constant 0 : i32
    return %c0_i32, %c0_i32_0 : i32, i32
  }
  func.func @transform_11(%arg0: i32) -> (i32, i32) {
    %c0_i32 = arith.constant 0 : i32
    %c0_i32_0 = arith.constant 0 : i32
    %c0_i32_1 = arith.constant 0 : i32
    return %c0_i32, %c0_i32_0 : i32, i32
  }
  func.func @transform_12(%arg0: i32) -> (i32, i32) {
    %c0_i32 = arith.constant 0 : i32
    %c0_i32_0 = arith.constant 0 : i32
    %c0_i32_1 = arith.constant 0 : i32
    return %c0_i32, %c0_i32_0 : i32, i32
  }
  func.func @transform_13(%arg0: i32) -> (i32, i32) {
    %c0_i32 = arith.constant 0 : i32
    %c0_i32_0 = arith.constant 0 : i32
    %c0_i32_1 = arith.constant 0 : i32
    return %c0_i32, %c0_i32_0 : i32, i32
  }
  func.func @transform_14(%arg0: i32) -> (i32, i32) {
    %c0_i32 = arith.constant 0 : i32
    %c0_i32_0 = arith.constant 0 : i32
    %c0_i32_1 = arith.constant 0 : i32
    return %c0_i32, %c0_i32_0 : i32, i32
  }
  func.func @transform_15(%arg0: i32) -> (i32, i32) {
    %c0_i32 = arith.constant 0 : i32
    %c0_i32_0 = arith.constant 0 : i32
    %c0_i32_1 = arith.constant 0 : i32
    return %c0_i32, %c0_i32_0 : i32, i32
  }
  func.func @transform_16(%arg0: i32) -> (i32, i32) {
    %c0_i32 = arith.constant 0 : i32
    %c0_i32_0 = arith.constant 0 : i32
    %c0_i32_1 = arith.constant 0 : i32
    return %c0_i32, %c0_i32_0 : i32, i32
  }
  func.func @transform_17(%arg0: i32) -> (i32, i32, i32) {
    %c0_i32 = arith.constant 0 : i32
    %c0_i32_0 = arith.constant 0 : i32
    %c0_i32_1 = arith.constant 0 : i32
    return %arg0, %c0_i32, %c0_i32_0 : i32, i32, i32
  }
}

module attributes {stable_mosaic.version = 11 : i64} {
  func.func @kernel(%arg0: i32, %arg1: memref<2x8x8xf32, #tpu.memory_space<vmem>>, %arg2: memref<2x8x128xf32, #tpu.memory_space<vmem>>, %arg3: memref<2x8x128xf32, #tpu.memory_space<vmem>>, %arg4: memref<8x8xf32, #tpu.memory_space<vmem>>, %arg5: memref<8x8xf32, #tpu.memory_space<vmem>>, %arg6: memref<8x8xf32, #tpu.memory_space<vmem>>, %arg7: memref<8x8xf32, #tpu.memory_space<vmem>>, %arg8: memref<128x128xbf16, #tpu.memory_space<vmem>>, %arg9: memref<128x128xbf16, #tpu.memory_space<vmem>>, %arg10: memref<128x128xbf16, #tpu.memory_space<vmem>>, %arg11: memref<128x128xbf16, #tpu.memory_space<vmem>>, %arg12: memref<1x128xf32, #tpu.memory_space<vmem>>, %arg13: memref<1x128xf32, #tpu.memory_space<vmem>>, %arg14: memref<128x128xbf16, #tpu.memory_space<vmem>>, %arg15: memref<1x128xf32, #tpu.memory_space<vmem>>, %arg16: memref<128x128xbf16, #tpu.memory_space<vmem>>, %arg17: memref<1x128xf32, #tpu.memory_space<vmem>>, %arg18: memref<2x8x128xf32, #tpu.memory_space<vmem>>) attributes {dimension_semantics = [#tpu.dimension_semantics<parallel>], iteration_bounds = array<i64: 2>, scalar_prefetch = 0 : i64, scratch_operands = 0 : i64, tpu.core_type = #tpu.core_type<tc>, window_params = [{transform_indices = @transform_0, window_bounds = array<i64: 2, 8, 8>}, {transform_indices = @transform_1, window_bounds = array<i64: 2, 8, 128>}, {transform_indices = @transform_2, window_bounds = array<i64: 2, 8, 128>}, {pipeline_mode = #tpu.pipeline_mode<synchronous>, transform_indices = @transform_3, window_bounds = array<i64: 8, 8>}, {pipeline_mode = #tpu.pipeline_mode<synchronous>, transform_indices = @transform_4, window_bounds = array<i64: 8, 8>}, {pipeline_mode = #tpu.pipeline_mode<synchronous>, transform_indices = @transform_5, window_bounds = array<i64: 8, 8>}, {pipeline_mode = #tpu.pipeline_mode<synchronous>, transform_indices = @transform_6, window_bounds = array<i64: 8, 8>}, {pipeline_mode = #tpu.pipeline_mode<synchronous>, transform_indices = @transform_7, window_bounds = array<i64: 128, 128>}, {pipeline_mode = #tpu.pipeline_mode<synchronous>, transform_indices = @transform_8, window_bounds = array<i64: 128, 128>}, {pipeline_mode = #tpu.pipeline_mode<synchronous>, transform_indices = @transform_9, window_bounds = array<i64: 128, 128>}, {pipeline_mode = #tpu.pipeline_mode<synchronous>, transform_indices = @transform_10, window_bounds = array<i64: 128, 128>}, {pipeline_mode = #tpu.pipeline_mode<synchronous>, transform_indices = @transform_11, window_bounds = array<i64: 1, 128>}, {pipeline_mode = #tpu.pipeline_mode<synchronous>, transform_indices = @transform_12, window_bounds = array<i64: 1, 128>}, {pipeline_mode = #tpu.pipeline_mode<synchronous>, transform_indices = @transform_13, window_bounds = array<i64: 128, 128>}, {pipeline_mode = #tpu.pipeline_mode<synchronous>, transform_indices = @transform_14, window_bounds = array<i64: 1, 128>}, {pipeline_mode = #tpu.pipeline_mode<synchronous>, transform_indices = @transform_15, window_bounds = array<i64: 128, 128>}, {pipeline_mode = #tpu.pipeline_mode<synchronous>, transform_indices = @transform_16, window_bounds = array<i64: 1, 128>}, {transform_indices = @transform_17, window_bounds = array<i64: 2, 8, 128>}]} {
    %c0 = arith.constant 0 : index
    %c0_0 = arith.constant 0 : index
    %c0_1 = arith.constant 0 : index
    %0 = vector.load %arg1[%c0, %c0_0, %c0_1] : memref<2x8x8xf32, #tpu.memory_space<vmem>>, vector<2x8x8xf32>
    %cst = arith.constant dense<0.000000e+00> : vector<2x8xf32>
    %1 = vector.multi_reduction <add>, %0, %cst [2] : vector<2x8x8xf32> to vector<2x8xf32>
    %cst_2 = arith.constant 1.000000e+00 : f32
    %2 = vector.broadcast %cst_2 : f32 to vector<2x8xf32>
    %3 = arith.addf %1, %2 : vector<2x8xf32>
    %4 = tpu.reciprocal %3 {approx = true} : vector<2x8xf32> -> vector<2x8xf32>
    %cst_3 = arith.constant 9.99999996E-13 : f32
    %5 = vector.broadcast %cst_3 : f32 to vector<2x8xf32>
    %6 = arith.addf %1, %5 : vector<2x8xf32>
    %7 = tpu.reciprocal %6 {approx = true} : vector<2x8xf32> -> vector<2x8xf32>
    %8 = tpu.iota {dimensions = array<i32: 0>} : vector<8x8xi32>
    %9 = tpu.iota {dimensions = array<i32: 1>} : vector<8x8xi32>
    %10 = arith.cmpi eq, %8, %9 : vector<8x8xi32>
    %11 = arith.extui %10 : vector<8x8xi1> to vector<8x8xi32>
    %12 = arith.sitofp %11 : vector<8x8xi32> to vector<8x8xf32>
    %13 = vector.shape_cast %12 : vector<8x8xf32> to vector<1x8x8xf32>
    %14 = vector.broadcast %13 : vector<1x8x8xf32> to vector<2x8x8xf32>
    %15 = arith.addf %0, %14 : vector<2x8x8xf32>
    %16 = vector.shape_cast %4 : vector<2x8xf32> to vector<2x8x1xf32>
    %17 = vector.broadcast %16 : vector<2x8x1xf32> to vector<2x8x8xf32>
    %18 = arith.mulf %15, %17 : vector<2x8x8xf32>
    %19 = vector.shape_cast %7 : vector<2x8xf32> to vector<2x8x1xf32>
    %20 = vector.broadcast %19 : vector<2x8x1xf32> to vector<2x8x8xf32>
    %21 = arith.mulf %0, %20 : vector<2x8x8xf32>
    %c0_4 = arith.constant 0 : index
    %c0_5 = arith.constant 0 : index
    %c0_6 = arith.constant 0 : index
    %22 = vector.load %arg2[%c0_4, %c0_5, %c0_6] : memref<2x8x128xf32, #tpu.memory_space<vmem>>, vector<2x8x128xf32>
    %c0_7 = arith.constant 0 : index
    %c0_8 = arith.constant 0 : index
    %c0_9 = arith.constant 0 : index
    %23 = vector.load %arg3[%c0_7, %c0_8, %c0_9] : memref<2x8x128xf32, #tpu.memory_space<vmem>>, vector<2x8x128xf32>
    %24 = arith.truncf %23 : vector<2x8x128xf32> to vector<2x8x128xbf16>
    %c0_10 = arith.constant 0 : index
    %c0_11 = arith.constant 0 : index
    %25 = vector.load %arg4[%c0_10, %c0_11] : memref<8x8xf32, #tpu.memory_space<vmem>>, vector<8x8xf32>
    %26 = vector.shape_cast %25 : vector<8x8xf32> to vector<1x8x8xf32>
    %27 = vector.broadcast %26 : vector<1x8x8xf32> to vector<2x8x8xf32>
    %c0_12 = arith.constant 0 : index
    %c0_13 = arith.constant 0 : index
    %28 = vector.load %arg6[%c0_12, %c0_13] : memref<8x8xf32, #tpu.memory_space<vmem>>, vector<8x8xf32>
    %29 = vector.shape_cast %28 : vector<8x8xf32> to vector<1x8x8xf32>
    %30 = vector.broadcast %29 : vector<1x8x8xf32> to vector<2x8x8xf32>
    "tpu.trace_start"() <{level = 10 : i32, message = "bij,bjk->bik"}> : () -> ()
    %cst_14 = arith.constant dense<0.000000e+00> : vector<2x8x8xf32>
    %31 = tpu.matmul %27, %18, %cst_14 {dimension_numbers = #tpu.dot_dimension_numbers<[2], [1], [1], [2], [0, 0, 0, 1, 1, 2], [0], [0]>} : vector<2x8x8xf32>, vector<2x8x8xf32>, vector<2x8x8xf32> -> vector<2x8x8xf32>
    %cst_15 = arith.constant dense<0.000000e+00> : vector<2x8x8xf32>
    %32 = tpu.matmul %30, %21, %cst_15 {dimension_numbers = #tpu.dot_dimension_numbers<[2], [1], [1], [2], [0, 0, 0, 1, 1, 2], [0], [0]>} : vector<2x8x8xf32>, vector<2x8x8xf32>, vector<2x8x8xf32> -> vector<2x8x8xf32>
    "tpu.trace_stop"() : () -> ()
    %cst_16 = arith.constant dense<0xFF800000> : vector<2x8xf32>
    %33 = vector.multi_reduction <maximumf>, %31, %cst_16 [2] : vector<2x8x8xf32> to vector<2x8xf32>
    %34 = vector.shape_cast %33 : vector<2x8xf32> to vector<2x8x1xf32>
    %35 = vector.broadcast %34 : vector<2x8x1xf32> to vector<2x8x8xf32>
    %36 = arith.subf %31, %35 : vector<2x8x8xf32>
    %37 = math.exp %36 : vector<2x8x8xf32>
    %cst_17 = arith.constant dense<0.000000e+00> : vector<2x8xf32>
    %38 = vector.multi_reduction <add>, %37, %cst_17 [2] : vector<2x8x8xf32> to vector<2x8xf32>
    %39 = vector.shape_cast %38 : vector<2x8xf32> to vector<2x8x1xf32>
    %40 = tpu.reciprocal %39 {approx = true} : vector<2x8x1xf32> -> vector<2x8x1xf32>
    %41 = vector.broadcast %40 : vector<2x8x1xf32> to vector<2x8x8xf32>
    %42 = arith.mulf %37, %41 : vector<2x8x8xf32>
    %43 = arith.truncf %42 : vector<2x8x8xf32> to vector<2x8x8xbf16>
    %cst_18 = arith.constant dense<0xFF800000> : vector<2x8xf32>
    %44 = vector.multi_reduction <maximumf>, %32, %cst_18 [2] : vector<2x8x8xf32> to vector<2x8xf32>
    %45 = vector.shape_cast %44 : vector<2x8xf32> to vector<2x8x1xf32>
    %46 = vector.broadcast %45 : vector<2x8x1xf32> to vector<2x8x8xf32>
    %47 = arith.subf %32, %46 : vector<2x8x8xf32>
    %48 = math.exp %47 : vector<2x8x8xf32>
    %cst_19 = arith.constant dense<0.000000e+00> : vector<2x8xf32>
    %49 = vector.multi_reduction <add>, %48, %cst_19 [2] : vector<2x8x8xf32> to vector<2x8xf32>
    %50 = vector.shape_cast %49 : vector<2x8xf32> to vector<2x8x1xf32>
    %51 = tpu.reciprocal %50 {approx = true} : vector<2x8x1xf32> -> vector<2x8x1xf32>
    %52 = vector.broadcast %51 : vector<2x8x1xf32> to vector<2x8x8xf32>
    %53 = arith.mulf %48, %52 : vector<2x8x8xf32>
    %54 = arith.truncf %53 : vector<2x8x8xf32> to vector<2x8x8xbf16>
    %55 = arith.truncf %22 : vector<2x8x128xf32> to vector<2x8x128xbf16>
    "tpu.trace_start"() <{level = 10 : i32, message = "bij,bjd->bid"}> : () -> ()
    %cst_20 = arith.constant dense<0.000000e+00> : vector<2x8x128xf32>
    %56 = tpu.matmul %43, %55, %cst_20 {dimension_numbers = #tpu.dot_dimension_numbers<[2], [1], [1], [2], [0, 0, 0, 1, 1, 2], [0], [0]>} : vector<2x8x8xbf16>, vector<2x8x128xbf16>, vector<2x8x128xf32> -> vector<2x8x128xf32>
    %cst_21 = arith.constant dense<0.000000e+00> : vector<2x8x128xf32>
    %57 = tpu.matmul %54, %24, %cst_21 {dimension_numbers = #tpu.dot_dimension_numbers<[2], [1], [1], [2], [0, 0, 0, 1, 1, 2], [0], [0]>} : vector<2x8x8xbf16>, vector<2x8x128xbf16>, vector<2x8x128xf32> -> vector<2x8x128xf32>
    "tpu.trace_stop"() : () -> ()
    %58 = vector.shape_cast %56 : vector<2x8x128xf32> to vector<16x128xf32>
    %59 = arith.truncf %58 : vector<16x128xf32> to vector<16x128xbf16>
    %c0_22 = arith.constant 0 : index
    %c0_23 = arith.constant 0 : index
    %60 = vector.load %arg8[%c0_22, %c0_23] : memref<128x128xbf16, #tpu.memory_space<vmem>>, vector<128x128xbf16>
    %cst_24 = arith.constant dense<0.000000e+00> : vector<16x128xf32>
    %61 = tpu.matmul %59, %60, %cst_24 {dimension_numbers = #tpu.dot_dimension_numbers<[1], [0], [0], [1], [0, 0, 1, 1], [], []>} : vector<16x128xbf16>, vector<128x128xbf16>, vector<16x128xf32> -> vector<16x128xf32>
    %62 = vector.shape_cast %57 : vector<2x8x128xf32> to vector<16x128xf32>
    %63 = arith.truncf %62 : vector<16x128xf32> to vector<16x128xbf16>
    %c0_25 = arith.constant 0 : index
    %c0_26 = arith.constant 0 : index
    %64 = vector.load %arg10[%c0_25, %c0_26] : memref<128x128xbf16, #tpu.memory_space<vmem>>, vector<128x128xbf16>
    %cst_27 = arith.constant dense<0.000000e+00> : vector<16x128xf32>
    %65 = tpu.matmul %63, %64, %cst_27 {dimension_numbers = #tpu.dot_dimension_numbers<[1], [0], [0], [1], [0, 0, 1, 1], [], []>} : vector<16x128xbf16>, vector<128x128xbf16>, vector<16x128xf32> -> vector<16x128xf32>
    %66 = arith.addf %61, %65 : vector<16x128xf32>
    %c0_28 = arith.constant 0 : index
    %c0_29 = arith.constant 0 : index
    %67 = vector.load %arg12[%c0_28, %c0_29] : memref<1x128xf32, #tpu.memory_space<vmem>>, vector<1x128xf32>
    %68 = vector.broadcast %67 : vector<1x128xf32> to vector<16x128xf32>
    %69 = arith.addf %66, %68 : vector<16x128xf32>
    %cst_30 = arith.constant 0.000000e+00 : f32
    %70 = vector.broadcast %cst_30 : f32 to vector<16x128xf32>
    %71 = arith.maximumf %69, %70 : vector<16x128xf32>
    %72 = vector.shape_cast %71 : vector<16x128xf32> to vector<2x8x128xf32>
    %c0_31 = arith.constant 0 : index
    %c0_32 = arith.constant 0 : index
    %73 = vector.load %arg5[%c0_31, %c0_32] : memref<8x8xf32, #tpu.memory_space<vmem>>, vector<8x8xf32>
    %74 = vector.shape_cast %73 : vector<8x8xf32> to vector<1x8x8xf32>
    %75 = vector.broadcast %74 : vector<1x8x8xf32> to vector<2x8x8xf32>
    %c0_33 = arith.constant 0 : index
    %c0_34 = arith.constant 0 : index
    %76 = vector.load %arg7[%c0_33, %c0_34] : memref<8x8xf32, #tpu.memory_space<vmem>>, vector<8x8xf32>
    %77 = vector.shape_cast %76 : vector<8x8xf32> to vector<1x8x8xf32>
    %78 = vector.broadcast %77 : vector<1x8x8xf32> to vector<2x8x8xf32>
    "tpu.trace_start"() <{level = 10 : i32, message = "bij,bjk->bik"}> : () -> ()
    %cst_35 = arith.constant dense<0.000000e+00> : vector<2x8x8xf32>
    %79 = tpu.matmul %75, %18, %cst_35 {dimension_numbers = #tpu.dot_dimension_numbers<[2], [1], [1], [2], [0, 0, 0, 1, 1, 2], [0], [0]>} : vector<2x8x8xf32>, vector<2x8x8xf32>, vector<2x8x8xf32> -> vector<2x8x8xf32>
    %cst_36 = arith.constant dense<0.000000e+00> : vector<2x8x8xf32>
    %80 = tpu.matmul %78, %21, %cst_36 {dimension_numbers = #tpu.dot_dimension_numbers<[2], [1], [1], [2], [0, 0, 0, 1, 1, 2], [0], [0]>} : vector<2x8x8xf32>, vector<2x8x8xf32>, vector<2x8x8xf32> -> vector<2x8x8xf32>
    "tpu.trace_stop"() : () -> ()
    %cst_37 = arith.constant dense<0xFF800000> : vector<2x8xf32>
    %81 = vector.multi_reduction <maximumf>, %79, %cst_37 [2] : vector<2x8x8xf32> to vector<2x8xf32>
    %82 = vector.shape_cast %81 : vector<2x8xf32> to vector<2x8x1xf32>
    %83 = vector.broadcast %82 : vector<2x8x1xf32> to vector<2x8x8xf32>
    %84 = arith.subf %79, %83 : vector<2x8x8xf32>
    %85 = math.exp %84 : vector<2x8x8xf32>
    %cst_38 = arith.constant dense<0.000000e+00> : vector<2x8xf32>
    %86 = vector.multi_reduction <add>, %85, %cst_38 [2] : vector<2x8x8xf32> to vector<2x8xf32>
    %87 = vector.shape_cast %86 : vector<2x8xf32> to vector<2x8x1xf32>
    %88 = tpu.reciprocal %87 {approx = true} : vector<2x8x1xf32> -> vector<2x8x1xf32>
    %89 = vector.broadcast %88 : vector<2x8x1xf32> to vector<2x8x8xf32>
    %90 = arith.mulf %85, %89 : vector<2x8x8xf32>
    %91 = arith.truncf %90 : vector<2x8x8xf32> to vector<2x8x8xbf16>
    %cst_39 = arith.constant dense<0xFF800000> : vector<2x8xf32>
    %92 = vector.multi_reduction <maximumf>, %80, %cst_39 [2] : vector<2x8x8xf32> to vector<2x8xf32>
    %93 = vector.shape_cast %92 : vector<2x8xf32> to vector<2x8x1xf32>
    %94 = vector.broadcast %93 : vector<2x8x1xf32> to vector<2x8x8xf32>
    %95 = arith.subf %80, %94 : vector<2x8x8xf32>
    %96 = math.exp %95 : vector<2x8x8xf32>
    %cst_40 = arith.constant dense<0.000000e+00> : vector<2x8xf32>
    %97 = vector.multi_reduction <add>, %96, %cst_40 [2] : vector<2x8x8xf32> to vector<2x8xf32>
    %98 = vector.shape_cast %97 : vector<2x8xf32> to vector<2x8x1xf32>
    %99 = tpu.reciprocal %98 {approx = true} : vector<2x8x1xf32> -> vector<2x8x1xf32>
    %100 = vector.broadcast %99 : vector<2x8x1xf32> to vector<2x8x8xf32>
    %101 = arith.mulf %96, %100 : vector<2x8x8xf32>
    %102 = arith.truncf %101 : vector<2x8x8xf32> to vector<2x8x8xbf16>
    %103 = arith.truncf %72 : vector<2x8x128xf32> to vector<2x8x128xbf16>
    "tpu.trace_start"() <{level = 10 : i32, message = "bij,bjd->bid"}> : () -> ()
    %cst_41 = arith.constant dense<0.000000e+00> : vector<2x8x128xf32>
    %104 = tpu.matmul %91, %103, %cst_41 {dimension_numbers = #tpu.dot_dimension_numbers<[2], [1], [1], [2], [0, 0, 0, 1, 1, 2], [0], [0]>} : vector<2x8x8xbf16>, vector<2x8x128xbf16>, vector<2x8x128xf32> -> vector<2x8x128xf32>
    %cst_42 = arith.constant dense<0.000000e+00> : vector<2x8x128xf32>
    %105 = tpu.matmul %102, %24, %cst_42 {dimension_numbers = #tpu.dot_dimension_numbers<[2], [1], [1], [2], [0, 0, 0, 1, 1, 2], [0], [0]>} : vector<2x8x8xbf16>, vector<2x8x128xbf16>, vector<2x8x128xf32> -> vector<2x8x128xf32>
    "tpu.trace_stop"() : () -> ()
    %106 = vector.shape_cast %104 : vector<2x8x128xf32> to vector<16x128xf32>
    %107 = arith.truncf %106 : vector<16x128xf32> to vector<16x128xbf16>
    %c0_43 = arith.constant 0 : index
    %c0_44 = arith.constant 0 : index
    %108 = vector.load %arg9[%c0_43, %c0_44] : memref<128x128xbf16, #tpu.memory_space<vmem>>, vector<128x128xbf16>
    %cst_45 = arith.constant dense<0.000000e+00> : vector<16x128xf32>
    %109 = tpu.matmul %107, %108, %cst_45 {dimension_numbers = #tpu.dot_dimension_numbers<[1], [0], [0], [1], [0, 0, 1, 1], [], []>} : vector<16x128xbf16>, vector<128x128xbf16>, vector<16x128xf32> -> vector<16x128xf32>
    %110 = vector.shape_cast %105 : vector<2x8x128xf32> to vector<16x128xf32>
    %111 = arith.truncf %110 : vector<16x128xf32> to vector<16x128xbf16>
    %c0_46 = arith.constant 0 : index
    %c0_47 = arith.constant 0 : index
    %112 = vector.load %arg11[%c0_46, %c0_47] : memref<128x128xbf16, #tpu.memory_space<vmem>>, vector<128x128xbf16>
    %cst_48 = arith.constant dense<0.000000e+00> : vector<16x128xf32>
    %113 = tpu.matmul %111, %112, %cst_48 {dimension_numbers = #tpu.dot_dimension_numbers<[1], [0], [0], [1], [0, 0, 1, 1], [], []>} : vector<16x128xbf16>, vector<128x128xbf16>, vector<16x128xf32> -> vector<16x128xf32>
    %114 = arith.addf %109, %113 : vector<16x128xf32>
    %c0_49 = arith.constant 0 : index
    %c0_50 = arith.constant 0 : index
    %115 = vector.load %arg13[%c0_49, %c0_50] : memref<1x128xf32, #tpu.memory_space<vmem>>, vector<1x128xf32>
    %116 = vector.broadcast %115 : vector<1x128xf32> to vector<16x128xf32>
    %117 = arith.addf %114, %116 : vector<16x128xf32>
    %cst_51 = arith.constant 0.000000e+00 : f32
    %118 = vector.broadcast %cst_51 : f32 to vector<16x128xf32>
    %119 = arith.maximumf %117, %118 : vector<16x128xf32>
    %120 = vector.shape_cast %119 : vector<16x128xf32> to vector<2x8x128xf32>
    %121 = vector.shape_cast %120 : vector<2x8x128xf32> to vector<16x128xf32>
    %122 = arith.truncf %121 : vector<16x128xf32> to vector<16x128xbf16>
    %c0_52 = arith.constant 0 : index
    %c0_53 = arith.constant 0 : index
    %123 = vector.load %arg14[%c0_52, %c0_53] : memref<128x128xbf16, #tpu.memory_space<vmem>>, vector<128x128xbf16>
    %cst_54 = arith.constant dense<0.000000e+00> : vector<16x128xf32>
    %124 = tpu.matmul %122, %123, %cst_54 {dimension_numbers = #tpu.dot_dimension_numbers<[1], [0], [0], [1], [0, 0, 1, 1], [], []>} : vector<16x128xbf16>, vector<128x128xbf16>, vector<16x128xf32> -> vector<16x128xf32>
    %c0_55 = arith.constant 0 : index
    %c0_56 = arith.constant 0 : index
    %125 = vector.load %arg15[%c0_55, %c0_56] : memref<1x128xf32, #tpu.memory_space<vmem>>, vector<1x128xf32>
    %126 = vector.broadcast %125 : vector<1x128xf32> to vector<16x128xf32>
    %127 = arith.addf %124, %126 : vector<16x128xf32>
    %cst_57 = arith.constant 0.000000e+00 : f32
    %128 = vector.broadcast %cst_57 : f32 to vector<16x128xf32>
    %129 = arith.maximumf %127, %128 : vector<16x128xf32>
    %130 = arith.truncf %129 : vector<16x128xf32> to vector<16x128xbf16>
    %c0_58 = arith.constant 0 : index
    %c0_59 = arith.constant 0 : index
    %131 = vector.load %arg16[%c0_58, %c0_59] : memref<128x128xbf16, #tpu.memory_space<vmem>>, vector<128x128xbf16>
    %cst_60 = arith.constant dense<0.000000e+00> : vector<16x128xf32>
    %132 = tpu.matmul %130, %131, %cst_60 {dimension_numbers = #tpu.dot_dimension_numbers<[1], [0], [0], [1], [0, 0, 1, 1], [], []>} : vector<16x128xbf16>, vector<128x128xbf16>, vector<16x128xf32> -> vector<16x128xf32>
    %c0_61 = arith.constant 0 : index
    %c0_62 = arith.constant 0 : index
    %133 = vector.load %arg17[%c0_61, %c0_62] : memref<1x128xf32, #tpu.memory_space<vmem>>, vector<1x128xf32>
    %134 = vector.broadcast %133 : vector<1x128xf32> to vector<16x128xf32>
    %135 = arith.addf %132, %134 : vector<16x128xf32>
    %136 = vector.shape_cast %135 : vector<16x128xf32> to vector<2x8x128xf32>
    %c0_63 = arith.constant 0 : index
    %c0_64 = arith.constant 0 : index
    %c0_65 = arith.constant 0 : index
    %137 = vector.load %arg18[%c0_63, %c0_64, %c0_65] : memref<2x8x128xf32, #tpu.memory_space<vmem>>, vector<2x8x128xf32>
    tpu.vector_store %arg18[%c0_63, %c0_64, %c0_65], %136 {strides = array<i32>} : memref<2x8x128xf32, #tpu.memory_space<vmem>>, vector<2x8x128xf32>,
    return
  }
  func.func @transform_0(%arg0: i32) -> (i32, i32, i32) {
    %c0_i32 = arith.constant 0 : i32
    %c0_i32_0 = arith.constant 0 : i32
    %c0_i32_1 = arith.constant 0 : i32
    return %arg0, %c0_i32, %c0_i32_0 : i32, i32, i32
  }
  func.func @transform_1(%arg0: i32) -> (i32, i32, i32) {
    %c0_i32 = arith.constant 0 : i32
    %c0_i32_0 = arith.constant 0 : i32
    %c0_i32_1 = arith.constant 0 : i32
    return %arg0, %c0_i32, %c0_i32_0 : i32, i32, i32
  }
  func.func @transform_2(%arg0: i32) -> (i32, i32, i32) {
    %c0_i32 = arith.constant 0 : i32
    %c0_i32_0 = arith.constant 0 : i32
    %c0_i32_1 = arith.constant 0 : i32
    return %arg0, %c0_i32, %c0_i32_0 : i32, i32, i32
  }
  func.func @transform_3(%arg0: i32) -> (i32, i32) {
    %c0_i32 = arith.constant 0 : i32
    %c0_i32_0 = arith.constant 0 : i32
    %c0_i32_1 = arith.constant 0 : i32
    return %c0_i32, %c0_i32_0 : i32, i32
  }
  func.func @transform_4(%arg0: i32) -> (i32, i32) {
    %c0_i32 = arith.constant 0 : i32
    %c0_i32_0 = arith.constant 0 : i32
    %c0_i32_1 = arith.constant 0 : i32
    return %c0_i32, %c0_i32_0 : i32, i32
  }
  func.func @transform_5(%arg0: i32) -> (i32, i32) {
    %c0_i32 = arith.constant 0 : i32
    %c0_i32_0 = arith.constant 0 : i32
    %c0_i32_1 = arith.constant 0 : i32
    return %c0_i32, %c0_i32_0 : i32, i32
  }
  func.func @transform_6(%arg0: i32) -> (i32, i32) {
    %c0_i32 = arith.constant 0 : i32
    %c0_i32_0 = arith.constant 0 : i32
    %c0_i32_1 = arith.constant 0 : i32
    return %c0_i32, %c0_i32_0 : i32, i32
  }
  func.func @transform_7(%arg0: i32) -> (i32, i32) {
    %c0_i32 = arith.constant 0 : i32
    %c0_i32_0 = arith.constant 0 : i32
    %c0_i32_1 = arith.constant 0 : i32
    return %c0_i32, %c0_i32_0 : i32, i32
  }
  func.func @transform_8(%arg0: i32) -> (i32, i32) {
    %c0_i32 = arith.constant 0 : i32
    %c0_i32_0 = arith.constant 0 : i32
    %c0_i32_1 = arith.constant 0 : i32
    return %c0_i32, %c0_i32_0 : i32, i32
  }
  func.func @transform_9(%arg0: i32) -> (i32, i32) {
    %c0_i32 = arith.constant 0 : i32
    %c0_i32_0 = arith.constant 0 : i32
    %c0_i32_1 = arith.constant 0 : i32
    return %c0_i32, %c0_i32_0 : i32, i32
  }
  func.func @transform_10(%arg0: i32) -> (i32, i32) {
    %c0_i32 = arith.constant 0 : i32
    %c0_i32_0 = arith.constant 0 : i32
    %c0_i32_1 = arith.constant 0 : i32
    return %c0_i32, %c0_i32_0 : i32, i32
  }
  func.func @transform_11(%arg0: i32) -> (i32, i32) {
    %c0_i32 = arith.constant 0 : i32
    %c0_i32_0 = arith.constant 0 : i32
    %c0_i32_1 = arith.constant 0 : i32
    return %c0_i32, %c0_i32_0 : i32, i32
  }
  func.func @transform_12(%arg0: i32) -> (i32, i32) {
    %c0_i32 = arith.constant 0 : i32
    %c0_i32_0 = arith.constant 0 : i32
    %c0_i32_1 = arith.constant 0 : i32
    return %c0_i32, %c0_i32_0 : i32, i32
  }
  func.func @transform_13(%arg0: i32) -> (i32, i32) {
    %c0_i32 = arith.constant 0 : i32
    %c0_i32_0 = arith.constant 0 : i32
    %c0_i32_1 = arith.constant 0 : i32
    return %c0_i32, %c0_i32_0 : i32, i32
  }
  func.func @transform_14(%arg0: i32) -> (i32, i32) {
    %c0_i32 = arith.constant 0 : i32
    %c0_i32_0 = arith.constant 0 : i32
    %c0_i32_1 = arith.constant 0 : i32
    return %c0_i32, %c0_i32_0 : i32, i32
  }
  func.func @transform_15(%arg0: i32) -> (i32, i32) {
    %c0_i32 = arith.constant 0 : i32
    %c0_i32_0 = arith.constant 0 : i32
    %c0_i32_1 = arith.constant 0 : i32
    return %c0_i32, %c0_i32_0 : i32, i32
  }
  func.func @transform_16(%arg0: i32) -> (i32, i32) {
    %c0_i32 = arith.constant 0 : i32
    %c0_i32_0 = arith.constant 0 : i32
    %c0_i32_1 = arith.constant 0 : i32
    return %c0_i32, %c0_i32_0 : i32, i32
  }
  func.func @transform_17(%arg0: i32) -> (i32, i32, i32) {
    %c0_i32 = arith.constant 0 : i32
    %c0_i32_0 = arith.constant 0 : i32
    %c0_i32_1 = arith.constant 0 : i32
    return %arg0, %c0_i32, %c0_i32_0 : i32, i32, i32
  }
}

</mosaic_0001>

<bundles_post_ra>
// kernel: tpu_custom_call.1
= control target key start
LH: loop header
LB: loop body
LE: loop exit
PB: predicated region body
PF: predicated region fallthrough
CT: control target
= control target key end

     0   :  { %s4479_s0 = inlined_call_operand.hbm [shape: f32[4,8,8], index: 0, kind: input, shape index: {}]   ;;  %s4480_s1 = inlined_call_operand.hbm [shape: f32[4,8,128], index: 1, kind: input, shape index: {}]   ;;  %s4481_s2 = inlined_call_operand.hbm [shape: f32[4,8,128], index: 2, kind: input, shape index: {}]   ;;  %s4482_s3 = inlined_call_operand.hbm [shape: f32[8,8], index: 3, kind: input, shape index: {}]   ;;  %s4483_s4 = inlined_call_operand.hbm [shape: f32[8,8], index: 4, kind: input, shape index: {}]   ;;  %s4484_s5 = inlined_call_operand.vmem [shape: f32[8,8], index: 5, kind: input, shape index: {}]   ;;  %s4485_s6 = inlined_call_operand.hbm [shape: f32[8,8], index: 6, kind: input, shape index: {}]   ;;  %s4486_s7 = inlined_call_operand.hbm [shape: bf16[128,128], index: 7, kind: input, shape index: {}]   ;;  %s4487_s8 = inlined_call_operand.hbm [shape: bf16[128,128], index: 8, kind: input, shape index: {}]   ;;  %s4488_s9 = inlined_call_operand.hbm [shape: bf16[128,128], index: 9, kind: input, shape index: {}]   ;;  %s4489_s10 = inlined_call_operand.hbm [shape: bf16[128,128], index: 10, kind: input, shape index: {}]   ;;  %s4490_s11 = inlined_call_operand.vmem [shape: f32[1,128], index: 11, kind: input, shape index: {}]   ;;  %s4491_s12 = inlined_call_operand.vmem [shape: f32[1,128], index: 12, kind: input, shape index: {}]   ;;  %s4492_s13 = inlined_call_operand.hbm [shape: bf16[128,128], index: 13, kind: input, shape index: {}]   ;;  %s4493_s14 = inlined_call_operand.vmem [shape: f32[1,128], index: 14, kind: input, shape index: {}]   ;;  %s4494_s15 = inlined_call_operand.hbm [shape: bf16[128,128], index: 15, kind: input, shape index: {}]   ;;  %s4495_s16 = inlined_call_operand.vmem [shape: f32[1,128], index: 16, kind: input, shape index: {}]   ;;  %s4496_s17 = inlined_call_operand.hbm [shape: f32[4,8,128], index: 17, kind: output, shape index: {}]  }
   0x1   :  { %4524 = sst [smem:[#allocation37_spill]] %s4479_s0 }
   0x2   :  { %4525 = sst [smem:[#allocation38_spill]] %s4480_s1 }
   0x3   :  { %4526 = sst [smem:[#allocation39_spill]] %s4482_s3 }
   0x4   :  { %4527 = sst [smem:[#allocation40_spill]] %s4483_s4 }
   0x5   :  { %4528 = sst [smem:[#allocation41_spill]] %s4485_s6 }
   0x6   :  { %4529 = sst [smem:[#allocation42_spill]] %s4487_s8 }
   0x7   :  { %4530 = sst [smem:[#allocation43_spill]] %s4489_s10 }
   0x8   :  { %4531 = sst [smem:[#allocation44_spill]] %s4490_s11 }
   0x9   :  { %4532 = sst [smem:[#allocation45_spill]] %s4491_s12 }
   0xa   :  { %4533 = sst [smem:[#allocation46_spill]] %s4493_s14 }
   0xb   :  { %4534 = sst [smem:[#allocation47_spill]] %s4495_s16 }
   0xc   :  { %4535 = sst [smem:[#allocation48_spill]] %s4496_s17 }
   0xd   :  { %22 = vsyncpa [#allocation3], 0 }
   0xe   :  { %24 = vsyncpa [#allocation3 + $0x1], 0 }
   0xf   :  { %25 = vsyncpa [#allocation6], 0 }
  0x10   :  { %27 = vsyncpa [#allocation6 + $0x1], 0 }
  0x11   :  { %28 = vsyncpa [#allocation9], 0 }
  0x12   :  { %29 = vsyncpa [#allocation12], 0 }
  0x13   :  { %30 = vsyncpa [#allocation15], 0 }
  0x14   :  { %31 = vsyncpa [#allocation18], 0 }
  0x15   :  { %32 = vsyncpa [#allocation21], 0 }
  0x16   :  { %33 = vsyncpa [#allocation4], 0 }
  0x17   :  { %35 = vsyncpa [#allocation4 + $0x1], 0  ;;  %s3910_s24 = smov 0   ;;  %s3912_s25 = smov 0  }
  0x18   :  { %s3914_s26 = smov 0   ;;  %s3916_s27 = smov 0  }
  0x19 LB: > { %4536 = sst [smem:[#allocation31_spill]] %s3785_s24  ;;  %s3799_s28 = smov [#allocation8]   ;;  %s3797_s27 = sphi %s3916_s27, %s4589_s27   ;;  %s3793_s26 = sphi %s3914_s26, %s4593_s26   ;;  %s3789_s25 = sphi %s3912_s25, %s4592_s25   ;;  %s3785_s24 = sphi %s3910_s24, %s4591_s24  }
  0x1a   : > { %4537 = sst [smem:[#allocation32_spill]] %s3797_s27  ;;  %s457_s29 = sshll.u32 %s3799_s28, 4  ;;  %s458_s29 = int_to_ptr.vmem [resolvable:$true] %s457_s29 }
  0x1b   : > { %s3931_s0 = sadd.s32 4294967295, %s3797_s27   ;;  %p2742_p0 = scmp.ge.s32.totalorder %s3797_s27, 1 }
  0x1c   : > { %p4499_p1 = scmp.eq.s32.totalorder %s3931_s0, 0  ;;  %p444_p2 = scmp.lt.s32.totalorder %s3797_s27, 3 }
  0x1d   : > { %s3800_s18 = smov [#allocation11]   ;;  %s3801_s20 = smov [#allocation14]  }
  0x1e   : > { %p3936_p3 = pnand %p2742_p0, %p444_p2  ;;  %s482_s19 = sshll.u32 %s3800_s18, 4  ;;  %s483_s19 = int_to_ptr.vmem [resolvable:$true] %s482_s19 }
  0x1f   : > { %s505_s21 = sshll.u32 %s3801_s20, 4  ;;  %s3402_s23 = scalar_lea.vmem %s458_s29, 128  ;;  %s3949_s21 = int_to_ptr.vmem [resolvable:$true] %s505_s21 }
  0x20   : > { %s4538_s30 = scalar_select %p3936_p3, 1, 0 }
  0x21   : > { %p3192_p5 = pneg %p3936_p3  ;;  %p3403_p8 = scmp.ne.s32.totalorder %s458_s29, %s3402_s23 }
  0x22   : > { %p3410_p11 = scmp.lt.s32.totalorder %s458_s29, %s458_s29  ;;  %p3411_p12 = scmp.lt.s32.totalorder %s3402_s23, %s3402_s23 }
  0x23   : > { %p3945_p6 = pnand %p3192_p5, %p4499_p1 }
  0x24   : > { %p3412_p13 = por %p3411_p12, %p3410_p11 }
  0x25   : > { %s4539_s1 = scalar_select %p3945_p6, 1, 0 }
  0x26   : > { %p3953_p7 = pneg %p3945_p6 }
  0x28   : > { %s4540_s22 = scalar_select %p3953_p7, 1, 0 }
  0x29   : > { %p3405_p9 = pnand %p3403_p8, %p3953_p7 }
  0x2b   : > { %p3406_p10 = pneg %p3405_p9 }
  0x2d   : > { %p3413_p0 = pnand %p3412_p13, %p3406_p10 }
  0x2f   : > { %3416 = shalt.err (!%p3413_p0)
}
  0x30   : > { %s4541_s3 = sld [smem:[#allocation39_spill]]  ;;  %s3428_s20 = scalar_lea.vmem %s483_s19, 128 }
  0x31   : > { %p3429_p2 = scmp.ne.s32.totalorder %s483_s19, %s3428_s20  ;;  %p3436_p1 = scmp.lt.s32.totalorder %s483_s19, %s483_s19 }
  0x32   : > { %p3437_p8 = scmp.lt.s32.totalorder %s3428_s20, %s3428_s20 }
  0x33   : > { %p3431_p5 = pnand %p3429_p2, %p3953_p7 }
  0x34   : > { %p3438_p9 = por %p3437_p8, %p3436_p1 }
  0x35   : > { %p3432_p4 = pneg %p3431_p5 }
  0x36   : > { %3195 = dma.hbm_to_vmem [thread:$0]  (!%p3945_p6), %s4541_s3, 128, %s458_s29, [#allocation9]  }
  0x37   : > { %p3439_p3 = pnand %p3438_p9, %p3432_p4 }
  0x39   : > { %3442 = shalt.err (!%p3439_p3)
}
  0x3a   : > { %s4542_s6 = sld [smem:[#allocation41_spill]]  ;;  %s3454_s29 = scalar_lea.vmem %s3949_s21, 1024 }
  0x3b   : > { %p3455_p10 = scmp.ne.s32.totalorder %s3949_s21, %s3454_s29  ;;  %p3462_p13 = scmp.lt.s32.totalorder %s3949_s21, %s3949_s21 }
  0x3c   : > { %p3463_p1 = scmp.lt.s32.totalorder %s3454_s29, %s3454_s29 }
  0x3d   : > { %p3457_p11 = pnand %p3455_p10, %p3953_p7 }
  0x3e   : > { %p3464_p4 = por %p3463_p1, %p3462_p13 }
  0x3f   : > { %p3458_p12 = pneg %p3457_p11 }
  0x40   : > { %3201 = dma.hbm_to_vmem [thread:$0]  (!%p3945_p6), %s4542_s6, 128, %s483_s19, [#allocation12]  }
  0x41   : > { %p3465_p3 = pnand %p3464_p4, %p3458_p12 }
  0x43   : > { %3468 = shalt.err (!%p3465_p3)
}
  0x44   : > { %s4502_s28 = smov 64   ;;  %s4504_s17 = smov 4  }
  0x45   : > { %s4543_s8 = sld [smem:[#allocation42_spill]]  ;;  %s3804_s20 = smov [#allocation17]  }
  0x46   : > { %s531_s23 = sshll.u32 %s3804_s20, 4  ;;  %s532_s23 = int_to_ptr.vmem [resolvable:$true] %s531_s23 }
  0x47   : > { %s3480_s29 = scalar_lea.vmem %s532_s23, 1024  ;;  %p3488_p8 = scmp.lt.s32.totalorder %s532_s23, %s532_s23 }
  0x48   : > { %p3481_p0 = scmp.ne.s32.totalorder %s532_s23, %s3480_s29  ;;  %p3489_p9 = scmp.lt.s32.totalorder %s3480_s29, %s3480_s29 }
  0x4a   : > { %p3483_p2 = pnand %p3481_p0, %p3953_p7  ;;  %p3490_p10 = por %p3489_p9, %p3488_p8 }
  0x4b   : > { %3207 = dma.hbm_to_vmem [thread:$0]  (!%p3945_p6), %s4543_s8, 1024, %s3949_s21, [#allocation15], %s4502_s28, %s4502_s28, %s4504_s17  }
  0x4c   : > { %p3484_p5 = pneg %p3483_p2 }
  0x4e   : > { %p3491_p11 = pnand %p3490_p10, %p3484_p5 }
  0x50   : > { %3494 = shalt.err (!%p3491_p11)
}
  0x51   : > { %s4544_s10 = sld [smem:[#allocation43_spill]]  ;;  %s2741_s18 = sadd.s32 4294967294, %s3797_s27  }
  0x52   : > { %s3998_s20 = sadd.s32 1, %s3797_s27   ;;  %s48_s19 = sadd.s32 1, %s3793_s26 }
  0x53   : > { %4545 = sst [smem:[#allocation33_spill]] %s3998_s20  ;;  %s45_s29 = ssub.s32 %s3797_s27, %s3998_s20 }
  0x54   : > { %p46_p12 = scmp.eq.s32.totalorder %s45_s29, 0  ;;  %p55_p13 = scmp.ne.s32.totalorder %s3793_s26, %s3789_s25 }
  0x55   : > { %p56_p1 = scmp.eq.s32.totalorder %s3797_s27, 0  ;;  %p61_p4 = scmp.ne.s32.totalorder %s3789_s25, %s3785_s24 }
  0x56   : > { %s4009_s21 = scalar_select %p46_p12, %s3793_s26, %s48_s19  }
  0x57   : > { %3213 = dma.hbm_to_vmem [thread:$0]  (!%p3945_p6), %s4544_s10, 1024, %s532_s23, [#allocation18], %s4502_s28, %s4502_s28, %s4504_s17  }
  0x58   : > { %4546 = sst [smem:[#allocation34_spill]] %s4009_s21  ;;  %p57_p3 = por %p56_p1, %p55_p13 }
  0x59   : > { %p4547_p0 = scmp.eq.s32.totalorder %s3931_s0, 0  ;;  %p431_p5 = scmp.eq.s32.totalorder %s3931_s0, 1 }
  0x5a   : > { %p437_p8 = scmp.eq.s32.totalorder %s2741_s18, 1  ;;  %p3243_p9 = scmp.lt.s32.totalorder %s3797_s27, 2 }
  0x5b   : > { %p4013_p2 = por %p4547_p0, %p61_p4  ;;  %s4508_s23 = sand.u32 1, %s3793_s26  }
  0x5c   : > { %p4020_p10 = por %p431_p5, %p55_p13  ;;  %p4024_p11 = por %p437_p8, %p61_p4 }
  0x5d   : > { %s4548_s3 = scalar_select %p4013_p2, 1, 0 }
  0x5e   : > { %s4549_s28 = scalar_select %p4020_p10, 1, 0 }
  0x5f   : > { %s4551_s29 = scalar_select %p4024_p11, 1, 0 }
  0x60   : > { %4550 = sst [smem:[#allocation35_spill]] %s4549_s28  ;;  %s4030_s19 = sshll.u32 %s4508_s23, 4 }
  0x61   : > { %4552 = sst [smem:[#allocation36_spill]] %s4551_s29  ;;  %s4033_s17 = sshll.u32 %s3797_s27, 8 }
  0x62   : > { %p4035_p12 = pnand %p3243_p9, %p57_p3  ;;  %s604_s18 = sand.u32 1, %s3797_s27  }
  0x63   : > { %s4554_s21 = sld [smem:[#allocation38_spill]]  ;;  %s608_s23 = scalar_lea.vmem [#allocation5], %s4030_s19 }
  0x64   : > { %s615_s29 = sshll.u32 %s608_s23, 4  ;;  %s3805_s24 = smov [#allocation10]   ;;  %s4047_s29 = int_to_ptr.vmem [resolvable:$true] %s615_s29 }
  0x65   : > { %s4049_s28 = sshll.u32 %s3805_s24, 4  ;;  %s4051_s16 = scalar_lea.sflag [#allocation6], %s604_s18  ;;  %s469_s28 = int_to_ptr.vmem [resolvable:$true] %s4049_s28 }
  0x66   : > { %p4057_p1 = pneg %p4035_p12 }
  0x69   : > { %s4044_s20 = scalar_lea.hbm %s4554_s21, %s4033_s17  ;;  %s3500_s23 = scalar_lea.hbm %s4554_s21, 512 }
  0x6a   : > { %s3495_s14 = scalar_lea.hbm %s4044_s20, 256  ;;  %p3501_p0 = scmp.lt.s32.totalorder %s4044_s20, %s4554_s21 }
  0x6b   : > { %p3496_p13 = scmp.ne.s32.totalorder %s4044_s20, %s3495_s14  ;;  %p3502_p5 = scmp.lt.s32.totalorder %s3500_s23, %s3495_s14 }
  0x6d   : > { %p3498_p4 = pnand %p4057_p1, %p3496_p13  ;;  %p3503_p8 = por %p3502_p5, %p3501_p0 }
  0x6f   : > { %p3499_p3 = pneg %p3498_p4 }
  0x71   : > { %p3504_p9 = pnand %p3503_p8, %p3499_p3 }
  0x73   : > { %3507 = shalt.err (!%p3504_p9)
}
  0x74   : > { %s3508_s18 = scalar_lea.vmem %s4047_s29, 256  ;;  %s3806_s11 = smov [#allocation5]  }
  0x75   : > { %p3509_p11 = scmp.ne.s32.totalorder %s4047_s29, %s3508_s18  ;;  %s3513_s8 = sshll.u32 %s3806_s11, 4  ;;  %s3514_s8 = int_to_ptr.vmem [resolvable:$false] %s3513_s8 }
  0x76   : > { %s3515_s10 = scalar_lea.vmem %s3514_s8, 512  ;;  %p3516_p10 = scmp.lt.s32.totalorder %s4047_s29, %s3514_s8 }
  0x77   : > { %p3511_p13 = pnand %p3509_p11, %p4057_p1  ;;  %p3517_p2 = scmp.lt.s32.totalorder %s3515_s10, %s3508_s18 }
  0x79   : > { %p3512_p4 = pneg %p3511_p13  ;;  %p3518_p6 = por %p3517_p2, %p3516_p10 }
  0x7b   : > { %p3519_p7 = pnand %p3518_p6, %p3512_p4 }
  0x7d   : > { %3522 = shalt.err (!%p3519_p7)
}
  0x7e   : > { %s4520_s12 = smov 128   ;;  %s4522_s14 = smov 8  }
  0x7f   : > { %3226 = dma.hbm_to_vmem [thread:$0]  (!%p4035_p12), %s4044_s20, 256, %s4047_s29, %s4051_s16, %s4520_s12, %s4520_s12, %s4522_s14  }
  0x80   : > { %s3534_s11 = scalar_lea.vmem %s469_s28, 128  ;;  %p4556_p3 = scmp.ne.s32.totalorder %s4540_s22, 0 }
  0x81   : > { %p3535_p11 = scmp.ne.s32.totalorder %s469_s28, %s3534_s11  ;;  %p3542_p7 = scmp.lt.s32.totalorder %s469_s28, %s469_s28 }
  0x82   : > { %p3543_p10 = scmp.lt.s32.totalorder %s3534_s11, %s3534_s11 }
  0x83   : > { %p3537_p2 = pnand %p3535_p11, %p4556_p3 }
  0x84   : > { %p3544_p0 = por %p3543_p10, %p3542_p7 }
  0x85   : > { %p3538_p6 = pneg %p3537_p2 }
  0x87   : > { %p3545_p5 = pnand %p3544_p0, %p3538_p6 }
  0x89   : > { %3548 = shalt.err (!%p3545_p5)
}
  0x8a   : > { %p4557_p8 = scmp.ne.s32.totalorder %s4539_s1, 0  ;;  %s4558_s4 = sld [smem:[#allocation40_spill]] }
  0x8b   : > { %s3809_s18 = smov [#allocation13]   ;;  %s3810_s29 = smov [#allocation16]  }
  0x8c   : > { %s492_s20 = sshll.u32 %s3809_s18, 4  ;;  %s518_s8 = sshll.u32 %s3810_s29, 4  ;;  %s493_s20 = int_to_ptr.vmem [resolvable:$true] %s492_s20  ;;  %s519_s8 = int_to_ptr.vmem [resolvable:$true] %s518_s8 }
  0x8d   : > { %s3560_s10 = scalar_lea.vmem %s493_s20, 1024  ;;  %p3568_p11 = scmp.lt.s32.totalorder %s493_s20, %s493_s20 }
  0x8e   : > { %p3561_p9 = scmp.ne.s32.totalorder %s493_s20, %s3560_s10  ;;  %p3569_p2 = scmp.lt.s32.totalorder %s3560_s10, %s3560_s10 }
  0x90   : > { %3198 = dma.hbm_to_vmem [thread:$0]  (!%p4557_p8), %s4558_s4, 128, %s469_s28, [#allocation9]  }
  0x91   : > { %p3563_p13 = pnand %p3561_p9, %p4556_p3  ;;  %p3570_p6 = por %p3569_p2, %p3568_p11 }
  0x93   : > { %p3564_p4 = pneg %p3563_p13 }
  0x95   : > { %p3571_p7 = pnand %p3570_p6, %p3564_p4 }
  0x97   : > { %3574 = shalt.err (!%p3571_p7)
}
  0x98   : > { %s4559_s11 = smov 4   ;;  %s4560_s23 = smov 64  }
  0x99   : > { %3204 = dma.hbm_to_vmem [thread:$0]  (!%p4557_p8), %s4486_s7, 1024, %s493_s20, [#allocation12], %s4560_s23, %s4560_s23, %s4559_s11  }
  0x9a   : > { %s3586_s18 = scalar_lea.vmem %s519_s8, 1024  ;;  %p3594_p9 = scmp.lt.s32.totalorder %s519_s8, %s519_s8 }
  0x9b   : > { %p3587_p10 = scmp.ne.s32.totalorder %s519_s8, %s3586_s18  ;;  %p3595_p13 = scmp.lt.s32.totalorder %s3586_s18, %s3586_s18 }
  0x9d   : > { %p3589_p0 = pnand %p3587_p10, %p4556_p3  ;;  %p3596_p4 = por %p3595_p13, %p3594_p9 }
  0x9f   : > { %p3590_p5 = pneg %p3589_p0 }
  0xa1   : > { %p3597_p11 = pnand %p3596_p4, %p3590_p5 }
  0xa3   : > { %3600 = shalt.err (!%p3597_p11)
}
  0xa4   : > { %3210 = dma.hbm_to_vmem [thread:$0]  (!%p4557_p8), %s4488_s9, 1024, %s519_s8, [#allocation15], %s4560_s23, %s4560_s23, %s4559_s11  }
  0xa5   : > { %s3811_s20 = smov [#allocation19]   ;;  %s3812_s24 = smov [#allocation20]  }
  0xa6   : > { %s550_s28 = sshll.u32 %s3811_s20, 4  ;;  %s566_s12 = sshll.u32 %s3812_s24, 4  ;;  %s551_s28 = int_to_ptr.vmem [resolvable:$true] %s550_s28  ;;  %s567_s12 = int_to_ptr.vmem [resolvable:$true] %s566_s12 }
  0xa7   : > { %s3612_s14 = scalar_lea.vmem %s551_s28, 1024  ;;  %p3620_p10 = scmp.lt.s32.totalorder %s551_s28, %s551_s28 }
  0xa8   : > { %p3613_p2 = scmp.ne.s32.totalorder %s551_s28, %s3612_s14  ;;  %p3621_p0 = scmp.lt.s32.totalorder %s3612_s14, %s3612_s14 }
  0xaa   : > { %p3615_p6 = pnand %p3613_p2, %p4556_p3  ;;  %p3622_p5 = por %p3621_p0, %p3620_p10 }
  0xac   : > { %p3616_p7 = pneg %p3615_p6 }
  0xae   : > { %p3623_p9 = pnand %p3622_p5, %p3616_p7 }
  0xb0   : > { %3626 = shalt.err (!%p3623_p9)
}
  0xb1   : > { %3216 = dma.hbm_to_vmem [thread:$0]  (!%p4557_p8), %s4492_s13, 1024, %s551_s28, [#allocation18], %s4560_s23, %s4560_s23, %s4559_s11  }
  0xb2   : > { %s3638_s29 = scalar_lea.vmem %s567_s12, 1024  ;;  %p3646_p2 = scmp.lt.s32.totalorder %s567_s12, %s567_s12 }
  0xb3   : > { %p3639_p13 = scmp.ne.s32.totalorder %s567_s12, %s3638_s29  ;;  %p3647_p6 = scmp.lt.s32.totalorder %s3638_s29, %s3638_s29 }
  0xb5   : > { %p3641_p4 = pnand %p3639_p13, %p4556_p3  ;;  %p3648_p7 = por %p3647_p6, %p3646_p2 }
  0xb7   : > { %p3642_p11 = pneg %p3641_p4 }
  0xb9   : > { %p3649_p10 = pnand %p3648_p7, %p3642_p11 }
  0xbb   : > { %3652 = shalt.err (!%p3649_p10)
}
  0xbc   : > { %3219 = dma.hbm_to_vmem [thread:$0]  (!%p4557_p8), %s4494_s15, 1024, %s567_s12, [#allocation21], %s4560_s23, %s4560_s23, %s4559_s11  }
  0xbd   : > { %s4561_s28 = sld [smem:[#allocation37_spill]]  ;;  %s587_s1 = scalar_lea.vmem [#allocation2], %s4030_s19 }
  0xbe   : > { %s594_s8 = sshll.u32 %s587_s1, 4  ;;  %s4144_s14 = scalar_lea.hbm %s4481_s2, %s4033_s17  ;;  %s4138_s8 = int_to_ptr.vmem [resolvable:$true] %s594_s8 }
  0xbf   : > { %s4562_s10 = sand.u32 1, %s3793_s26  }
  0xc0   : > { %s584_s4 = scalar_lea.sflag [#allocation3], %s4562_s10 }
  0xc3   : > { %s4135_s24 = scalar_lea.hbm %s4561_s28, %s4033_s17  ;;  %s3658_s22 = scalar_lea.hbm %s4561_s28, 512 }
  0xc4   : > { %s3653_s12 = scalar_lea.hbm %s4135_s24, 256  ;;  %p3659_p5 = scmp.lt.s32.totalorder %s4135_s24, %s4561_s28 }
  0xc5   : > { %p3654_p3 = scmp.ne.s32.totalorder %s4135_s24, %s3653_s12  ;;  %p3660_p9 = scmp.lt.s32.totalorder %s3658_s22, %s3653_s12 }
  0xc7   : > { %p3656_p8 = pnand %p3654_p3, %p4057_p1  ;;  %p3661_p13 = por %p3660_p9, %p3659_p5 }
  0xc9   : > { %p3657_p0 = pneg %p3656_p8 }
  0xcb   : > { %p3662_p4 = pnand %p3661_p13, %p3657_p0 }
  0xcd   : > { %3665 = shalt.err (!%p3662_p4)
}
  0xce   : > { %s3666_s17 = scalar_lea.vmem %s4138_s8, 256  ;;  %s3813_s18 = smov [#allocation2]  }
  0xcf   : > { %p3667_p11 = scmp.ne.s32.totalorder %s4138_s8, %s3666_s17  ;;  %s3671_s29 = sshll.u32 %s3813_s18, 4  ;;  %s3672_s29 = int_to_ptr.vmem [resolvable:$false] %s3671_s29 }
  0xd0   : > { %s3673_s10 = scalar_lea.vmem %s3672_s29, 512  ;;  %p3674_p7 = scmp.lt.s32.totalorder %s4138_s8, %s3672_s29 }
  0xd1   : > { %p3669_p2 = pnand %p3667_p11, %p4057_p1  ;;  %p3675_p10 = scmp.lt.s32.totalorder %s3673_s10, %s3666_s17 }
  0xd3   : > { %p3670_p6 = pneg %p3669_p2  ;;  %p3676_p3 = por %p3675_p10, %p3674_p7 }
  0xd5   : > { %p3677_p8 = pnand %p3676_p3, %p3670_p6 }
  0xd7   : > { %3680 = shalt.err (!%p3677_p8)
}
  0xd8   : > { %s4563_s12 = smov 8   ;;  %s4564_s11 = smov 128  }
  0xd9   : > { %3223 = dma.hbm_to_vmem [thread:$0]  (!%p4035_p12), %s4135_s24, 256, %s4138_s8, %s584_s4, %s4564_s11, %s4564_s11, %s4563_s12  }
  0xda   : > { %s629_s23 = scalar_lea.vmem [#allocation7], %s4030_s19  ;;  %s3681_s20 = scalar_lea.hbm %s4144_s14, 256 }
  0xdb   : > { %s636_s22 = sshll.u32 %s629_s23, 4  ;;  %p3682_p0 = scmp.ne.s32.totalorder %s4144_s14, %s3681_s20  ;;  %s637_s22 = int_to_ptr.vmem [resolvable:$true] %s636_s22 }
  0xdc   : > { %s3686_s18 = scalar_lea.hbm %s4481_s2, 512  ;;  %p3687_p13 = scmp.lt.s32.totalorder %s4144_s14, %s4481_s2 }
  0xdd   : > { %p3684_p5 = pnand %p3682_p0, %p4057_p1  ;;  %p3688_p4 = scmp.lt.s32.totalorder %s3686_s18, %s3681_s20 }
  0xdf   : > { %p3685_p9 = pneg %p3684_p5  ;;  %p3689_p11 = por %p3688_p4, %p3687_p13 }
  0xe1   : > { %p3690_p2 = pnand %p3689_p11, %p3685_p9 }
  0xe3   : > { %3693 = shalt.err (!%p3690_p2)
}
  0xe4   : > { %s3694_s4 = scalar_lea.vmem %s637_s22, 256  ;;  %s3814_s19 = smov [#allocation7]  }
  0xe5   : > { %p3695_p6 = scmp.ne.s32.totalorder %s637_s22, %s3694_s4  ;;  %s3699_s24 = sshll.u32 %s3814_s19, 4  ;;  %s3700_s24 = int_to_ptr.vmem [resolvable:$false] %s3699_s24 }
  0xe6   : > { %s3701_s8 = scalar_lea.vmem %s3700_s24, 512  ;;  %p3702_p3 = scmp.lt.s32.totalorder %s637_s22, %s3700_s24 }
  0xe7   : > { %p3697_p7 = pnand %p3695_p6, %p4057_p1  ;;  %p3703_p8 = scmp.lt.s32.totalorder %s3701_s8, %s3694_s4 }
  0xe9   : > { %p3698_p10 = pneg %p3697_p7  ;;  %p3704_p0 = por %p3703_p8, %p3702_p3 }
  0xeb   : > { %p3705_p5 = pnand %p3704_p0, %p3698_p10 }
  0xed   : > { %3708 = shalt.err (!%p3705_p5)
}
  0xee   : > { %3229 = dma.hbm_to_vmem [thread:$0]  (!%p4035_p12), %s4144_s14, 256, %s637_s22, %s4051_s16, %s4564_s11, %s4564_s11, %s4563_s12  }
  0xef   : > { %p4565_p1 = scmp.ne.s32.totalorder %s4538_s30, 0 }
  0xf0   : > { %s4195_s27 = sand.u32 (!%p4565_p1), 1, %s3789_s25   ;;  %p4566_p9 = scmp.ne.s32.totalorder (!%p4565_p1), %s4548_s3, 0 }
  0xf1   : > { %648 = sbr.rel (%p4565_p1) target bundleno = 2477 (0x9ad), region = 88  ;;  %s4198_s23 = sshll.u32 (!%p4565_p1), %s4195_s27, 4 }
  0xf2   : > { %s651_s20 = scalar_lea.sflag (!%p4565_p1), [#allocation3], %s4195_s27  ;;  %s654_s6 = scalar_lea.vmem (!%p4565_p1), [#allocation2], %s4198_s23 }
  0xf6   : > { %3752 = dma.done.wait (%p4566_p9), %s651_s20, 256  }
  0xf7   : > { %3754 = vsyncadd (%p4566_p9), %s651_s20, 4294967040  ;;  %s659_s16 = sand.u32 1, %s3931_s0   ;;  %s663_s14 = scalar_lea.vmem [#allocation5], %s4198_s23 }
  0xf8   : > { %s660_s30 = scalar_lea.sflag [#allocation6], %s659_s16 }
  0xf9   : > { %3756 = dma.done.wait (%p4566_p9), %s660_s30, 512  }
  0xfa   : > { %3758 = vsyncadd (%p4566_p9), %s660_s30, 4294966784  ;;  %s672_s12 = scalar_lea.vmem [#allocation7], %s4198_s23  ;;  %p4567_p12 = scmp.eq.s32.totalorder %s3931_s0, 0 }
  0xfc   : > { %3760 = dma.done.wait (%p4567_p12), [#allocation9], 256   ;;  %p4568_p13 = pmov %p4567_p12 }
  0xfd   : > { %p4569_p4 = pmov %p4567_p12 }
  0xfe   : > { %3762 = vsyncadd (%p4568_p13), [#allocation9], 4294967040 }
  0xff   : > { %3764 = dma.done.wait (%p4569_p4), [#allocation12], 1152   ;;  %p4570_p11 = pmov %p4569_p4 }
 0x100   : > { %p4571_p2 = pmov %p4569_p4 }
 0x101   : > { %3766 = vsyncadd (%p4570_p11), [#allocation12], 4294966144 }
 0x102   : > { %3768 = dma.done.wait (%p4571_p2), [#allocation15], 2048   ;;  %p4572_p6 = pmov %p4571_p2 }
 0x103   : > { %p4573_p7 = pmov %p4571_p2 }
 0x104   : > { %3770 = vsyncadd (%p4572_p6), [#allocation15], 4294965248 }
 0x105   : > { %3772 = dma.done.wait (%p4573_p7), [#allocation18], 2048   ;;  %p4574_p10 = pmov %p4571_p2 }
 0x106   : > { %p4575_p3 = pmov %p4571_p2 }
 0x107   : > { %3774 = vsyncadd (%p4574_p10), [#allocation18], 4294965248 }
 0x108   : > { %3776 = dma.done.wait (%p4575_p3), [#allocation21], 1024   ;;  %p4576_p8 = pmov %p4571_p2 }
 0x109   : > { %vm776_vm0 = vcmask 64512   ;;  %v774_v0 = vld [vmem:[%s654_s6] sm:$0xff]  ;;  %v775_v1 = vld [vmem:[%s654_s6 + $0x8] sm:$0xff]  ;;  %v3815_v4 = vmov 0.0   ;;  %vm3816_vm1 = vmmov 0   ;;  %v791_v5 = vlaneseq  ;;  %s4577_s17 = sld [smem:[#allocation44_spill]] }
 0x10a   : > { %3778 = vsyncadd (%p4576_p8), [#allocation21], 4294966272  ;;  %v777_v2 = vsel %vm776_vm0, %v774_v0, 0.0  ;;  %v780_v3 = vsel %vm776_vm0, %v775_v1, 0.0  ;;  %2940 = vmatprep.subr.mxu0 %v3815_v4  ;;  %2945 = vmatprep.subr.mxu1 %v3815_v4  ;;  %v810_v19 = vld [vmem:[#allocation8] sm:$0xff]  ;;  %vm1151_vm3 = vcmask 1043456  }
 0x10b   : > { %778 = vadd.xlane.f32.xlu0 %v777_v2  ;;  %2942 = vmatprep.mubr.msk.f32.mxu0 %vm3816_vm1, %v3815_v4  ;;  %v792_v9 = vshrl.u32 %v791_v5, 7  ;;  %v794_v10 = vand.u32 127, %v791_v5  ;;  %v811_v25 = vld [vmem:[%s4484_s5] sm:$0xff]  ;;  %v805_v62 = vld [vmem:[%s663_s14 + $0x8] sm:$0xff]  ;;  %s4578_s10 = sld [smem:[#allocation45_spill]]  ;;  %s768_s30 = scalar_lea.vmem [#allocation22], %s4198_s23 }
 0x10c   : > { %2947 = vmatprep.mubr.msk.f32.mxu1 %vm3816_vm1, %v3815_v4  ;;  %v804_v59 = vld [vmem:[%s663_s14] sm:$0xff]  ;;  %v1147_v63 = vpack.c.bf16 %v805_v62, %v805_v62  ;;  %s4579_s24 = sld [smem:[#allocation46_spill]]  ;;  %s2539_s14 = sshll.u32 %s768_s30, 4  ;;  %s4431_s14 = int_to_ptr.vmem [resolvable:$true] %s2539_s14 }
 0x10d   : > { %vm795_vm2 = vcmp.eq.s32.totalorder %v792_v9, %v794_v10  ;;  %v1146_v60 = vpack.c.bf16 %v804_v59, %v804_v59  ;;  %v807_v9 = vld [vmem:[%s672_s12 + $0x8] sm:$0xff]  ;;  %s4580_s6 = sld [smem:[#allocation47_spill]]  ;;  %s2526_s23 = scalar_lea.sflag [#allocation4], %s4195_s27 }
 0x10e   : > { %v2776_v14 = vsel %vm795_vm2, 1.0, %v3815_v4  ;;  %s4581_s16 = sld [smem:[#allocation35_spill]] }
 0x10f   : > { %781 = vadd.xlane.f32.xlu0 %v780_v3  ;;  %v798_v15 = vadd.f32 %v2776_v14, %v774_v0  ;;  %v799_v20 = vadd.f32 %v2776_v14, %v775_v1  ;;  %v1153_v61 = vsel %vm1151_vm3, %v1146_v60, 0  ;;  %s4582_s22 = sld [smem:[#allocation48_spill]] }
 0x114   : > { %p4583_p5 = scmp.ne.s32.totalorder %s4581_s16, 0 }
 0x194   : > { %v779_v6 = vpop.xlane.xlu0 %778 }
 0x195   : > { %v783_v7 = vadd.f32 1.0, %v779_v6  ;;  %v787_v8 = vadd.f32 1e-12, %v779_v6  ;;  %v806_v6 = vld [vmem:[%s672_s12] sm:$0xff]  ;;  %s2853_s12 = sshll.u32 %s3931_s0, 8  ;;  %s3817_s0 = smov [#allocation22]  }
 0x196   : > { %s4436_s1 = scalar_lea.hbm %s4582_s22, %s2853_s12  ;;  %s3713_s18 = sshll.u32 %s3817_s0, 4  ;;  %s3714_s18 = int_to_ptr.vmem [resolvable:$false] %s3713_s18 }
 0x197   : > { %3351 = vrcp.f32 %v783_v7  ;;  %v808_v7 = vpack.c.bf16 %v806_v6, %v806_v6  ;;  %s3715_s29 = scalar_lea.vmem %s3714_s18, 512  ;;  %p3716_p12 = scmp.lt.s32.totalorder %s4431_s14, %s3714_s18 }
 0x198   : > { %3353 = vrcp.f32 %v787_v8  ;;  %v782_v11 = vpop.xlane.xlu0 %781 }
 0x199   : > { %v784_v12 = vadd.f32 1.0, %v782_v11  ;;  %v788_v13 = vadd.f32 1e-12, %v782_v11 }
 0x19b   : > { %3355 = vrcp.f32 %v784_v12  ;;  %v4294_v12 = vsel %vm1151_vm3, %v808_v7, 0 }
 0x19c   : > { %3357 = vrcp.f32 %v788_v13  ;;  %v809_v13 = vpack.c.bf16 %v807_v9, %v807_v9 }
 0x1a4   : > { %v3352_v16 = vpop.eup %3351 }
 0x1a5   : > { %v3354_v17 = vpop.eup %3353  ;;  %v4242_v18 = vmul.f32 %v3352_v16, %v798_v15 }
 0x1a6   : > { %v4245_v21 = vmul.f32 %v3354_v17, %v774_v0  ;;  %v1199_v0 = vsel %vm1151_vm3, %v1147_v63, 0 }
 0x1a7   : > { %2941 = vmatpush3.msra.mxu0 %v4242_v18 }
 0x1a8   : > { %v3356_v22 = vpop.eup %3355  ;;  %2943 = vmatmul.mubr.msk.f32.vlgmr.msra.gmra.mxu0 %vm776_vm0, %v810_v19  ;;  %2950 = vmatprep.subr.mxu0 %v3815_v4 }
 0x1a9   : > { %v3358_v23 = vpop.eup %3357  ;;  %2951 = vmatpush3.msra.mxu0 %v4245_v21  ;;  %v4250_v24 = vmul.f32 %v3356_v22, %v799_v20  ;;  %2952 = vmatprep.mubr.msk.f32.mxu0 %vm3816_vm1, %v3815_v4 }
 0x1aa   : > { %2960 = vmatprep.subr.bf16.mxu0 %v3815_v4  ;;  %v4261_v26 = vmul.f32 %v3358_v23, %v775_v1  ;;  %v3305_v23 = vld [vmem:[#allocation16 + $0x38] sm:$0xff]  }
 0x1ab   : > { %2946 = vmatpush3.msra.mxu1 %v4250_v24 }
 0x1ac   : > { %2948 = vmatmul.mubr.msk.f32.vlgmr.msra.gmra.mxu1 %vm776_vm0, %v810_v19  ;;  %2953 = vmatmul.mubr.msk.f32.vlgmr.msra.gmra.mxu0 %vm776_vm0, %v811_v25  ;;  %v4301_v19 = vsel %vm1151_vm3, %v809_v13, 0 }
 0x1ad   : > { %2955 = vmatprep.subr.mxu1 %v3815_v4  ;;  %2957 = vmatprep.mubr.msk.f32.mxu1 %vm3816_vm1, %v3815_v4 }
 0x1ae   : > { %2956 = vmatpush3.msra.mxu1 %v4261_v26  ;;  %2962 = vmatprep.mubr.msk.bf16.mxu0 %vm3816_vm1, %v3815_v4 }
 0x1af   : > { %2966 = vmatprep.subr.bf16.mxu1 %v3815_v4  ;;  %2961 = vmatpush3.bf16.msra.mxu0 %v1153_v61  ;;  %v1557_v61 = vld [vmem:[#allocation11] sm:$0xff] }
 0x1b0   : > { %2958 = vmatmul.mubr.msk.f32.vlgmr.msra.gmra.mxu1 %vm776_vm0, %v811_v25  ;;  %2972 = vmatprep.subr.bf16.mxu0 %v3815_v4 }
 0x1b1   : > { %2968 = vmatprep.mubr.msk.bf16.mxu1 %vm3816_vm1, %v3815_v4  ;;  %2967 = vmatpush3.bf16.msra.mxu1 %v1199_v0 }
 0x1b2   : > { %2978 = vmatprep.subr.bf16.mxu1 %v3815_v4 }
 0x268   : > { %v881_v27 = vpop.f32.mrf.mxu0 }
 0x269   : > { %v1098_v28 = vsel %vm776_vm0, %v881_v27, -inf }
 0x26a   : > { %1099 = vmax.xlane.f32.xlu1 %v1098_v28  ;;  %v2944_v29 = vpop.f32.mrf.mxu0  ;;  %v3303_v28 = vld [vmem:[#allocation13 + $0x38] sm:$0xff]  }
 0x26b   : > { %v3307_v29 = vld [vmem:[#allocation16 + $0x30] sm:$0xff]  }
 0x26c   : > { %v951_v30 = vpop.f32.mrf.mxu1  ;;  %v1024_v31 = vpop.f32.mrf.mxu0 }
 0x26d   : > { %v1122_v32 = vsel %vm776_vm0, %v1024_v31, -inf  ;;  %v1101_v33 = vsel %vm776_vm0, %v951_v30, -inf }
 0x26e   : > { %1123 = vmax.xlane.f32.xlu0 %v1122_v32  ;;  %1102 = vmax.xlane.f32.xlu1 %v1101_v33  ;;  %v2949_v34 = vpop.f32.mrf.mxu1  ;;  %v2954_v35 = vpop.f32.mrf.mxu0  ;;  %v3309_v32 = vld [vmem:[#allocation16 + $0x28] sm:$0xff]  }
 0x26f   : > { %v3306_v33 = vld [vmem:[#allocation13 + $0x28] sm:$0xff]   ;;  %v3311_v34 = vld [vmem:[#allocation16 + $0x20] sm:$0xff]  }
 0x270   : > { %v1094_v36 = vpop.f32.mrf.mxu1  ;;  %v3308_v35 = vld [vmem:[#allocation13 + $0x20] sm:$0xff]  }
 0x271   : > { %v1125_v37 = vsel %vm776_vm0, %v1094_v36, -inf }
 0x272   : > { %1126 = vmax.xlane.f32.xlu1 %v1125_v37  ;;  %v2959_v38 = vpop.f32.mrf.mxu1  ;;  %v3310_v37 = vld [vmem:[#allocation13 + $0x18] sm:$0xff]  }
 0x273   : > { %v3312_v38 = vld [vmem:[#allocation13 + $0x10] sm:$0xff]  }
 0x2f3   : > { %v1100_v39 = vpop.xlane.xlu1 %1099 }
 0x2f4   : > { %v1104_v40 = vsub.f32 %v881_v27, %v1100_v39  ;;  %v3314_v39 = vld [vmem:[#allocation13 + $0x8] sm:$0xff]  }
 0x2f6   : > { %v1106_v41 = vmul.f32 1.442695, %v1104_v40  ;;  %v3315_v40 = vld [vmem:[#allocation16 + $0x10] sm:$0xff]  }
 0x2f7   : > { %v1103_v42 = vpop.xlane.xlu1 %1102  ;;  %v1124_v43 = vpop.xlane.xlu0 %1123 }
 0x2f8   : > { %3359 = vpow2.f32 %v1106_v41  ;;  %v1105_v44 = vsub.f32 %v951_v30, %v1103_v42  ;;  %v1128_v45 = vsub.f32 %v1024_v31, %v1124_v43  ;;  %v3304_v31 = vld [vmem:[#allocation13 + $0x30] sm:$0xff]   ;;  %v3316_v41 = vld [vmem:[#allocation13] sm:$0xff]   ;;  %v3317_v42 = vld [vmem:[#allocation16 + $0x8] sm:$0xff]  }
 0x2f9   : > { %v3318_v43 = vld [vmem:[#allocation16] sm:$0xff]  }
 0x2fa   : > { %v1108_v46 = vmul.f32 1.442695, %v1105_v44  ;;  %v1130_v47 = vmul.f32 1.442695, %v1128_v45 }
 0x2fb   : > { %v1127_v48 = vpop.xlane.xlu1 %1126 }
 0x2fc   : > { %3361 = vpow2.f32 %v1108_v46  ;;  %v1129_v49 = vsub.f32 %v1094_v36, %v1127_v48  ;;  %v3313_v36 = vld [vmem:[#allocation16 + $0x18] sm:$0xff]  }
 0x2fd   : > { %3363 = vpow2.f32 %v1130_v47 }
 0x2fe   : > { %v1132_v50 = vmul.f32 1.442695, %v1129_v49 }
 0x300   : > { %3365 = vpow2.f32 %v1132_v50 }
 0x305   : > { %v3360_v51 = vpop.eup %3359 }
 0x306   : > { %v1110_v52 = vsel %vm776_vm0, %v3360_v51, 0.0 }
 0x307   : > { %1111 = vadd.xlane.f32.xlu0 %v1110_v52 }
 0x309   : > { %v3362_v53 = vpop.eup %3361 }
 0x30a   : > { %v3364_v54 = vpop.eup %3363  ;;  %v1113_v55 = vsel %vm776_vm0, %v3362_v53, 0.0 }
 0x30b   : > { %1114 = vadd.xlane.f32.xlu1 %v1113_v55  ;;  %v1134_v56 = vsel %vm776_vm0, %v3364_v54, 0.0 }
 0x30c   : > { %1135 = vadd.xlane.f32.xlu0 %v1134_v56 }
 0x30d   : > { %v3366_v57 = vpop.eup %3365 }
 0x30e   : > { %v1137_v58 = vsel %vm776_vm0, %v3366_v57, 0.0 }
 0x30f   : > { %1138 = vadd.xlane.f32.xlu1 %v1137_v58 }
 0x390   : > { %v1112_v1 = vpop.xlane.xlu0 %1111 }
 0x391   : > { %3367 = vrcp.f32 %v1112_v1 }
 0x394   : > { %v1115_v2 = vpop.xlane.xlu1 %1114 }
 0x395   : > { %3369 = vrcp.f32 %v1115_v2  ;;  %v1136_v3 = vpop.xlane.xlu0 %1135  ;;  %v2801_v2 = vld [vmem:[%s4577_s17] ss:$0 sm:$0xff]  ;;  %s3709_s17 = scalar_lea.vmem %s4431_s14, 256 }
 0x396   : > { %3371 = vrcp.f32 %v1136_v3  ;;  %p3710_p0 = scmp.ne.s32.totalorder %s4431_s14, %s3709_s17  ;;  %p3717_p13 = scmp.lt.s32.totalorder %s3715_s29, %s3709_s17 }
 0x398   : > { %v1139_v5 = vpop.xlane.xlu1 %1138  ;;  %p3711_p1 = pnand %p3710_p0, %p4583_p5  ;;  %p3718_p4 = por %p3717_p13, %p3716_p12 }
 0x399   : > { %3373 = vrcp.f32 %v1139_v5 }
 0x39a   : > { %p3712_p9 = pneg %p3711_p1 }
 0x39c   : > { %p3719_p11 = pnand %p3718_p4, %p3712_p9 }
 0x39e   : > { %v3368_v8 = vpop.eup %3367 }
 0x39f   : > { %v1118_v10 = vmul.f32 %v3368_v8, %v3360_v51 }
 0x3a1   : > { %v1120_v11 = vpack.c.bf16 %v1118_v10, %v1118_v10 }
 0x3a2   : > { %v3370_v14 = vpop.eup %3369 }
 0x3a3   : > { %v3372_v15 = vpop.eup %3371  ;;  %2963 = vmatmul.mubr.msk.bf16.vlgmr.msra.gmra.mxu0 %vm776_vm0, %v1120_v11  ;;  %v1119_v16 = vmul.f32 %v3370_v14, %v3362_v53 }
 0x3a4   : > { %2973 = vmatpush3.bf16.msra.mxu0 %v4294_v12  ;;  %2974 = vmatprep.mubr.msk.bf16.mxu0 %vm3816_vm1, %v3815_v4  ;;  %v1142_v20 = vmul.f32 %v3372_v15, %v3364_v54 }
 0x3a5   : > { %v1121_v17 = vpack.c.bf16 %v1119_v16, %v1119_v16  ;;  %2984 = vmatprep.subr.bf16.mxu0 %v3815_v4 }
 0x3a6   : > { %v3374_v22 = vpop.eup %3373  ;;  %v1144_v25 = vpack.c.bf16 %v1142_v20, %v1142_v20 }
 0x3a7   : > { %2969 = vmatmul.mubr.msk.bf16.vlgmr.msra.gmra.mxu1 %vm776_vm0, %v1121_v17  ;;  %v1143_v27 = vmul.f32 %v3374_v22, %v3366_v57  ;;  %v1556_v57 = vld [vmem:[#allocation10] sm:$0xff] }
 0x3a8   : > { %2979 = vmatpush3.bf16.msra.mxu1 %v4301_v19  ;;  %2980 = vmatprep.mubr.msk.bf16.mxu1 %vm3816_vm1, %v3815_v4 }
 0x3a9   : > { %3004 = vmatprep.subr.bf16.mxu1 %v3815_v4  ;;  %v1145_v30 = vpack.c.bf16 %v1143_v27, %v1143_v27 }
 0x3ab   : > { %2975 = vmatmul.mubr.msk.bf16.vlgmr.msra.gmra.mxu0 %vm776_vm0, %v1144_v25 }
 0x3ac   : > { %2985 = vmatpush3.bf16.msra.mxu0 %v3305_v23  ;;  %3000 = vmatprep.mubr.msk.bf16.mxu0 %vm3816_vm1, %v3815_v4 }
 0x3ad   : > { %2986 = vmatprep.subr.bf16.mxu0 %v3815_v4 }
 0x3af   : > { %2981 = vmatmul.mubr.msk.bf16.vlgmr.msra.gmra.mxu1 %vm776_vm0, %v1145_v30 }
 0x3b0   : > { %3005 = vmatpush3.bf16.msra.mxu1 %v3303_v28  ;;  %2987 = vmatpush3.bf16.msra.mxu0 %v3307_v29 }
 0x3b1   : > { %3006 = vmatprep.subr.bf16.mxu1 %v3815_v4  ;;  %2988 = vmatprep.subr.bf16.mxu0 %v3815_v4 }
 0x3b2   : > { %3020 = vmatprep.mubr.msk.bf16.mxu1 %vm3816_vm1, %v3815_v4 }
 0x3b4   : > { %3007 = vmatpush3.bf16.msra.mxu1 %v3304_v31  ;;  %2989 = vmatpush3.bf16.msra.mxu0 %v3309_v32 }
 0x3b5   : > { %3008 = vmatprep.subr.bf16.mxu1 %v3815_v4  ;;  %2990 = vmatprep.subr.bf16.mxu0 %v3815_v4 }
 0x3b8   : > { %3009 = vmatpush3.bf16.msra.mxu1 %v3306_v33  ;;  %2991 = vmatpush3.bf16.msra.mxu0 %v3311_v34 }
 0x3b9   : > { %3010 = vmatprep.subr.bf16.mxu1 %v3815_v4  ;;  %2992 = vmatprep.subr.bf16.mxu0 %v3815_v4 }
 0x3bc   : > { %3011 = vmatpush3.bf16.msra.mxu1 %v3308_v35  ;;  %2993 = vmatpush3.bf16.msra.mxu0 %v3313_v36 }
 0x3bd   : > { %3012 = vmatprep.subr.bf16.mxu1 %v3815_v4  ;;  %2994 = vmatprep.subr.bf16.mxu0 %v3815_v4 }
 0x3c0   : > { %3013 = vmatpush3.bf16.msra.mxu1 %v3310_v37  ;;  %2995 = vmatpush3.bf16.msra.mxu0 %v3315_v40 }
 0x3c1   : > { %3014 = vmatprep.subr.bf16.mxu1 %v3815_v4  ;;  %2996 = vmatprep.subr.bf16.mxu0 %v3815_v4 }
 0x3c4   : > { %3015 = vmatpush3.bf16.msra.mxu1 %v3312_v38  ;;  %2997 = vmatpush3.bf16.msra.mxu0 %v3317_v42 }
 0x3c5   : > { %3016 = vmatprep.subr.bf16.mxu1 %v3815_v4  ;;  %2998 = vmatprep.subr.bf16.mxu0 %v3815_v4 }
 0x3c8   : > { %3017 = vmatpush3.bf16.msra.mxu1 %v3314_v39  ;;  %2999 = vmatpush3.bf16.msra.mxu0 %v3318_v43 }
 0x3c9   : > { %3018 = vmatprep.subr.bf16.mxu1 %v3815_v4  ;;  %3024 = vmatprep.subr.mxu0 %v3815_v4 }
 0x3cc   : > { %3019 = vmatpush3.bf16.msra.mxu1 %v3316_v41 }
 0x3cd   : > { %3029 = vmatprep.subr.mxu1 %v3815_v4 }
 0x463   : > { %v1189_v44 = vpop.f32.mrf.mxu0 }
 0x465   : > { %v2964_v45 = vpop.f32.mrf.mxu0 }
 0x467   : > { %v1192_v46 = vpop.f32.mrf.mxu0  ;;  %v1235_v47 = vpop.f32.mrf.mxu1 }
 0x468   : > { %v1333_v48 = vpack.c.bf16 %v1235_v47, %v1189_v44 }
 0x469   : > { %v2965_v49 = vpop.f32.mrf.mxu0  ;;  %v2970_v50 = vpop.f32.mrf.mxu1 }
 0x46a   : > { %3021 = vmatmul.mubr.bf16.vlgmr.msra.gmra.mxu1 %v1333_v48 }
 0x46b   : > { %3030 = vmatpush3.msra.mxu1 %v4250_v24  ;;  %v1238_v51 = vpop.f32.mrf.mxu1  ;;  %v1281_v52 = vpop.f32.mrf.mxu0  ;;  %3031 = vmatprep.mubr.msk.f32.mxu1 %vm3816_vm1, %v3815_v4 }
 0x46c   : > { %3039 = vmatprep.subr.mxu1 %v3815_v4 }
 0x46d   : > { %v2971_v53 = vpop.f32.mrf.mxu1  ;;  %v2976_v54 = vpop.f32.mrf.mxu0 }
 0x46f   : > { %v1284_v55 = vpop.f32.mrf.mxu0  ;;  %v1327_v56 = vpop.f32.mrf.mxu1 }
 0x470   : > { %v1350_v58 = vpack.c.bf16 %v1327_v56, %v1281_v52 }
 0x471   : > { %v2977_v59 = vpop.f32.mrf.mxu0  ;;  %v2982_v60 = vpop.f32.mrf.mxu1 }
 0x472   : > { %3001 = vmatmul.mubr.bf16.vlgmr.msra.gmra.mxu0 %v1350_v58  ;;  %3032 = vmatmul.mubr.msk.f32.vlgmr.msra.gmra.mxu1 %vm776_vm0, %v1556_v57 }
 0x473   : > { %3025 = vmatpush3.msra.mxu0 %v4242_v18  ;;  %3040 = vmatpush3.msra.mxu1 %v4261_v26  ;;  %v1330_v24 = vpop.f32.mrf.mxu1 }
 0x474   : > { %3041 = vmatprep.mubr.msk.f32.mxu1 %vm3816_vm1, %v3815_v4  ;;  %3026 = vmatprep.mubr.msk.f32.mxu0 %vm3816_vm1, %v3815_v4 }
 0x475   : > { %v2983_v62 = vpop.f32.mrf.mxu1  ;;  %3034 = vmatprep.subr.mxu0 %v3815_v4  ;;  %3050 = vmatprep.subr.bf16.mxu1 %v3815_v4 }
 0x476   : > { %3042 = vmatmul.mubr.msk.f32.vlgmr.msra.gmra.mxu1 %vm776_vm0, %v1557_v61 }
 0x477   : > { %3052 = vmatprep.mubr.msk.bf16.mxu1 %vm3816_vm1, %v3815_v4 }
 0x47a   : > { %3027 = vmatmul.mubr.msk.f32.vlgmr.msra.gmra.mxu0 %vm776_vm0, %v1556_v57 }
 0x47b   : > { %3035 = vmatpush3.msra.mxu0 %v4245_v21  ;;  %3036 = vmatprep.mubr.msk.f32.mxu0 %vm3816_vm1, %v3815_v4 }
 0x47c   : > { %3044 = vmatprep.subr.bf16.mxu0 %v3815_v4 }
 0x47e   : > { %3037 = vmatmul.mubr.msk.f32.vlgmr.msra.gmra.mxu0 %vm776_vm0, %v1557_v61 }
 0x47f   : > { %3046 = vmatprep.mubr.msk.bf16.mxu0 %vm3816_vm1, %v3815_v4 }
 0x52a   : > { %v1538_v18 = vpop.f32.mrf.mxu1 }
 0x52c   : > { %v3022_v26 = vpop.f32.mrf.mxu1 }
 0x52e   : > { %v1541_v63 = vpop.f32.mrf.mxu1 }
 0x530   : > { %v3023_v0 = vpop.f32.mrf.mxu1 }
 0x531   : > { %v3319_v0 = vld [vmem:[#allocation14 + $0x38] sm:$0xff]  }
 0x532   : > { %v1449_v1 = vpop.f32.mrf.mxu0  ;;  %v1697_v21 = vpop.f32.mrf.mxu1 }
 0x533   : > { %v1539_v3 = vadd.f32 %v1538_v18, %v1449_v1  ;;  %v1847_v5 = vsel %vm776_vm0, %v1697_v21, -inf }
 0x534   : > { %1848 = vmax.xlane.f32.xlu1 %v1847_v5  ;;  %v3002_v6 = vpop.f32.mrf.mxu0  ;;  %v3033_v7 = vpop.f32.mrf.mxu1  ;;  %v3322_v5 = vld [vmem:[#allocation14 + $0x28] sm:$0xff]  }
 0x535   : > { %v1552_v8 = vadd.f32 %v2801_v2, %v1539_v3  ;;  %v3324_v6 = vld [vmem:[#allocation14 + $0x20] sm:$0xff]   ;;  %v3325_v7 = vld [vmem:[#allocation17 + $0x28] sm:$0xff]  }
 0x536   : > { %v1452_v9 = vpop.f32.mrf.mxu0  ;;  %v1840_v10 = vpop.f32.mrf.mxu1 }
 0x537   : > { %v1554_v11 = vmax.f32 %v1552_v8, 0.0  ;;  %v1542_v13 = vadd.f32 %v1541_v63, %v1452_v9  ;;  %v1871_v14 = vsel %vm776_vm0, %v1840_v10, -inf  ;;  %v3326_v8 = vld [vmem:[#allocation14 + $0x18] sm:$0xff]   ;;  %v3327_v9 = vld [vmem:[#allocation17 + $0x20] sm:$0xff]  }
 0x538   : > { %1872 = vmax.xlane.f32.xlu1 %v1871_v14  ;;  %v3003_v15 = vpop.f32.mrf.mxu0  ;;  %v3043_v16 = vpop.f32.mrf.mxu1  ;;  %v3331_v14 = vld [vmem:[#allocation17 + $0x10] sm:$0xff]  }
 0x539   : > { %v1892_v17 = vpack.c.bf16 %v1554_v11, %v1554_v11  ;;  %v1553_v20 = vadd.f32 %v2801_v2, %v1542_v13  ;;  %v3320_v2 = vld [vmem:[#allocation14 + $0x30] sm:$0xff]   ;;  %v3329_v11 = vld [vmem:[#allocation17 + $0x18] sm:$0xff]   ;;  %v3330_v13 = vld [vmem:[#allocation14 + $0x8] sm:$0xff]  }
 0x53a   : > { %v1627_v22 = vpop.f32.mrf.mxu0  ;;  %v3332_v15 = vld [vmem:[#allocation14] sm:$0xff]   ;;  %v3333_v16 = vld [vmem:[#allocation17 + $0x8] sm:$0xff]  }
 0x53b   : > { %v1555_v23 = vmax.f32 %v1553_v20, 0.0  ;;  %v1898_v25 = vsel %vm1151_vm3, %v1892_v17, 0  ;;  %v1844_v27 = vsel %vm776_vm0, %v1627_v22, -inf  ;;  %v3334_v17 = vld [vmem:[#allocation17] sm:$0xff]  }
 0x53c   : > { %3045 = vmatpush3.bf16.msra.mxu0 %v1898_v25  ;;  %1845 = vmax.xlane.f32.xlu0 %v1844_v27  ;;  %v3028_v28 = vpop.f32.mrf.mxu0 }
 0x53d   : > { %v1893_v29 = vpack.c.bf16 %v1555_v23, %v1555_v23  ;;  %3056 = vmatprep.subr.bf16.mxu0 %v3815_v4 }
 0x53e   : > { %v1770_v30 = vpop.f32.mrf.mxu0 }
 0x53f   : > { %v1944_v31 = vsel %vm1151_vm3, %v1893_v29, 0  ;;  %v1868_v32 = vsel %vm776_vm0, %v1770_v30, -inf }
 0x540   : > { %3051 = vmatpush3.bf16.msra.mxu1 %v1944_v31  ;;  %1869 = vmax.xlane.f32.xlu0 %v1868_v32  ;;  %v3038_v33 = vpop.f32.mrf.mxu0 }
 0x541   : > { %3062 = vmatprep.subr.bf16.mxu1 %v3815_v4 }
 0x5bd   : > { %v1849_v34 = vpop.xlane.xlu1 %1848 }
 0x5be   : > { %v1851_v35 = vsub.f32 %v1697_v21, %v1849_v34  ;;  %v3321_v21 = vld [vmem:[#allocation17 + $0x38] sm:$0xff]  }
 0x5c0   : > { %v1854_v36 = vmul.f32 1.442695, %v1851_v35 }
 0x5c1   : > { %v1873_v37 = vpop.xlane.xlu1 %1872 }
 0x5c2   : > { %3375 = vpow2.f32 %v1854_v36  ;;  %v1875_v38 = vsub.f32 %v1840_v10, %v1873_v37  ;;  %v3328_v10 = vld [vmem:[#allocation14 + $0x10] sm:$0xff]   ;;  %v3335_v37 = vld [vmem:[#allocation19 + $0x38] sm:$0xff]  }
 0x5c4   : > { %v1878_v39 = vmul.f32 1.442695, %v1875_v38 }
 0x5c5   : > { %v1846_v40 = vpop.xlane.xlu0 %1845 }
 0x5c6   : > { %3377 = vpow2.f32 %v1878_v39  ;;  %v1850_v41 = vsub.f32 %v1627_v22, %v1846_v40 }
 0x5c8   : > { %v1852_v42 = vmul.f32 1.442695, %v1850_v41  ;;  %v3336_v41 = vld [vmem:[#allocation19 + $0x30] sm:$0xff]  }
 0x5c9   : > { %v1870_v43 = vpop.xlane.xlu0 %1869 }
 0x5ca   : > { %3379 = vpow2.f32 %v1852_v42  ;;  %v1874_v44 = vsub.f32 %v1770_v30, %v1870_v43  ;;  %v3337_v43 = vld [vmem:[#allocation19 + $0x28] sm:$0xff]  }
 0x5cc   : > { %v1876_v45 = vmul.f32 1.442695, %v1874_v44  ;;  %v3338_v44 = vld [vmem:[#allocation19 + $0x20] sm:$0xff]  }
 0x5ce   : > { %3381 = vpow2.f32 %v1876_v45  ;;  %v3339_v45 = vld [vmem:[#allocation19 + $0x18] sm:$0xff]  }
 0x5cf   : > { %v3376_v46 = vpop.eup %3375 }
 0x5d0   : > { %v1859_v47 = vsel %vm776_vm0, %v3376_v46, 0.0 }
 0x5d1   : > { %1860 = vadd.xlane.f32.xlu1 %v1859_v47  ;;  %v3341_v47 = vld [vmem:[#allocation19 + $0x8] sm:$0xff]  }
 0x5d3   : > { %v3378_v48 = vpop.eup %3377 }
 0x5d4   : > { %v1883_v49 = vsel %vm776_vm0, %v3378_v48, 0.0 }
 0x5d5   : > { %1884 = vadd.xlane.f32.xlu1 %v1883_v49  ;;  %v3343_v49 = vld [vmem:[#allocation20 + $0x38] sm:$0xff]  }
 0x5d7   : > { %v3380_v50 = vpop.eup %3379 }
 0x5d8   : > { %v1856_v51 = vsel %vm776_vm0, %v3380_v50, 0.0 }
 0x5d9   : > { %1857 = vadd.xlane.f32.xlu0 %v1856_v51  ;;  %v3345_v51 = vld [vmem:[#allocation20 + $0x28] sm:$0xff]  }
 0x5db   : > { %v3382_v52 = vpop.eup %3381 }
 0x5dc   : > { %v1880_v53 = vsel %vm776_vm0, %v3382_v52, 0.0 }
 0x5dd   : > { %1881 = vadd.xlane.f32.xlu0 %v1880_v53  ;;  %v3347_v53 = vld [vmem:[#allocation20 + $0x18] sm:$0xff]  }
 0x65a   : > { %v1861_v54 = vpop.xlane.xlu1 %1860 }
 0x65b   : > { %3383 = vrcp.f32 %v1861_v54 }
 0x65e   : > { %v1885_v55 = vpop.xlane.xlu1 %1884 }
 0x65f   : > { %3385 = vrcp.f32 %v1885_v55 }
 0x662   : > { %v1858_v56 = vpop.xlane.xlu0 %1857 }
 0x663   : > { %3387 = vrcp.f32 %v1858_v56 }
 0x666   : > { %v1882_v57 = vpop.xlane.xlu0 %1881 }
 0x667   : > { %3389 = vrcp.f32 %v1882_v57 }
 0x668   : > { %v3384_v58 = vpop.eup %3383 }
 0x669   : > { %v1865_v59 = vmul.f32 %v3384_v58, %v3376_v46  ;;  %v3340_v46 = vld [vmem:[#allocation19 + $0x10] sm:$0xff]  }
 0x66b   : > { %v1867_v60 = vpack.c.bf16 %v1865_v59, %v1865_v59 }
 0x66c   : > { %v3386_v24 = vpop.eup %3385 }
 0x66d   : > { %3053 = vmatmul.mubr.msk.bf16.vlgmr.msra.gmra.mxu1 %vm776_vm0, %v1867_v60  ;;  %v1889_v61 = vmul.f32 %v3386_v24, %v3378_v48  ;;  %v3342_v48 = vld [vmem:[#allocation19] sm:$0xff]   ;;  %v2826_v60 = vld [vmem:[%s4578_s10] ss:$0 sm:$0xff] }
 0x66e   : > { %3063 = vmatpush3.bf16.msra.mxu1 %v4301_v19  ;;  %3064 = vmatprep.mubr.msk.bf16.mxu1 %vm3816_vm1, %v3815_v4 }
 0x66f   : > { %3088 = vmatprep.subr.bf16.mxu1 %v3815_v4  ;;  %v1891_v63 = vpack.c.bf16 %v1889_v61, %v1889_v61 }
 0x670   : > { %v3388_v62 = vpop.eup %3387 }
 0x671   : > { %v1864_v18 = vmul.f32 %v3388_v62, %v3380_v50  ;;  %v3344_v50 = vld [vmem:[#allocation20 + $0x30] sm:$0xff]  }
 0x673   : > { %v1866_v26 = vpack.c.bf16 %v1864_v18, %v1864_v18 }
 0x674   : > { %v3390_v1 = vpop.eup %3389 }
 0x675   : > { %3047 = vmatmul.mubr.msk.bf16.vlgmr.msra.gmra.mxu0 %vm776_vm0, %v1866_v26  ;;  %3065 = vmatmul.mubr.msk.bf16.vlgmr.msra.gmra.mxu1 %vm776_vm0, %v1891_v63  ;;  %v1888_v19 = vmul.f32 %v3390_v1, %v3382_v52  ;;  %v3346_v52 = vld [vmem:[#allocation20 + $0x20] sm:$0xff]  }
 0x676   : > { %3057 = vmatpush3.bf16.msra.mxu0 %v4294_v12  ;;  %3058 = vmatprep.mubr.msk.bf16.mxu0 %vm3816_vm1, %v3815_v4  ;;  %v3323_v12 = vld [vmem:[#allocation17 + $0x30] sm:$0xff]  }
 0x677   : > { %3089 = vmatpush3.bf16.msra.mxu1 %v3319_v0  ;;  %3068 = vmatprep.subr.bf16.mxu0 %v3815_v4  ;;  %v1890_v3 = vpack.c.bf16 %v1888_v19, %v1888_v19 }
 0x678   : > { %3090 = vmatprep.subr.bf16.mxu1 %v3815_v4  ;;  %3104 = vmatprep.mubr.msk.bf16.mxu1 %vm3816_vm1, %v3815_v4 }
 0x67b   : > { %3091 = vmatpush3.bf16.msra.mxu1 %v3320_v2  ;;  %v3348_v2 = vld [vmem:[#allocation20 + $0x10] sm:$0xff]  }
 0x67c   : > { %3092 = vmatprep.subr.bf16.mxu1 %v3815_v4 }
 0x67d   : > { %3059 = vmatmul.mubr.msk.bf16.vlgmr.msra.gmra.mxu0 %vm776_vm0, %v1890_v3  ;;  %v3350_v3 = vld [vmem:[#allocation20] sm:$0xff]  }
 0x67e   : > { %3069 = vmatpush3.bf16.msra.mxu0 %v3321_v21  ;;  %3084 = vmatprep.mubr.msk.bf16.mxu0 %vm3816_vm1, %v3815_v4  ;;  %v3349_v21 = vld [vmem:[#allocation20 + $0x8] sm:$0xff]  }
 0x67f   : > { %3093 = vmatpush3.bf16.msra.mxu1 %v3322_v5  ;;  %3070 = vmatprep.subr.bf16.mxu0 %v3815_v4  ;;  %v2827_v5 = vld [vmem:[%s4579_s24] ss:$0 sm:$0xff] }
 0x680   : > { %3094 = vmatprep.subr.bf16.mxu1 %v3815_v4 }
 0x682   : > { %3071 = vmatpush3.bf16.msra.mxu0 %v3323_v12 }
 0x683   : > { %3095 = vmatpush3.bf16.msra.mxu1 %v3324_v6  ;;  %3072 = vmatprep.subr.bf16.mxu0 %v3815_v4 }
 0x684   : > { %3096 = vmatprep.subr.bf16.mxu1 %v3815_v4 }
 0x686   : > { %3073 = vmatpush3.bf16.msra.mxu0 %v3325_v7 }
 0x687   : > { %3097 = vmatpush3.bf16.msra.mxu1 %v3326_v8  ;;  %3074 = vmatprep.subr.bf16.mxu0 %v3815_v4 }
 0x688   : > { %3098 = vmatprep.subr.bf16.mxu1 %v3815_v4 }
 0x68a   : > { %3075 = vmatpush3.bf16.msra.mxu0 %v3327_v9 }
 0x68b   : > { %3099 = vmatpush3.bf16.msra.mxu1 %v3328_v10  ;;  %3076 = vmatprep.subr.bf16.mxu0 %v3815_v4 }
 0x68c   : > { %3100 = vmatprep.subr.bf16.mxu1 %v3815_v4 }
 0x68e   : > { %3077 = vmatpush3.bf16.msra.mxu0 %v3329_v11 }
 0x68f   : > { %3101 = vmatpush3.bf16.msra.mxu1 %v3330_v13  ;;  %3078 = vmatprep.subr.bf16.mxu0 %v3815_v4 }
 0x690   : > { %3102 = vmatprep.subr.bf16.mxu1 %v3815_v4 }
 0x692   : > { %3079 = vmatpush3.bf16.msra.mxu0 %v3331_v14 }
 0x693   : > { %3103 = vmatpush3.bf16.msra.mxu1 %v3332_v15  ;;  %3080 = vmatprep.subr.bf16.mxu0 %v3815_v4 }
 0x694   : > { %3128 = vmatprep.subr.bf16.mxu1 %v3815_v4 }
 0x696   : > { %3081 = vmatpush3.bf16.msra.mxu0 %v3333_v16 }
 0x697   : > { %3082 = vmatprep.subr.bf16.mxu0 %v3815_v4 }
 0x69a   : > { %3083 = vmatpush3.bf16.msra.mxu0 %v3334_v17 }
 0x69b   : > { %3108 = vmatprep.subr.bf16.mxu0 %v3815_v4 }
 0x72d   : > { %v1980_v20 = vpop.f32.mrf.mxu1 }
 0x72f   : > { %v3054_v22 = vpop.f32.mrf.mxu1 }
 0x731   : > { %v1983_v23 = vpop.f32.mrf.mxu1 }
 0x733   : > { %v3055_v25 = vpop.f32.mrf.mxu1 }
 0x735   : > { %v1934_v27 = vpop.f32.mrf.mxu0  ;;  %v2066_v28 = vpop.f32.mrf.mxu1 }
 0x736   : > { %v2072_v29 = vpack.c.bf16 %v1980_v20, %v1934_v27 }
 0x737   : > { %v3048_v30 = vpop.f32.mrf.mxu0  ;;  %v3066_v31 = vpop.f32.mrf.mxu1 }
 0x738   : > { %3105 = vmatmul.mubr.bf16.vlgmr.msra.gmra.mxu1 %v2072_v29 }
 0x739   : > { %v1937_v32 = vpop.f32.mrf.mxu0  ;;  %v2069_v33 = vpop.f32.mrf.mxu1  ;;  %3144 = vmatprep.mubr.msk.bf16.mxu1 %vm3816_vm1, %v3815_v4  ;;  %3129 = vmatpush3.bf16.msra.mxu1 %v3343_v49 }
 0x73a   : > { %3130 = vmatprep.subr.bf16.mxu1 %v3815_v4 }
 0x73b   : > { %v3049_v34 = vpop.f32.mrf.mxu0  ;;  %v3067_v35 = vpop.f32.mrf.mxu1 }
 0x73d   : > { %v2023_v36 = vpop.f32.mrf.mxu0  ;;  %3131 = vmatpush3.bf16.msra.mxu1 %v3344_v50 }
 0x73e   : > { %v2089_v38 = vpack.c.bf16 %v2066_v28, %v2023_v36  ;;  %3132 = vmatprep.subr.bf16.mxu1 %v3815_v4 }
 0x73f   : > { %v3060_v39 = vpop.f32.mrf.mxu0 }
 0x740   : > { %3085 = vmatmul.mubr.bf16.vlgmr.msra.gmra.mxu0 %v2089_v38 }
 0x741   : > { %v2026_v40 = vpop.f32.mrf.mxu0  ;;  %3109 = vmatpush3.bf16.msra.mxu0 %v3335_v37  ;;  %3124 = vmatprep.mubr.msk.bf16.mxu0 %vm3816_vm1, %v3815_v4 }
 0x742   : > { %3110 = vmatprep.subr.bf16.mxu0 %v3815_v4  ;;  %3133 = vmatpush3.bf16.msra.mxu1 %v3345_v51 }
 0x743   : > { %v3061_v42 = vpop.f32.mrf.mxu0  ;;  %3134 = vmatprep.subr.bf16.mxu1 %v3815_v4 }
 0x745   : > { %3111 = vmatpush3.bf16.msra.mxu0 %v3336_v41 }
 0x746   : > { %3112 = vmatprep.subr.bf16.mxu0 %v3815_v4  ;;  %3135 = vmatpush3.bf16.msra.mxu1 %v3346_v52 }
 0x747   : > { %3136 = vmatprep.subr.bf16.mxu1 %v3815_v4 }
 0x749   : > { %3113 = vmatpush3.bf16.msra.mxu0 %v3337_v43 }
 0x74a   : > { %3114 = vmatprep.subr.bf16.mxu0 %v3815_v4  ;;  %3137 = vmatpush3.bf16.msra.mxu1 %v3347_v53 }
 0x74b   : > { %3138 = vmatprep.subr.bf16.mxu1 %v3815_v4 }
 0x74d   : > { %3115 = vmatpush3.bf16.msra.mxu0 %v3338_v44 }
 0x74e   : > { %3116 = vmatprep.subr.bf16.mxu0 %v3815_v4  ;;  %3139 = vmatpush3.bf16.msra.mxu1 %v3348_v2 }
 0x74f   : > { %3140 = vmatprep.subr.bf16.mxu1 %v3815_v4 }
 0x751   : > { %3117 = vmatpush3.bf16.msra.mxu0 %v3339_v45 }
 0x752   : > { %3118 = vmatprep.subr.bf16.mxu0 %v3815_v4  ;;  %3141 = vmatpush3.bf16.msra.mxu1 %v3349_v21 }
 0x753   : > { %3142 = vmatprep.subr.bf16.mxu1 %v3815_v4 }
 0x755   : > { %3119 = vmatpush3.bf16.msra.mxu0 %v3340_v46 }
 0x756   : > { %3120 = vmatprep.subr.bf16.mxu0 %v3815_v4  ;;  %3143 = vmatpush3.bf16.msra.mxu1 %v3350_v3 }
 0x759   : > { %3121 = vmatpush3.bf16.msra.mxu0 %v3341_v47 }
 0x75a   : > { %3122 = vmatprep.subr.bf16.mxu0 %v3815_v4  ;;  %v2836_v4 = vld [vmem:[%s4580_s6] ss:$0 sm:$0xff] }
 0x75d   : > { %3123 = vmatpush3.bf16.msra.mxu0 %v3342_v48 }
 0x7f8   : > { %v2277_v54 = vpop.f32.mrf.mxu1 }
 0x7fa   : > { %v3106_v55 = vpop.f32.mrf.mxu1 }
 0x7fc   : > { %v2280_v56 = vpop.f32.mrf.mxu1 }
 0x7fe   : > { %v3107_v57 = vpop.f32.mrf.mxu1 }
 0x800   : > { %v2188_v58 = vpop.f32.mrf.mxu0 }
 0x801   : > { %v2278_v59 = vadd.f32 %v2277_v54, %v2188_v58 }
 0x802   : > { %v3086_v24 = vpop.f32.mrf.mxu0 }
 0x803   : > { %v2291_v62 = vadd.f32 %v2826_v60, %v2278_v59 }
 0x804   : > { %v2191_v61 = vpop.f32.mrf.mxu0 }
 0x805   : > { %v2281_v18 = vadd.f32 %v2280_v56, %v2191_v61  ;;  %v2293_v0 = vmax.f32 %v2291_v62, 0.0 }
 0x806   : > { %v3087_v26 = vpop.f32.mrf.mxu0 }
 0x807   : > { %v2292_v63 = vadd.f32 %v2826_v60, %v2281_v18 }
 0x809   : > { %v2294_v1 = vmax.f32 %v2292_v63, 0.0 }
 0x80b   : > { %v2295_v19 = vpack.c.bf16 %v2294_v1, %v2293_v0 }
 0x80d   : > { %3125 = vmatmul.mubr.bf16.vlgmr.msra.gmra.mxu0 %v2295_v19 }
 0x8cd   : > { %v2401_v12 = vpop.f32.mrf.mxu0 }
 0x8ce   : > { %v2402_v7 = vadd.f32 %v2827_v5, %v2401_v12 }
 0x8cf   : > { %v3126_v6 = vpop.f32.mrf.mxu0 }
 0x8d0   : > { %v2408_v11 = vmax.f32 %v2402_v7, 0.0 }
 0x8d1   : > { %v2404_v8 = vpop.f32.mrf.mxu0 }
 0x8d2   : > { %v2405_v9 = vadd.f32 %v2827_v5, %v2404_v8 }
 0x8d3   : > { %v3127_v10 = vpop.f32.mrf.mxu0 }
 0x8d4   : > { %v2409_v13 = vmax.f32 %v2405_v9, 0.0 }
 0x8d6   : > { %v2410_v14 = vpack.c.bf16 %v2409_v13, %v2408_v11 }
 0x8d8   : > { %3145 = vmatmul.mubr.bf16.vlgmr.msra.gmra.mxu1 %v2410_v14 }
 0x998   : > { %v2516_v15 = vpop.f32.mrf.mxu1 }
 0x999   : > { %v2517_v16 = vadd.f32 %v2836_v4, %v2516_v15 }
 0x99a   : > { %v3146_v17 = vpop.f32.mrf.mxu1 }
 0x99b   : > { %2523 = vst [vmem:[%s768_s30] sm:$0xff] %v2517_v16 }
 0x99c   : > { %v2519_v20 = vpop.f32.mrf.mxu1 }
 0x99d   : > { %v2520_v22 = vadd.f32 %v2836_v4, %v2519_v20 }
 0x99e   : > { %v3147_v23 = vpop.f32.mrf.mxu1 }
 0x99f   : > { %2524 = vst [vmem:[%s768_s30 + $0x8] sm:$0xff] %v2520_v22 }
 0x9a0   : > { %3722 = shalt.err (!%p3719_p11)
}
 0x9a1   : > { %s3723_s10 = scalar_lea.hbm %s4436_s1, 256  ;;  %s3727_s24 = scalar_lea.hbm %s4582_s22, 512 }
 0x9a2   : > { %p3724_p2 = scmp.ne.s32.totalorder %s4436_s1, %s3723_s10  ;;  %p3728_p10 = scmp.lt.s32.totalorder %s4436_s1, %s4582_s22 }
 0x9a3   : > { %p3729_p3 = scmp.lt.s32.totalorder %s3727_s24, %s3723_s10 }
 0x9a4   : > { %p3725_p6 = pnand %p3724_p2, %p4583_p5 }
 0x9a5   : > { %p3730_p8 = por %p3729_p3, %p3728_p10 }
 0x9a6   : > { %p3726_p7 = pneg %p3725_p6 }
 0x9a8   : > { %p3731_p0 = pnand %p3730_p8, %p3726_p7 }
 0x9aa   : > { %3734 = shalt.err (!%p3731_p0)
}
 0x9ab   : > { %s3818_s6 = smov 128   ;;  %s3819_s30 = smov 8  }
 0x9ac   : > { %3190 = dma.vmem_to_hbm [thread:$0]  (%p4583_p5), %s4431_s14, 256, %s4436_s1, %s2526_s23, %s3818_s6, %s3818_s6, %s3819_s30  }
 0x9ad PF: > { %s4584_s12 = sld [smem:[#allocation31_spill]] }
 0x9ae   : > { %s4585_s3 = sld [smem:[#allocation36_spill]] }
 0x9af   : > { %s4586_s11 = sld [smem:[#allocation32_spill]] }
 0x9b3   : > { %s2554_s17 = sand.u32 1, %s4584_s12  }
 0x9b4   : > { %p4587_p1 = scmp.ne.s32.totalorder %s4585_s3, 0  ;;  %s2555_s0 = scalar_lea.sflag [#allocation4], %s2554_s17 }
 0x9b5   : > { %p4588_p9 = scmp.ge.s32.totalorder %s4586_s11, 2 }
 0x9b7   : > { %p3231_p12 = pnand %p4588_p9, %p4587_p1 }
 0x9b9   : > { %p3232_p13 = pneg %p3231_p12 }
 0x9bb   : > { %3780 = dma.done.wait (%p3232_p13), %s2555_s0, 256  }
 0x9bc   : > { %3782 = vsyncadd (%p3232_p13), %s2555_s0, 4294967040  ;;  %s4589_s27 = sld [smem:[#allocation33_spill]]  ;;  %s4591_s24 = smov %s3789_s25 }
 0x9bd   : > { %s4590_s18 = sld [smem:[#allocation34_spill]]  ;;  %s4592_s25 = smov %s3793_s26 }
 0x9c2   : > { %p38_p4 = scmp.ge.s32.totalorder %s4589_s27, 4  }
 0x9c3   : > { %s4593_s26 = smov %s4590_s18 }
 0x9c4   :  { %40 = sbr.rel (!%p38_p4) target bundleno = 25 (0x19), region = 193 }
 0x9c9   :  { %2560 = vsyncpa [#allocation3], 1 }
 0x9ca   :  { %2562 = vsyncpa [#allocation3 + $0x1], 1 }
 0x9cb   :  { %2563 = vsyncpa [#allocation6], 1 }
 0x9cc   :  { %2565 = vsyncpa [#allocation6 + $0x1], 1 }
 0x9cd   :  { %2566 = vsyncpa [#allocation9], 1 }
 0x9ce   :  { %2567 = vsyncpa [#allocation12], 1 }
 0x9cf   :  { %2568 = vsyncpa [#allocation15], 1 }
 0x9d0   :  { %2569 = vsyncpa [#allocation18], 1 }
 0x9d1   :  { %2570 = vsyncpa [#allocation21], 1 }
 0x9d2   :  { %2571 = vsyncpa [#allocation4], 1 }
 0x9d3   :  { %2573 = vsyncpa [#allocation4 + $0x1], 1 }

// kernel: tpu_custom_call.1
= control target key start
LH: loop header
LB: loop body
LE: loop exit
PB: predicated region body
PF: predicated region fallthrough
CT: control target
= control target key end

     0   :  { %s4479_s0 = inlined_call_operand.hbm [shape: f32[4,8,8], index: 0, kind: input, shape index: {}]   ;;  %s4480_s1 = inlined_call_operand.hbm [shape: f32[4,8,128], index: 1, kind: input, shape index: {}]   ;;  %s4481_s2 = inlined_call_operand.hbm [shape: f32[4,8,128], index: 2, kind: input, shape index: {}]   ;;  %s4482_s3 = inlined_call_operand.hbm [shape: f32[8,8], index: 3, kind: input, shape index: {}]   ;;  %s4483_s4 = inlined_call_operand.hbm [shape: f32[8,8], index: 4, kind: input, shape index: {}]   ;;  %s4484_s5 = inlined_call_operand.vmem [shape: f32[8,8], index: 5, kind: input, shape index: {}]   ;;  %s4485_s6 = inlined_call_operand.hbm [shape: f32[8,8], index: 6, kind: input, shape index: {}]   ;;  %s4486_s7 = inlined_call_operand.hbm [shape: bf16[128,128], index: 7, kind: input, shape index: {}]   ;;  %s4487_s8 = inlined_call_operand.hbm [shape: bf16[128,128], index: 8, kind: input, shape index: {}]   ;;  %s4488_s9 = inlined_call_operand.hbm [shape: bf16[128,128], index: 9, kind: input, shape index: {}]   ;;  %s4489_s10 = inlined_call_operand.hbm [shape: bf16[128,128], index: 10, kind: input, shape index: {}]   ;;  %s4490_s11 = inlined_call_operand.vmem [shape: f32[1,128], index: 11, kind: input, shape index: {}]   ;;  %s4491_s12 = inlined_call_operand.vmem [shape: f32[1,128], index: 12, kind: input, shape index: {}]   ;;  %s4492_s13 = inlined_call_operand.hbm [shape: bf16[128,128], index: 13, kind: input, shape index: {}]   ;;  %s4493_s14 = inlined_call_operand.vmem [shape: f32[1,128], index: 14, kind: input, shape index: {}]   ;;  %s4494_s15 = inlined_call_operand.hbm [shape: bf16[128,128], index: 15, kind: input, shape index: {}]   ;;  %s4495_s16 = inlined_call_operand.vmem [shape: f32[1,128], index: 16, kind: input, shape index: {}]   ;;  %s4496_s17 = inlined_call_operand.hbm [shape: f32[4,8,128], index: 17, kind: output, shape index: {}]  }
   0x1   :  { %4524 = sst [smem:[#allocation37_spill]] %s4479_s0 }
   0x2   :  { %4525 = sst [smem:[#allocation38_spill]] %s4480_s1 }
   0x3   :  { %4526 = sst [smem:[#allocation39_spill]] %s4482_s3 }
   0x4   :  { %4527 = sst [smem:[#allocation40_spill]] %s4483_s4 }
   0x5   :  { %4528 = sst [smem:[#allocation41_spill]] %s4485_s6 }
   0x6   :  { %4529 = sst [smem:[#allocation42_spill]] %s4487_s8 }
   0x7   :  { %4530 = sst [smem:[#allocation43_spill]] %s4489_s10 }
   0x8   :  { %4531 = sst [smem:[#allocation44_spill]] %s4490_s11 }
   0x9   :  { %4532 = sst [smem:[#allocation45_spill]] %s4491_s12 }
   0xa   :  { %4533 = sst [smem:[#allocation46_spill]] %s4493_s14 }
   0xb   :  { %4534 = sst [smem:[#allocation47_spill]] %s4495_s16 }
   0xc   :  { %4535 = sst [smem:[#allocation48_spill]] %s4496_s17 }
   0xd   :  { %22 = vsyncpa [#allocation3], 0 }
   0xe   :  { %24 = vsyncpa [#allocation3 + $0x1], 0 }
   0xf   :  { %25 = vsyncpa [#allocation6], 0 }
  0x10   :  { %27 = vsyncpa [#allocation6 + $0x1], 0 }
  0x11   :  { %28 = vsyncpa [#allocation9], 0 }
  0x12   :  { %29 = vsyncpa [#allocation12], 0 }
  0x13   :  { %30 = vsyncpa [#allocation15], 0 }
  0x14   :  { %31 = vsyncpa [#allocation18], 0 }
  0x15   :  { %32 = vsyncpa [#allocation21], 0 }
  0x16   :  { %33 = vsyncpa [#allocation4], 0 }
  0x17   :  { %35 = vsyncpa [#allocation4 + $0x1], 0  ;;  %s3910_s24 = smov 0   ;;  %s3912_s25 = smov 0  }
  0x18   :  { %s3914_s26 = smov 0   ;;  %s3916_s27 = smov 0  }
  0x19 LB: > { %4536 = sst [smem:[#allocation31_spill]] %s3785_s24  ;;  %s3799_s28 = smov [#allocation8]   ;;  %s3797_s27 = sphi %s3916_s27, %s4589_s27   ;;  %s3793_s26 = sphi %s3914_s26, %s4593_s26   ;;  %s3789_s25 = sphi %s3912_s25, %s4592_s25   ;;  %s3785_s24 = sphi %s3910_s24, %s4591_s24  }
  0x1a   : > { %4537 = sst [smem:[#allocation32_spill]] %s3797_s27  ;;  %s457_s29 = sshll.u32 %s3799_s28, 4  ;;  %s458_s29 = int_to_ptr.vmem [resolvable:$true] %s457_s29 }
  0x1b   : > { %s3931_s0 = sadd.s32 4294967295, %s3797_s27   ;;  %p2742_p0 = scmp.ge.s32.totalorder %s3797_s27, 1 }
  0x1c   : > { %p4499_p1 = scmp.eq.s32.totalorder %s3931_s0, 0  ;;  %p444_p2 = scmp.lt.s32.totalorder %s3797_s27, 3 }
  0x1d   : > { %s3800_s18 = smov [#allocation11]   ;;  %s3801_s20 = smov [#allocation14]  }
  0x1e   : > { %p3936_p3 = pnand %p2742_p0, %p444_p2  ;;  %s482_s19 = sshll.u32 %s3800_s18, 4  ;;  %s483_s19 = int_to_ptr.vmem [resolvable:$true] %s482_s19 }
  0x1f   : > { %s505_s21 = sshll.u32 %s3801_s20, 4  ;;  %s3402_s23 = scalar_lea.vmem %s458_s29, 128  ;;  %s3949_s21 = int_to_ptr.vmem [resolvable:$true] %s505_s21 }
  0x20   : > { %s4538_s30 = scalar_select %p3936_p3, 1, 0 }
  0x21   : > { %p3192_p5 = pneg %p3936_p3  ;;  %p3403_p8 = scmp.ne.s32.totalorder %s458_s29, %s3402_s23 }
  0x22   : > { %p3410_p11 = scmp.lt.s32.totalorder %s458_s29, %s458_s29  ;;  %p3411_p12 = scmp.lt.s32.totalorder %s3402_s23, %s3402_s23 }
  0x23   : > { %p3945_p6 = pnand %p3192_p5, %p4499_p1 }
  0x24   : > { %p3412_p13 = por %p3411_p12, %p3410_p11 }
  0x25   : > { %s4539_s1 = scalar_select %p3945_p6, 1, 0 }
  0x26   : > { %p3953_p7 = pneg %p3945_p6 }
  0x28   : > { %s4540_s22 = scalar_select %p3953_p7, 1, 0 }
  0x29   : > { %p3405_p9 = pnand %p3403_p8, %p3953_p7 }
  0x2b   : > { %p3406_p10 = pneg %p3405_p9 }
  0x2d   : > { %p3413_p0 = pnand %p3412_p13, %p3406_p10 }
  0x2f   : > { %3416 = shalt.err (!%p3413_p0)
}
  0x30   : > { %s4541_s3 = sld [smem:[#allocation39_spill]]  ;;  %s3428_s20 = scalar_lea.vmem %s483_s19, 128 }
  0x31   : > { %p3429_p2 = scmp.ne.s32.totalorder %s483_s19, %s3428_s20  ;;  %p3436_p1 = scmp.lt.s32.totalorder %s483_s19, %s483_s19 }
  0x32   : > { %p3437_p8 = scmp.lt.s32.totalorder %s3428_s20, %s3428_s20 }
  0x33   : > { %p3431_p5 = pnand %p3429_p2, %p3953_p7 }
  0x34   : > { %p3438_p9 = por %p3437_p8, %p3436_p1 }
  0x35   : > { %p3432_p4 = pneg %p3431_p5 }
  0x36   : > { %3195 = dma.hbm_to_vmem [thread:$0]  (!%p3945_p6), %s4541_s3, 128, %s458_s29, [#allocation9]  }
  0x37   : > { %p3439_p3 = pnand %p3438_p9, %p3432_p4 }
  0x39   : > { %3442 = shalt.err (!%p3439_p3)
}
  0x3a   : > { %s4542_s6 = sld [smem:[#allocation41_spill]]  ;;  %s3454_s29 = scalar_lea.vmem %s3949_s21, 1024 }
  0x3b   : > { %p3455_p10 = scmp.ne.s32.totalorder %s3949_s21, %s3454_s29  ;;  %p3462_p13 = scmp.lt.s32.totalorder %s3949_s21, %s3949_s21 }
  0x3c   : > { %p3463_p1 = scmp.lt.s32.totalorder %s3454_s29, %s3454_s29 }
  0x3d   : > { %p3457_p11 = pnand %p3455_p10, %p3953_p7 }
  0x3e   : > { %p3464_p4 = por %p3463_p1, %p3462_p13 }
  0x3f   : > { %p3458_p12 = pneg %p3457_p11 }
  0x40   : > { %3201 = dma.hbm_to_vmem [thread:$0]  (!%p3945_p6), %s4542_s6, 128, %s483_s19, [#allocation12]  }
  0x41   : > { %p3465_p3 = pnand %p3464_p4, %p3458_p12 }
  0x43   : > { %3468 = shalt.err (!%p3465_p3)
}
  0x44   : > { %s4502_s28 = smov 64   ;;  %s4504_s17 = smov 4  }
  0x45   : > { %s4543_s8 = sld [smem:[#allocation42_spill]]  ;;  %s3804_s20 = smov [#allocation17]  }
  0x46   : > { %s531_s23 = sshll.u32 %s3804_s20, 4  ;;  %s532_s23 = int_to_ptr.vmem [resolvable:$true] %s531_s23 }
  0x47   : > { %s3480_s29 = scalar_lea.vmem %s532_s23, 1024  ;;  %p3488_p8 = scmp.lt.s32.totalorder %s532_s23, %s532_s23 }
  0x48   : > { %p3481_p0 = scmp.ne.s32.totalorder %s532_s23, %s3480_s29  ;;  %p3489_p9 = scmp.lt.s32.totalorder %s3480_s29, %s3480_s29 }
  0x4a   : > { %p3483_p2 = pnand %p3481_p0, %p3953_p7  ;;  %p3490_p10 = por %p3489_p9, %p3488_p8 }
  0x4b   : > { %3207 = dma.hbm_to_vmem [thread:$0]  (!%p3945_p6), %s4543_s8, 1024, %s3949_s21, [#allocation15], %s4502_s28, %s4502_s28, %s4504_s17  }
  0x4c   : > { %p3484_p5 = pneg %p3483_p2 }
  0x4e   : > { %p3491_p11 = pnand %p3490_p10, %p3484_p5 }
  0x50   : > { %3494 = shalt.err (!%p3491_p11)
}
  0x51   : > { %s4544_s10 = sld [smem:[#allocation43_spill]]  ;;  %s2741_s18 = sadd.s32 4294967294, %s3797_s27  }
  0x52   : > { %s3998_s20 = sadd.s32 1, %s3797_s27   ;;  %s48_s19 = sadd.s32 1, %s3793_s26 }
  0x53   : > { %4545 = sst [smem:[#allocation33_spill]] %s3998_s20  ;;  %s45_s29 = ssub.s32 %s3797_s27, %s3998_s20 }
  0x54   : > { %p46_p12 = scmp.eq.s32.totalorder %s45_s29, 0  ;;  %p55_p13 = scmp.ne.s32.totalorder %s3793_s26, %s3789_s25 }
  0x55   : > { %p56_p1 = scmp.eq.s32.totalorder %s3797_s27, 0  ;;  %p61_p4 = scmp.ne.s32.totalorder %s3789_s25, %s3785_s24 }
  0x56   : > { %s4009_s21 = scalar_select %p46_p12, %s3793_s26, %s48_s19  }
  0x57   : > { %3213 = dma.hbm_to_vmem [thread:$0]  (!%p3945_p6), %s4544_s10, 1024, %s532_s23, [#allocation18], %s4502_s28, %s4502_s28, %s4504_s17  }
  0x58   : > { %4546 = sst [smem:[#allocation34_spill]] %s4009_s21  ;;  %p57_p3 = por %p56_p1, %p55_p13 }
  0x59   : > { %p4547_p0 = scmp.eq.s32.totalorder %s3931_s0, 0  ;;  %p431_p5 = scmp.eq.s32.totalorder %s3931_s0, 1 }
  0x5a   : > { %p437_p8 = scmp.eq.s32.totalorder %s2741_s18, 1  ;;  %p3243_p9 = scmp.lt.s32.totalorder %s3797_s27, 2 }
  0x5b   : > { %p4013_p2 = por %p4547_p0, %p61_p4  ;;  %s4508_s23 = sand.u32 1, %s3793_s26  }
  0x5c   : > { %p4020_p10 = por %p431_p5, %p55_p13  ;;  %p4024_p11 = por %p437_p8, %p61_p4 }
  0x5d   : > { %s4548_s3 = scalar_select %p4013_p2, 1, 0 }
  0x5e   : > { %s4549_s28 = scalar_select %p4020_p10, 1, 0 }
  0x5f   : > { %s4551_s29 = scalar_select %p4024_p11, 1, 0 }
  0x60   : > { %4550 = sst [smem:[#allocation35_spill]] %s4549_s28  ;;  %s4030_s19 = sshll.u32 %s4508_s23, 4 }
  0x61   : > { %4552 = sst [smem:[#allocation36_spill]] %s4551_s29  ;;  %s4033_s17 = sshll.u32 %s3797_s27, 8 }
  0x62   : > { %p4035_p12 = pnand %p3243_p9, %p57_p3  ;;  %s604_s18 = sand.u32 1, %s3797_s27  }
  0x63   : > { %s4554_s21 = sld [smem:[#allocation38_spill]]  ;;  %s608_s23 = scalar_lea.vmem [#allocation5], %s4030_s19 }
  0x64   : > { %s615_s29 = sshll.u32 %s608_s23, 4  ;;  %s3805_s24 = smov [#allocation10]   ;;  %s4047_s29 = int_to_ptr.vmem [resolvable:$true] %s615_s29 }
  0x65   : > { %s4049_s28 = sshll.u32 %s3805_s24, 4  ;;  %s4051_s16 = scalar_lea.sflag [#allocation6], %s604_s18  ;;  %s469_s28 = int_to_ptr.vmem [resolvable:$true] %s4049_s28 }
  0x66   : > { %p4057_p1 = pneg %p4035_p12 }
  0x69   : > { %s4044_s20 = scalar_lea.hbm %s4554_s21, %s4033_s17  ;;  %s3500_s23 = scalar_lea.hbm %s4554_s21, 512 }
  0x6a   : > { %s3495_s14 = scalar_lea.hbm %s4044_s20, 256  ;;  %p3501_p0 = scmp.lt.s32.totalorder %s4044_s20, %s4554_s21 }
  0x6b   : > { %p3496_p13 = scmp.ne.s32.totalorder %s4044_s20, %s3495_s14  ;;  %p3502_p5 = scmp.lt.s32.totalorder %s3500_s23, %s3495_s14 }
  0x6d   : > { %p3498_p4 = pnand %p4057_p1, %p3496_p13  ;;  %p3503_p8 = por %p3502_p5, %p3501_p0 }
  0x6f   : > { %p3499_p3 = pneg %p3498_p4 }
  0x71   : > { %p3504_p9 = pnand %p3503_p8, %p3499_p3 }
  0x73   : > { %3507 = shalt.err (!%p3504_p9)
}
  0x74   : > { %s3508_s18 = scalar_lea.vmem %s4047_s29, 256  ;;  %s3806_s11 = smov [#allocation5]  }
  0x75   : > { %p3509_p11 = scmp.ne.s32.totalorder %s4047_s29, %s3508_s18  ;;  %s3513_s8 = sshll.u32 %s3806_s11, 4  ;;  %s3514_s8 = int_to_ptr.vmem [resolvable:$false] %s3513_s8 }
  0x76   : > { %s3515_s10 = scalar_lea.vmem %s3514_s8, 512  ;;  %p3516_p10 = scmp.lt.s32.totalorder %s4047_s29, %s3514_s8 }
  0x77   : > { %p3511_p13 = pnand %p3509_p11, %p4057_p1  ;;  %p3517_p2 = scmp.lt.s32.totalorder %s3515_s10, %s3508_s18 }
  0x79   : > { %p3512_p4 = pneg %p3511_p13  ;;  %p3518_p6 = por %p3517_p2, %p3516_p10 }
  0x7b   : > { %p3519_p7 = pnand %p3518_p6, %p3512_p4 }
  0x7d   : > { %3522 = shalt.err (!%p3519_p7)
}
  0x7e   : > { %s4520_s12 = smov 128   ;;  %s4522_s14 = smov 8  }
  0x7f   : > { %3226 = dma.hbm_to_vmem [thread:$0]  (!%p4035_p12), %s4044_s20, 256, %s4047_s29, %s4051_s16, %s4520_s12, %s4520_s12, %s4522_s14  }
  0x80   : > { %s3534_s11 = scalar_lea.vmem %s469_s28, 128  ;;  %p4556_p3 = scmp.ne.s32.totalorder %s4540_s22, 0 }
  0x81   : > { %p3535_p11 = scmp.ne.s32.totalorder %s469_s28, %s3534_s11  ;;  %p3542_p7 = scmp.lt.s32.totalorder %s469_s28, %s469_s28 }
  0x82   : > { %p3543_p10 = scmp.lt.s32.totalorder %s3534_s11, %s3534_s11 }
  0x83   : > { %p3537_p2 = pnand %p3535_p11, %p4556_p3 }
  0x84   : > { %p3544_p0 = por %p3543_p10, %p3542_p7 }
  0x85   : > { %p3538_p6 = pneg %p3537_p2 }
  0x87   : > { %p3545_p5 = pnand %p3544_p0, %p3538_p6 }
  0x89   : > { %3548 = shalt.err (!%p3545_p5)
}
  0x8a   : > { %p4557_p8 = scmp.ne.s32.totalorder %s4539_s1, 0  ;;  %s4558_s4 = sld [smem:[#allocation40_spill]] }
  0x8b   : > { %s3809_s18 = smov [#allocation13]   ;;  %s3810_s29 = smov [#allocation16]  }
  0x8c   : > { %s492_s20 = sshll.u32 %s3809_s18, 4  ;;  %s518_s8 = sshll.u32 %s3810_s29, 4  ;;  %s493_s20 = int_to_ptr.vmem [resolvable:$true] %s492_s20  ;;  %s519_s8 = int_to_ptr.vmem [resolvable:$true] %s518_s8 }
  0x8d   : > { %s3560_s10 = scalar_lea.vmem %s493_s20, 1024  ;;  %p3568_p11 = scmp.lt.s32.totalorder %s493_s20, %s493_s20 }
  0x8e   : > { %p3561_p9 = scmp.ne.s32.totalorder %s493_s20, %s3560_s10  ;;  %p3569_p2 = scmp.lt.s32.totalorder %s3560_s10, %s3560_s10 }
  0x90   : > { %3198 = dma.hbm_to_vmem [thread:$0]  (!%p4557_p8), %s4558_s4, 128, %s469_s28, [#allocation9]  }
  0x91   : > { %p3563_p13 = pnand %p3561_p9, %p4556_p3  ;;  %p3570_p6 = por %p3569_p2, %p3568_p11 }
  0x93   : > { %p3564_p4 = pneg %p3563_p13 }
  0x95   : > { %p3571_p7 = pnand %p3570_p6, %p3564_p4 }
  0x97   : > { %3574 = shalt.err (!%p3571_p7)
}
  0x98   : > { %s4559_s11 = smov 4   ;;  %s4560_s23 = smov 64  }
  0x99   : > { %3204 = dma.hbm_to_vmem [thread:$0]  (!%p4557_p8), %s4486_s7, 1024, %s493_s20, [#allocation12], %s4560_s23, %s4560_s23, %s4559_s11  }
  0x9a   : > { %s3586_s18 = scalar_lea.vmem %s519_s8, 1024  ;;  %p3594_p9 = scmp.lt.s32.totalorder %s519_s8, %s519_s8 }
  0x9b   : > { %p3587_p10 = scmp.ne.s32.totalorder %s519_s8, %s3586_s18  ;;  %p3595_p13 = scmp.lt.s32.totalorder %s3586_s18, %s3586_s18 }
  0x9d   : > { %p3589_p0 = pnand %p3587_p10, %p4556_p3  ;;  %p3596_p4 = por %p3595_p13, %p3594_p9 }
  0x9f   : > { %p3590_p5 = pneg %p3589_p0 }
  0xa1   : > { %p3597_p11 = pnand %p3596_p4, %p3590_p5 }
  0xa3   : > { %3600 = shalt.err (!%p3597_p11)
}
  0xa4   : > { %3210 = dma.hbm_to_vmem [thread:$0]  (!%p4557_p8), %s4488_s9, 1024, %s519_s8, [#allocation15], %s4560_s23, %s4560_s23, %s4559_s11  }
  0xa5   : > { %s3811_s20 = smov [#allocation19]   ;;  %s3812_s24 = smov [#allocation20]  }
  0xa6   : > { %s550_s28 = sshll.u32 %s3811_s20, 4  ;;  %s566_s12 = sshll.u32 %s3812_s24, 4  ;;  %s551_s28 = int_to_ptr.vmem [resolvable:$true] %s550_s28  ;;  %s567_s12 = int_to_ptr.vmem [resolvable:$true] %s566_s12 }
  0xa7   : > { %s3612_s14 = scalar_lea.vmem %s551_s28, 1024  ;;  %p3620_p10 = scmp.lt.s32.totalorder %s551_s28, %s551_s28 }
  0xa8   : > { %p3613_p2 = scmp.ne.s32.totalorder %s551_s28, %s3612_s14  ;;  %p3621_p0 = scmp.lt.s32.totalorder %s3612_s14, %s3612_s14 }
  0xaa   : > { %p3615_p6 = pnand %p3613_p2, %p4556_p3  ;;  %p3622_p5 = por %p3621_p0, %p3620_p10 }
  0xac   : > { %p3616_p7 = pneg %p3615_p6 }
  0xae   : > { %p3623_p9 = pnand %p3622_p5, %p3616_p7 }
  0xb0   : > { %3626 = shalt.err (!%p3623_p9)
}
  0xb1   : > { %3216 = dma.hbm_to_vmem [thread:$0]  (!%p4557_p8), %s4492_s13, 1024, %s551_s28, [#allocation18], %s4560_s23, %s4560_s23, %s4559_s11  }
  0xb2   : > { %s3638_s29 = scalar_lea.vmem %s567_s12, 1024  ;;  %p3646_p2 = scmp.lt.s32.totalorder %s567_s12, %s567_s12 }
  0xb3   : > { %p3639_p13 = scmp.ne.s32.totalorder %s567_s12, %s3638_s29  ;;  %p3647_p6 = scmp.lt.s32.totalorder %s3638_s29, %s3638_s29 }
  0xb5   : > { %p3641_p4 = pnand %p3639_p13, %p4556_p3  ;;  %p3648_p7 = por %p3647_p6, %p3646_p2 }
  0xb7   : > { %p3642_p11 = pneg %p3641_p4 }
  0xb9   : > { %p3649_p10 = pnand %p3648_p7, %p3642_p11 }
  0xbb   : > { %3652 = shalt.err (!%p3649_p10)
}
  0xbc   : > { %3219 = dma.hbm_to_vmem [thread:$0]  (!%p4557_p8), %s4494_s15, 1024, %s567_s12, [#allocation21], %s4560_s23, %s4560_s23, %s4559_s11  }
  0xbd   : > { %s4561_s28 = sld [smem:[#allocation37_spill]]  ;;  %s587_s1 = scalar_lea.vmem [#allocation2], %s4030_s19 }
  0xbe   : > { %s594_s8 = sshll.u32 %s587_s1, 4  ;;  %s4144_s14 = scalar_lea.hbm %s4481_s2, %s4033_s17  ;;  %s4138_s8 = int_to_ptr.vmem [resolvable:$true] %s594_s8 }
  0xbf   : > { %s4562_s10 = sand.u32 1, %s3793_s26  }
  0xc0   : > { %s584_s4 = scalar_lea.sflag [#allocation3], %s4562_s10 }
  0xc3   : > { %s4135_s24 = scalar_lea.hbm %s4561_s28, %s4033_s17  ;;  %s3658_s22 = scalar_lea.hbm %s4561_s28, 512 }
  0xc4   : > { %s3653_s12 = scalar_lea.hbm %s4135_s24, 256  ;;  %p3659_p5 = scmp.lt.s32.totalorder %s4135_s24, %s4561_s28 }
  0xc5   : > { %p3654_p3 = scmp.ne.s32.totalorder %s4135_s24, %s3653_s12  ;;  %p3660_p9 = scmp.lt.s32.totalorder %s3658_s22, %s3653_s12 }
  0xc7   : > { %p3656_p8 = pnand %p3654_p3, %p4057_p1  ;;  %p3661_p13 = por %p3660_p9, %p3659_p5 }
  0xc9   : > { %p3657_p0 = pneg %p3656_p8 }
  0xcb   : > { %p3662_p4 = pnand %p3661_p13, %p3657_p0 }
  0xcd   : > { %3665 = shalt.err (!%p3662_p4)
}
  0xce   : > { %s3666_s17 = scalar_lea.vmem %s4138_s8, 256  ;;  %s3813_s18 = smov [#allocation2]  }
  0xcf   : > { %p3667_p11 = scmp.ne.s32.totalorder %s4138_s8, %s3666_s17  ;;  %s3671_s29 = sshll.u32 %s3813_s18, 4  ;;  %s3672_s29 = int_to_ptr.vmem [resolvable:$false] %s3671_s29 }
  0xd0   : > { %s3673_s10 = scalar_lea.vmem %s3672_s29, 512  ;;  %p3674_p7 = scmp.lt.s32.totalorder %s4138_s8, %s3672_s29 }
  0xd1   : > { %p3669_p2 = pnand %p3667_p11, %p4057_p1  ;;  %p3675_p10 = scmp.lt.s32.totalorder %s3673_s10, %s3666_s17 }
  0xd3   : > { %p3670_p6 = pneg %p3669_p2  ;;  %p3676_p3 = por %p3675_p10, %p3674_p7 }
  0xd5   : > { %p3677_p8 = pnand %p3676_p3, %p3670_p6 }
  0xd7   : > { %3680 = shalt.err (!%p3677_p8)
}
  0xd8   : > { %s4563_s12 = smov 8   ;;  %s4564_s11 = smov 128  }
  0xd9   : > { %3223 = dma.hbm_to_vmem [thread:$0]  (!%p4035_p12), %s4135_s24, 256, %s4138_s8, %s584_s4, %s4564_s11, %s4564_s11, %s4563_s12  }
  0xda   : > { %s629_s23 = scalar_lea.vmem [#allocation7], %s4030_s19  ;;  %s3681_s20 = scalar_lea.hbm %s4144_s14, 256 }
  0xdb   : > { %s636_s22 = sshll.u32 %s629_s23, 4  ;;  %p3682_p0 = scmp.ne.s32.totalorder %s4144_s14, %s3681_s20  ;;  %s637_s22 = int_to_ptr.vmem [resolvable:$true] %s636_s22 }
  0xdc   : > { %s3686_s18 = scalar_lea.hbm %s4481_s2, 512  ;;  %p3687_p13 = scmp.lt.s32.totalorder %s4144_s14, %s4481_s2 }
  0xdd   : > { %p3684_p5 = pnand %p3682_p0, %p4057_p1  ;;  %p3688_p4 = scmp.lt.s32.totalorder %s3686_s18, %s3681_s20 }
  0xdf   : > { %p3685_p9 = pneg %p3684_p5  ;;  %p3689_p11 = por %p3688_p4, %p3687_p13 }
  0xe1   : > { %p3690_p2 = pnand %p3689_p11, %p3685_p9 }
  0xe3   : > { %3693 = shalt.err (!%p3690_p2)
}
  0xe4   : > { %s3694_s4 = scalar_lea.vmem %s637_s22, 256  ;;  %s3814_s19 = smov [#allocation7]  }
  0xe5   : > { %p3695_p6 = scmp.ne.s32.totalorder %s637_s22, %s3694_s4  ;;  %s3699_s24 = sshll.u32 %s3814_s19, 4  ;;  %s3700_s24 = int_to_ptr.vmem [resolvable:$false] %s3699_s24 }
  0xe6   : > { %s3701_s8 = scalar_lea.vmem %s3700_s24, 512  ;;  %p3702_p3 = scmp.lt.s32.totalorder %s637_s22, %s3700_s24 }
  0xe7   : > { %p3697_p7 = pnand %p3695_p6, %p4057_p1  ;;  %p3703_p8 = scmp.lt.s32.totalorder %s3701_s8, %s3694_s4 }
  0xe9   : > { %p3698_p10 = pneg %p3697_p7  ;;  %p3704_p0 = por %p3703_p8, %p3702_p3 }
  0xeb   : > { %p3705_p5 = pnand %p3704_p0, %p3698_p10 }
  0xed   : > { %3708 = shalt.err (!%p3705_p5)
}
  0xee   : > { %3229 = dma.hbm_to_vmem [thread:$0]  (!%p4035_p12), %s4144_s14, 256, %s637_s22, %s4051_s16, %s4564_s11, %s4564_s11, %s4563_s12  }
  0xef   : > { %p4565_p1 = scmp.ne.s32.totalorder %s4538_s30, 0 }
  0xf0   : > { %s4195_s27 = sand.u32 (!%p4565_p1), 1, %s3789_s25   ;;  %p4566_p9 = scmp.ne.s32.totalorder (!%p4565_p1), %s4548_s3, 0 }
  0xf1   : > { %648 = sbr.rel (%p4565_p1) target bundleno = 2477 (0x9ad), region = 88  ;;  %s4198_s23 = sshll.u32 (!%p4565_p1), %s4195_s27, 4 }
  0xf2   : > { %s651_s20 = scalar_lea.sflag (!%p4565_p1), [#allocation3], %s4195_s27  ;;  %s654_s6 = scalar_lea.vmem (!%p4565_p1), [#allocation2], %s4198_s23 }
  0xf6   : > { %3752 = dma.done.wait (%p4566_p9), %s651_s20, 256  }
  0xf7   : > { %3754 = vsyncadd (%p4566_p9), %s651_s20, 4294967040  ;;  %s659_s16 = sand.u32 1, %s3931_s0   ;;  %s663_s14 = scalar_lea.vmem [#allocation5], %s4198_s23 }
  0xf8   : > { %s660_s30 = scalar_lea.sflag [#allocation6], %s659_s16 }
  0xf9   : > { %3756 = dma.done.wait (%p4566_p9), %s660_s30, 512  }
  0xfa   : > { %3758 = vsyncadd (%p4566_p9), %s660_s30, 4294966784  ;;  %s672_s12 = scalar_lea.vmem [#allocation7], %s4198_s23  ;;  %p4567_p12 = scmp.eq.s32.totalorder %s3931_s0, 0 }
  0xfc   : > { %3760 = dma.done.wait (%p4567_p12), [#allocation9], 256   ;;  %p4568_p13 = pmov %p4567_p12 }
  0xfd   : > { %p4569_p4 = pmov %p4567_p12 }
  0xfe   : > { %3762 = vsyncadd (%p4568_p13), [#allocation9], 4294967040 }
  0xff   : > { %3764 = dma.done.wait (%p4569_p4), [#allocation12], 1152   ;;  %p4570_p11 = pmov %p4569_p4 }
 0x100   : > { %p4571_p2 = pmov %p4569_p4 }
 0x101   : > { %3766 = vsyncadd (%p4570_p11), [#allocation12], 4294966144 }
 0x102   : > { %3768 = dma.done.wait (%p4571_p2), [#allocation15], 2048   ;;  %p4572_p6 = pmov %p4571_p2 }
 0x103   : > { %p4573_p7 = pmov %p4571_p2 }
 0x104   : > { %3770 = vsyncadd (%p4572_p6), [#allocation15], 4294965248 }
 0x105   : > { %3772 = dma.done.wait (%p4573_p7), [#allocation18], 2048   ;;  %p4574_p10 = pmov %p4571_p2 }
 0x106   : > { %p4575_p3 = pmov %p4571_p2 }
 0x107   : > { %3774 = vsyncadd (%p4574_p10), [#allocation18], 4294965248 }
 0x108   : > { %3776 = dma.done.wait (%p4575_p3), [#allocation21], 1024   ;;  %p4576_p8 = pmov %p4571_p2 }
 0x109   : > { %vm776_vm0 = vcmask 64512   ;;  %v774_v0 = vld [vmem:[%s654_s6] sm:$0xff]  ;;  %v775_v1 = vld [vmem:[%s654_s6 + $0x8] sm:$0xff]  ;;  %v3815_v4 = vmov 0.0   ;;  %vm3816_vm1 = vmmov 0   ;;  %v791_v5 = vlaneseq  ;;  %s4577_s17 = sld [smem:[#allocation44_spill]] }
 0x10a   : > { %3778 = vsyncadd (%p4576_p8), [#allocation21], 4294966272  ;;  %v777_v2 = vsel %vm776_vm0, %v774_v0, 0.0  ;;  %v780_v3 = vsel %vm776_vm0, %v775_v1, 0.0  ;;  %2940 = vmatprep.subr.mxu0 %v3815_v4  ;;  %2945 = vmatprep.subr.mxu1 %v3815_v4  ;;  %v810_v19 = vld [vmem:[#allocation8] sm:$0xff]  ;;  %vm1151_vm3 = vcmask 1043456  }
 0x10b   : > { %778 = vadd.xlane.f32.xlu0 %v777_v2  ;;  %2942 = vmatprep.mubr.msk.f32.mxu0 %vm3816_vm1, %v3815_v4  ;;  %v792_v9 = vshrl.u32 %v791_v5, 7  ;;  %v794_v10 = vand.u32 127, %v791_v5  ;;  %v811_v25 = vld [vmem:[%s4484_s5] sm:$0xff]  ;;  %v805_v62 = vld [vmem:[%s663_s14 + $0x8] sm:$0xff]  ;;  %s4578_s10 = sld [smem:[#allocation45_spill]]  ;;  %s768_s30 = scalar_lea.vmem [#allocation22], %s4198_s23 }
 0x10c   : > { %2947 = vmatprep.mubr.msk.f32.mxu1 %vm3816_vm1, %v3815_v4  ;;  %v804_v59 = vld [vmem:[%s663_s14] sm:$0xff]  ;;  %v1147_v63 = vpack.c.bf16 %v805_v62, %v805_v62  ;;  %s4579_s24 = sld [smem:[#allocation46_spill]]  ;;  %s2539_s14 = sshll.u32 %s768_s30, 4  ;;  %s4431_s14 = int_to_ptr.vmem [resolvable:$true] %s2539_s14 }
 0x10d   : > { %vm795_vm2 = vcmp.eq.s32.totalorder %v792_v9, %v794_v10  ;;  %v1146_v60 = vpack.c.bf16 %v804_v59, %v804_v59  ;;  %v807_v9 = vld [vmem:[%s672_s12 + $0x8] sm:$0xff]  ;;  %s4580_s6 = sld [smem:[#allocation47_spill]]  ;;  %s2526_s23 = scalar_lea.sflag [#allocation4], %s4195_s27 }
 0x10e   : > { %v2776_v14 = vsel %vm795_vm2, 1.0, %v3815_v4  ;;  %s4581_s16 = sld [smem:[#allocation35_spill]] }
 0x10f   : > { %781 = vadd.xlane.f32.xlu0 %v780_v3  ;;  %v798_v15 = vadd.f32 %v2776_v14, %v774_v0  ;;  %v799_v20 = vadd.f32 %v2776_v14, %v775_v1  ;;  %v1153_v61 = vsel %vm1151_vm3, %v1146_v60, 0  ;;  %s4582_s22 = sld [smem:[#allocation48_spill]] }
 0x114   : > { %p4583_p5 = scmp.ne.s32.totalorder %s4581_s16, 0 }
 0x194   : > { %v779_v6 = vpop.xlane.xlu0 %778 }
 0x195   : > { %v783_v7 = vadd.f32 1.0, %v779_v6  ;;  %v787_v8 = vadd.f32 1e-12, %v779_v6  ;;  %v806_v6 = vld [vmem:[%s672_s12] sm:$0xff]  ;;  %s2853_s12 = sshll.u32 %s3931_s0, 8  ;;  %s3817_s0 = smov [#allocation22]  }
 0x196   : > { %s4436_s1 = scalar_lea.hbm %s4582_s22, %s2853_s12  ;;  %s3713_s18 = sshll.u32 %s3817_s0, 4  ;;  %s3714_s18 = int_to_ptr.vmem [resolvable:$false] %s3713_s18 }
 0x197   : > { %3351 = vrcp.f32 %v783_v7  ;;  %v808_v7 = vpack.c.bf16 %v806_v6, %v806_v6  ;;  %s3715_s29 = scalar_lea.vmem %s3714_s18, 512  ;;  %p3716_p12 = scmp.lt.s32.totalorder %s4431_s14, %s3714_s18 }
 0x198   : > { %3353 = vrcp.f32 %v787_v8  ;;  %v782_v11 = vpop.xlane.xlu0 %781 }
 0x199   : > { %v784_v12 = vadd.f32 1.0, %v782_v11  ;;  %v788_v13 = vadd.f32 1e-12, %v782_v11 }
 0x19b   : > { %3355 = vrcp.f32 %v784_v12  ;;  %v4294_v12 = vsel %vm1151_vm3, %v808_v7, 0 }
 0x19c   : > { %3357 = vrcp.f32 %v788_v13  ;;  %v809_v13 = vpack.c.bf16 %v807_v9, %v807_v9 }
 0x1a4   : > { %v3352_v16 = vpop.eup %3351 }
 0x1a5   : > { %v3354_v17 = vpop.eup %3353  ;;  %v4242_v18 = vmul.f32 %v3352_v16, %v798_v15 }
 0x1a6   : > { %v4245_v21 = vmul.f32 %v3354_v17, %v774_v0  ;;  %v1199_v0 = vsel %vm1151_vm3, %v1147_v63, 0 }
 0x1a7   : > { %2941 = vmatpush3.msra.mxu0 %v4242_v18 }
 0x1a8   : > { %v3356_v22 = vpop.eup %3355  ;;  %2943 = vmatmul.mubr.msk.f32.vlgmr.msra.gmra.mxu0 %vm776_vm0, %v810_v19  ;;  %2950 = vmatprep.subr.mxu0 %v3815_v4 }
 0x1a9   : > { %v3358_v23 = vpop.eup %3357  ;;  %2951 = vmatpush3.msra.mxu0 %v4245_v21  ;;  %v4250_v24 = vmul.f32 %v3356_v22, %v799_v20  ;;  %2952 = vmatprep.mubr.msk.f32.mxu0 %vm3816_vm1, %v3815_v4 }
 0x1aa   : > { %2960 = vmatprep.subr.bf16.mxu0 %v3815_v4  ;;  %v4261_v26 = vmul.f32 %v3358_v23, %v775_v1  ;;  %v3305_v23 = vld [vmem:[#allocation16 + $0x38] sm:$0xff]  }
 0x1ab   : > { %2946 = vmatpush3.msra.mxu1 %v4250_v24 }
 0x1ac   : > { %2948 = vmatmul.mubr.msk.f32.vlgmr.msra.gmra.mxu1 %vm776_vm0, %v810_v19  ;;  %2953 = vmatmul.mubr.msk.f32.vlgmr.msra.gmra.mxu0 %vm776_vm0, %v811_v25  ;;  %v4301_v19 = vsel %vm1151_vm3, %v809_v13, 0 }
 0x1ad   : > { %2955 = vmatprep.subr.mxu1 %v3815_v4  ;;  %2957 = vmatprep.mubr.msk.f32.mxu1 %vm3816_vm1, %v3815_v4 }
 0x1ae   : > { %2956 = vmatpush3.msra.mxu1 %v4261_v26  ;;  %2962 = vmatprep.mubr.msk.bf16.mxu0 %vm3816_vm1, %v3815_v4 }
 0x1af   : > { %2966 = vmatprep.subr.bf16.mxu1 %v3815_v4  ;;  %2961 = vmatpush3.bf16.msra.mxu0 %v1153_v61  ;;  %v1557_v61 = vld [vmem:[#allocation11] sm:$0xff] }
 0x1b0   : > { %2958 = vmatmul.mubr.msk.f32.vlgmr.msra.gmra.mxu1 %vm776_vm0, %v811_v25  ;;  %2972 = vmatprep.subr.bf16.mxu0 %v3815_v4 }
 0x1b1   : > { %2968 = vmatprep.mubr.msk.bf16.mxu1 %vm3816_vm1, %v3815_v4  ;;  %2967 = vmatpush3.bf16.msra.mxu1 %v1199_v0 }
 0x1b2   : > { %2978 = vmatprep.subr.bf16.mxu1 %v3815_v4 }
 0x268   : > { %v881_v27 = vpop.f32.mrf.mxu0 }
 0x269   : > { %v1098_v28 = vsel %vm776_vm0, %v881_v27, -inf }
 0x26a   : > { %1099 = vmax.xlane.f32.xlu1 %v1098_v28  ;;  %v2944_v29 = vpop.f32.mrf.mxu0  ;;  %v3303_v28 = vld [vmem:[#allocation13 + $0x38] sm:$0xff]  }
 0x26b   : > { %v3307_v29 = vld [vmem:[#allocation16 + $0x30] sm:$0xff]  }
 0x26c   : > { %v951_v30 = vpop.f32.mrf.mxu1  ;;  %v1024_v31 = vpop.f32.mrf.mxu0 }
 0x26d   : > { %v1122_v32 = vsel %vm776_vm0, %v1024_v31, -inf  ;;  %v1101_v33 = vsel %vm776_vm0, %v951_v30, -inf }
 0x26e   : > { %1123 = vmax.xlane.f32.xlu0 %v1122_v32  ;;  %1102 = vmax.xlane.f32.xlu1 %v1101_v33  ;;  %v2949_v34 = vpop.f32.mrf.mxu1  ;;  %v2954_v35 = vpop.f32.mrf.mxu0  ;;  %v3309_v32 = vld [vmem:[#allocation16 + $0x28] sm:$0xff]  }
 0x26f   : > { %v3306_v33 = vld [vmem:[#allocation13 + $0x28] sm:$0xff]   ;;  %v3311_v34 = vld [vmem:[#allocation16 + $0x20] sm:$0xff]  }
 0x270   : > { %v1094_v36 = vpop.f32.mrf.mxu1  ;;  %v3308_v35 = vld [vmem:[#allocation13 + $0x20] sm:$0xff]  }
 0x271   : > { %v1125_v37 = vsel %vm776_vm0, %v1094_v36, -inf }
 0x272   : > { %1126 = vmax.xlane.f32.xlu1 %v1125_v37  ;;  %v2959_v38 = vpop.f32.mrf.mxu1  ;;  %v3310_v37 = vld [vmem:[#allocation13 + $0x18] sm:$0xff]  }
 0x273   : > { %v3312_v38 = vld [vmem:[#allocation13 + $0x10] sm:$0xff]  }
 0x2f3   : > { %v1100_v39 = vpop.xlane.xlu1 %1099 }
 0x2f4   : > { %v1104_v40 = vsub.f32 %v881_v27, %v1100_v39  ;;  %v3314_v39 = vld [vmem:[#allocation13 + $0x8] sm:$0xff]  }
 0x2f6   : > { %v1106_v41 = vmul.f32 1.442695, %v1104_v40  ;;  %v3315_v40 = vld [vmem:[#allocation16 + $0x10] sm:$0xff]  }
 0x2f7   : > { %v1103_v42 = vpop.xlane.xlu1 %1102  ;;  %v1124_v43 = vpop.xlane.xlu0 %1123 }
 0x2f8   : > { %3359 = vpow2.f32 %v1106_v41  ;;  %v1105_v44 = vsub.f32 %v951_v30, %v1103_v42  ;;  %v1128_v45 = vsub.f32 %v1024_v31, %v1124_v43  ;;  %v3304_v31 = vld [vmem:[#allocation13 + $0x30] sm:$0xff]   ;;  %v3316_v41 = vld [vmem:[#allocation13] sm:$0xff]   ;;  %v3317_v42 = vld [vmem:[#allocation16 + $0x8] sm:$0xff]  }
 0x2f9   : > { %v3318_v43 = vld [vmem:[#allocation16] sm:$0xff]  }
 0x2fa   : > { %v1108_v46 = vmul.f32 1.442695, %v1105_v44  ;;  %v1130_v47 = vmul.f32 1.442695, %v1128_v45 }
 0x2fb   : > { %v1127_v48 = vpop.xlane.xlu1 %1126 }
 0x2fc   : > { %3361 = vpow2.f32 %v1108_v46  ;;  %v1129_v49 = vsub.f32 %v1094_v36, %v1127_v48  ;;  %v3313_v36 = vld [vmem:[#allocation16 + $0x18] sm:$0xff]  }
 0x2fd   : > { %3363 = vpow2.f32 %v1130_v47 }
 0x2fe   : > { %v1132_v50 = vmul.f32 1.442695, %v1129_v49 }
 0x300   : > { %3365 = vpow2.f32 %v1132_v50 }
 0x305   : > { %v3360_v51 = vpop.eup %3359 }
 0x306   : > { %v1110_v52 = vsel %vm776_vm0, %v3360_v51, 0.0 }
 0x307   : > { %1111 = vadd.xlane.f32.xlu0 %v1110_v52 }
 0x309   : > { %v3362_v53 = vpop.eup %3361 }
 0x30a   : > { %v3364_v54 = vpop.eup %3363  ;;  %v1113_v55 = vsel %vm776_vm0, %v3362_v53, 0.0 }
 0x30b   : > { %1114 = vadd.xlane.f32.xlu1 %v1113_v55  ;;  %v1134_v56 = vsel %vm776_vm0, %v3364_v54, 0.0 }
 0x30c   : > { %1135 = vadd.xlane.f32.xlu0 %v1134_v56 }
 0x30d   : > { %v3366_v57 = vpop.eup %3365 }
 0x30e   : > { %v1137_v58 = vsel %vm776_vm0, %v3366_v57, 0.0 }
 0x30f   : > { %1138 = vadd.xlane.f32.xlu1 %v1137_v58 }
 0x390   : > { %v1112_v1 = vpop.xlane.xlu0 %1111 }
 0x391   : > { %3367 = vrcp.f32 %v1112_v1 }
 0x394   : > { %v1115_v2 = vpop.xlane.xlu1 %1114 }
 0x395   : > { %3369 = vrcp.f32 %v1115_v2  ;;  %v1136_v3 = vpop.xlane.xlu0 %1135  ;;  %v2801_v2 = vld [vmem:[%s4577_s17] ss:$0 sm:$0xff]  ;;  %s3709_s17 = scalar_lea.vmem %s4431_s14, 256 }
 0x396   : > { %3371 = vrcp.f32 %v1136_v3  ;;  %p3710_p0 = scmp.ne.s32.totalorder %s4431_s14, %s3709_s17  ;;  %p3717_p13 = scmp.lt.s32.totalorder %s3715_s29, %s3709_s17 }
 0x398   : > { %v1139_v5 = vpop.xlane.xlu1 %1138  ;;  %p3711_p1 = pnand %p3710_p0, %p4583_p5  ;;  %p3718_p4 = por %p3717_p13, %p3716_p12 }
 0x399   : > { %3373 = vrcp.f32 %v1139_v5 }
 0x39a   : > { %p3712_p9 = pneg %p3711_p1 }
 0x39c   : > { %p3719_p11 = pnand %p3718_p4, %p3712_p9 }
 0x39e   : > { %v3368_v8 = vpop.eup %3367 }
 0x39f   : > { %v1118_v10 = vmul.f32 %v3368_v8, %v3360_v51 }
 0x3a1   : > { %v1120_v11 = vpack.c.bf16 %v1118_v10, %v1118_v10 }
 0x3a2   : > { %v3370_v14 = vpop.eup %3369 }
 0x3a3   : > { %v3372_v15 = vpop.eup %3371  ;;  %2963 = vmatmul.mubr.msk.bf16.vlgmr.msra.gmra.mxu0 %vm776_vm0, %v1120_v11  ;;  %v1119_v16 = vmul.f32 %v3370_v14, %v3362_v53 }
 0x3a4   : > { %2973 = vmatpush3.bf16.msra.mxu0 %v4294_v12  ;;  %2974 = vmatprep.mubr.msk.bf16.mxu0 %vm3816_vm1, %v3815_v4  ;;  %v1142_v20 = vmul.f32 %v3372_v15, %v3364_v54 }
 0x3a5   : > { %v1121_v17 = vpack.c.bf16 %v1119_v16, %v1119_v16  ;;  %2984 = vmatprep.subr.bf16.mxu0 %v3815_v4 }
 0x3a6   : > { %v3374_v22 = vpop.eup %3373  ;;  %v1144_v25 = vpack.c.bf16 %v1142_v20, %v1142_v20 }
 0x3a7   : > { %2969 = vmatmul.mubr.msk.bf16.vlgmr.msra.gmra.mxu1 %vm776_vm0, %v1121_v17  ;;  %v1143_v27 = vmul.f32 %v3374_v22, %v3366_v57  ;;  %v1556_v57 = vld [vmem:[#allocation10] sm:$0xff] }
 0x3a8   : > { %2979 = vmatpush3.bf16.msra.mxu1 %v4301_v19  ;;  %2980 = vmatprep.mubr.msk.bf16.mxu1 %vm3816_vm1, %v3815_v4 }
 0x3a9   : > { %3004 = vmatprep.subr.bf16.mxu1 %v3815_v4  ;;  %v1145_v30 = vpack.c.bf16 %v1143_v27, %v1143_v27 }
 0x3ab   : > { %2975 = vmatmul.mubr.msk.bf16.vlgmr.msra.gmra.mxu0 %vm776_vm0, %v1144_v25 }
 0x3ac   : > { %2985 = vmatpush3.bf16.msra.mxu0 %v3305_v23  ;;  %3000 = vmatprep.mubr.msk.bf16.mxu0 %vm3816_vm1, %v3815_v4 }
 0x3ad   : > { %2986 = vmatprep.subr.bf16.mxu0 %v3815_v4 }
 0x3af   : > { %2981 = vmatmul.mubr.msk.bf16.vlgmr.msra.gmra.mxu1 %vm776_vm0, %v1145_v30 }
 0x3b0   : > { %3005 = vmatpush3.bf16.msra.mxu1 %v3303_v28  ;;  %2987 = vmatpush3.bf16.msra.mxu0 %v3307_v29 }
 0x3b1   : > { %3006 = vmatprep.subr.bf16.mxu1 %v3815_v4  ;;  %2988 = vmatprep.subr.bf16.mxu0 %v3815_v4 }
 0x3b2   : > { %3020 = vmatprep.mubr.msk.bf16.mxu1 %vm3816_vm1, %v3815_v4 }
 0x3b4   : > { %3007 = vmatpush3.bf16.msra.mxu1 %v3304_v31  ;;  %2989 = vmatpush3.bf16.msra.mxu0 %v3309_v32 }
 0x3b5   : > { %3008 = vmatprep.subr.bf16.mxu1 %v3815_v4  ;;  %2990 = vmatprep.subr.bf16.mxu0 %v3815_v4 }
 0x3b8   : > { %3009 = vmatpush3.bf16.msra.mxu1 %v3306_v33  ;;  %2991 = vmatpush3.bf16.msra.mxu0 %v3311_v34 }
 0x3b9   : > { %3010 = vmatprep.subr.bf16.mxu1 %v3815_v4  ;;  %2992 = vmatprep.subr.bf16.mxu0 %v3815_v4 }
 0x3bc   : > { %3011 = vmatpush3.bf16.msra.mxu1 %v3308_v35  ;;  %2993 = vmatpush3.bf16.msra.mxu0 %v3313_v36 }
 0x3bd   : > { %3012 = vmatprep.subr.bf16.mxu1 %v3815_v4  ;;  %2994 = vmatprep.subr.bf16.mxu0 %v3815_v4 }
 0x3c0   : > { %3013 = vmatpush3.bf16.msra.mxu1 %v3310_v37  ;;  %2995 = vmatpush3.bf16.msra.mxu0 %v3315_v40 }
 0x3c1   : > { %3014 = vmatprep.subr.bf16.mxu1 %v3815_v4  ;;  %2996 = vmatprep.subr.bf16.mxu0 %v3815_v4 }
 0x3c4   : > { %3015 = vmatpush3.bf16.msra.mxu1 %v3312_v38  ;;  %2997 = vmatpush3.bf16.msra.mxu0 %v3317_v42 }
 0x3c5   : > { %3016 = vmatprep.subr.bf16.mxu1 %v3815_v4  ;;  %2998 = vmatprep.subr.bf16.mxu0 %v3815_v4 }
 0x3c8   : > { %3017 = vmatpush3.bf16.msra.mxu1 %v3314_v39  ;;  %2999 = vmatpush3.bf16.msra.mxu0 %v3318_v43 }
 0x3c9   : > { %3018 = vmatprep.subr.bf16.mxu1 %v3815_v4  ;;  %3024 = vmatprep.subr.mxu0 %v3815_v4 }
 0x3cc   : > { %3019 = vmatpush3.bf16.msra.mxu1 %v3316_v41 }
 0x3cd   : > { %3029 = vmatprep.subr.mxu1 %v3815_v4 }
 0x463   : > { %v1189_v44 = vpop.f32.mrf.mxu0 }
 0x465   : > { %v2964_v45 = vpop.f32.mrf.mxu0 }
 0x467   : > { %v1192_v46 = vpop.f32.mrf.mxu0  ;;  %v1235_v47 = vpop.f32.mrf.mxu1 }
 0x468   : > { %v1333_v48 = vpack.c.bf16 %v1235_v47, %v1189_v44 }
 0x469   : > { %v2965_v49 = vpop.f32.mrf.mxu0  ;;  %v2970_v50 = vpop.f32.mrf.mxu1 }
 0x46a   : > { %3021 = vmatmul.mubr.bf16.vlgmr.msra.gmra.mxu1 %v1333_v48 }
 0x46b   : > { %3030 = vmatpush3.msra.mxu1 %v4250_v24  ;;  %v1238_v51 = vpop.f32.mrf.mxu1  ;;  %v1281_v52 = vpop.f32.mrf.mxu0  ;;  %3031 = vmatprep.mubr.msk.f32.mxu1 %vm3816_vm1, %v3815_v4 }
 0x46c   : > { %3039 = vmatprep.subr.mxu1 %v3815_v4 }
 0x46d   : > { %v2971_v53 = vpop.f32.mrf.mxu1  ;;  %v2976_v54 = vpop.f32.mrf.mxu0 }
 0x46f   : > { %v1284_v55 = vpop.f32.mrf.mxu0  ;;  %v1327_v56 = vpop.f32.mrf.mxu1 }
 0x470   : > { %v1350_v58 = vpack.c.bf16 %v1327_v56, %v1281_v52 }
 0x471   : > { %v2977_v59 = vpop.f32.mrf.mxu0  ;;  %v2982_v60 = vpop.f32.mrf.mxu1 }
 0x472   : > { %3001 = vmatmul.mubr.bf16.vlgmr.msra.gmra.mxu0 %v1350_v58  ;;  %3032 = vmatmul.mubr.msk.f32.vlgmr.msra.gmra.mxu1 %vm776_vm0, %v1556_v57 }
 0x473   : > { %3025 = vmatpush3.msra.mxu0 %v4242_v18  ;;  %3040 = vmatpush3.msra.mxu1 %v4261_v26  ;;  %v1330_v24 = vpop.f32.mrf.mxu1 }
 0x474   : > { %3041 = vmatprep.mubr.msk.f32.mxu1 %vm3816_vm1, %v3815_v4  ;;  %3026 = vmatprep.mubr.msk.f32.mxu0 %vm3816_vm1, %v3815_v4 }
 0x475   : > { %v2983_v62 = vpop.f32.mrf.mxu1  ;;  %3034 = vmatprep.subr.mxu0 %v3815_v4  ;;  %3050 = vmatprep.subr.bf16.mxu1 %v3815_v4 }
 0x476   : > { %3042 = vmatmul.mubr.msk.f32.vlgmr.msra.gmra.mxu1 %vm776_vm0, %v1557_v61 }
 0x477   : > { %3052 = vmatprep.mubr.msk.bf16.mxu1 %vm3816_vm1, %v3815_v4 }
 0x47a   : > { %3027 = vmatmul.mubr.msk.f32.vlgmr.msra.gmra.mxu0 %vm776_vm0, %v1556_v57 }
 0x47b   : > { %3035 = vmatpush3.msra.mxu0 %v4245_v21  ;;  %3036 = vmatprep.mubr.msk.f32.mxu0 %vm3816_vm1, %v3815_v4 }
 0x47c   : > { %3044 = vmatprep.subr.bf16.mxu0 %v3815_v4 }
 0x47e   : > { %3037 = vmatmul.mubr.msk.f32.vlgmr.msra.gmra.mxu0 %vm776_vm0, %v1557_v61 }
 0x47f   : > { %3046 = vmatprep.mubr.msk.bf16.mxu0 %vm3816_vm1, %v3815_v4 }
 0x52a   : > { %v1538_v18 = vpop.f32.mrf.mxu1 }
 0x52c   : > { %v3022_v26 = vpop.f32.mrf.mxu1 }
 0x52e   : > { %v1541_v63 = vpop.f32.mrf.mxu1 }
 0x530   : > { %v3023_v0 = vpop.f32.mrf.mxu1 }
 0x531   : > { %v3319_v0 = vld [vmem:[#allocation14 + $0x38] sm:$0xff]  }
 0x532   : > { %v1449_v1 = vpop.f32.mrf.mxu0  ;;  %v1697_v21 = vpop.f32.mrf.mxu1 }
 0x533   : > { %v1539_v3 = vadd.f32 %v1538_v18, %v1449_v1  ;;  %v1847_v5 = vsel %vm776_vm0, %v1697_v21, -inf }
 0x534   : > { %1848 = vmax.xlane.f32.xlu1 %v1847_v5  ;;  %v3002_v6 = vpop.f32.mrf.mxu0  ;;  %v3033_v7 = vpop.f32.mrf.mxu1  ;;  %v3322_v5 = vld [vmem:[#allocation14 + $0x28] sm:$0xff]  }
 0x535   : > { %v1552_v8 = vadd.f32 %v2801_v2, %v1539_v3  ;;  %v3324_v6 = vld [vmem:[#allocation14 + $0x20] sm:$0xff]   ;;  %v3325_v7 = vld [vmem:[#allocation17 + $0x28] sm:$0xff]  }
 0x536   : > { %v1452_v9 = vpop.f32.mrf.mxu0  ;;  %v1840_v10 = vpop.f32.mrf.mxu1 }
 0x537   : > { %v1554_v11 = vmax.f32 %v1552_v8, 0.0  ;;  %v1542_v13 = vadd.f32 %v1541_v63, %v1452_v9  ;;  %v1871_v14 = vsel %vm776_vm0, %v1840_v10, -inf  ;;  %v3326_v8 = vld [vmem:[#allocation14 + $0x18] sm:$0xff]   ;;  %v3327_v9 = vld [vmem:[#allocation17 + $0x20] sm:$0xff]  }
 0x538   : > { %1872 = vmax.xlane.f32.xlu1 %v1871_v14  ;;  %v3003_v15 = vpop.f32.mrf.mxu0  ;;  %v3043_v16 = vpop.f32.mrf.mxu1  ;;  %v3331_v14 = vld [vmem:[#allocation17 + $0x10] sm:$0xff]  }
 0x539   : > { %v1892_v17 = vpack.c.bf16 %v1554_v11, %v1554_v11  ;;  %v1553_v20 = vadd.f32 %v2801_v2, %v1542_v13  ;;  %v3320_v2 = vld [vmem:[#allocation14 + $0x30] sm:$0xff]   ;;  %v3329_v11 = vld [vmem:[#allocation17 + $0x18] sm:$0xff]   ;;  %v3330_v13 = vld [vmem:[#allocation14 + $0x8] sm:$0xff]  }
 0x53a   : > { %v1627_v22 = vpop.f32.mrf.mxu0  ;;  %v3332_v15 = vld [vmem:[#allocation14] sm:$0xff]   ;;  %v3333_v16 = vld [vmem:[#allocation17 + $0x8] sm:$0xff]  }
 0x53b   : > { %v1555_v23 = vmax.f32 %v1553_v20, 0.0  ;;  %v1898_v25 = vsel %vm1151_vm3, %v1892_v17, 0  ;;  %v1844_v27 = vsel %vm776_vm0, %v1627_v22, -inf  ;;  %v3334_v17 = vld [vmem:[#allocation17] sm:$0xff]  }
 0x53c   : > { %3045 = vmatpush3.bf16.msra.mxu0 %v1898_v25  ;;  %1845 = vmax.xlane.f32.xlu0 %v1844_v27  ;;  %v3028_v28 = vpop.f32.mrf.mxu0 }
 0x53d   : > { %v1893_v29 = vpack.c.bf16 %v1555_v23, %v1555_v23  ;;  %3056 = vmatprep.subr.bf16.mxu0 %v3815_v4 }
 0x53e   : > { %v1770_v30 = vpop.f32.mrf.mxu0 }
 0x53f   : > { %v1944_v31 = vsel %vm1151_vm3, %v1893_v29, 0  ;;  %v1868_v32 = vsel %vm776_vm0, %v1770_v30, -inf }
 0x540   : > { %3051 = vmatpush3.bf16.msra.mxu1 %v1944_v31  ;;  %1869 = vmax.xlane.f32.xlu0 %v1868_v32  ;;  %v3038_v33 = vpop.f32.mrf.mxu0 }
 0x541   : > { %3062 = vmatprep.subr.bf16.mxu1 %v3815_v4 }
 0x5bd   : > { %v1849_v34 = vpop.xlane.xlu1 %1848 }
 0x5be   : > { %v1851_v35 = vsub.f32 %v1697_v21, %v1849_v34  ;;  %v3321_v21 = vld [vmem:[#allocation17 + $0x38] sm:$0xff]  }
 0x5c0   : > { %v1854_v36 = vmul.f32 1.442695, %v1851_v35 }
 0x5c1   : > { %v1873_v37 = vpop.xlane.xlu1 %1872 }
 0x5c2   : > { %3375 = vpow2.f32 %v1854_v36  ;;  %v1875_v38 = vsub.f32 %v1840_v10, %v1873_v37  ;;  %v3328_v10 = vld [vmem:[#allocation14 + $0x10] sm:$0xff]   ;;  %v3335_v37 = vld [vmem:[#allocation19 + $0x38] sm:$0xff]  }
 0x5c4   : > { %v1878_v39 = vmul.f32 1.442695, %v1875_v38 }
 0x5c5   : > { %v1846_v40 = vpop.xlane.xlu0 %1845 }
 0x5c6   : > { %3377 = vpow2.f32 %v1878_v39  ;;  %v1850_v41 = vsub.f32 %v1627_v22, %v1846_v40 }
 0x5c8   : > { %v1852_v42 = vmul.f32 1.442695, %v1850_v41  ;;  %v3336_v41 = vld [vmem:[#allocation19 + $0x30] sm:$0xff]  }
 0x5c9   : > { %v1870_v43 = vpop.xlane.xlu0 %1869 }
 0x5ca   : > { %3379 = vpow2.f32 %v1852_v42  ;;  %v1874_v44 = vsub.f32 %v1770_v30, %v1870_v43  ;;  %v3337_v43 = vld [vmem:[#allocation19 + $0x28] sm:$0xff]  }
 0x5cc   : > { %v1876_v45 = vmul.f32 1.442695, %v1874_v44  ;;  %v3338_v44 = vld [vmem:[#allocation19 + $0x20] sm:$0xff]  }
 0x5ce   : > { %3381 = vpow2.f32 %v1876_v45  ;;  %v3339_v45 = vld [vmem:[#allocation19 + $0x18] sm:$0xff]  }
 0x5cf   : > { %v3376_v46 = vpop.eup %3375 }
 0x5d0   : > { %v1859_v47 = vsel %vm776_vm0, %v3376_v46, 0.0 }
 0x5d1   : > { %1860 = vadd.xlane.f32.xlu1 %v1859_v47  ;;  %v3341_v47 = vld [vmem:[#allocation19 + $0x8] sm:$0xff]  }
 0x5d3   : > { %v3378_v48 = vpop.eup %3377 }
 0x5d4   : > { %v1883_v49 = vsel %vm776_vm0, %v3378_v48, 0.0 }
 0x5d5   : > { %1884 = vadd.xlane.f32.xlu1 %v1883_v49  ;;  %v3343_v49 = vld [vmem:[#allocation20 + $0x38] sm:$0xff]  }
 0x5d7   : > { %v3380_v50 = vpop.eup %3379 }
 0x5d8   : > { %v1856_v51 = vsel %vm776_vm0, %v3380_v50, 0.0 }
 0x5d9   : > { %1857 = vadd.xlane.f32.xlu0 %v1856_v51  ;;  %v3345_v51 = vld [vmem:[#allocation20 + $0x28] sm:$0xff]  }
 0x5db   : > { %v3382_v52 = vpop.eup %3381 }
 0x5dc   : > { %v1880_v53 = vsel %vm776_vm0, %v3382_v52, 0.0 }
 0x5dd   : > { %1881 = vadd.xlane.f32.xlu0 %v1880_v53  ;;  %v3347_v53 = vld [vmem:[#allocation20 + $0x18] sm:$0xff]  }
 0x65a   : > { %v1861_v54 = vpop.xlane.xlu1 %1860 }
 0x65b   : > { %3383 = vrcp.f32 %v1861_v54 }
 0x65e   : > { %v1885_v55 = vpop.xlane.xlu1 %1884 }
 0x65f   : > { %3385 = vrcp.f32 %v1885_v55 }
 0x662   : > { %v1858_v56 = vpop.xlane.xlu0 %1857 }
 0x663   : > { %3387 = vrcp.f32 %v1858_v56 }
 0x666   : > { %v1882_v57 = vpop.xlane.xlu0 %1881 }
 0x667   : > { %3389 = vrcp.f32 %v1882_v57 }
 0x668   : > { %v3384_v58 = vpop.eup %3383 }
 0x669   : > { %v1865_v59 = vmul.f32 %v3384_v58, %v3376_v46  ;;  %v3340_v46 = vld [vmem:[#allocation19 + $0x10] sm:$0xff]  }
 0x66b   : > { %v1867_v60 = vpack.c.bf16 %v1865_v59, %v1865_v59 }
 0x66c   : > { %v3386_v24 = vpop.eup %3385 }
 0x66d   : > { %3053 = vmatmul.mubr.msk.bf16.vlgmr.msra.gmra.mxu1 %vm776_vm0, %v1867_v60  ;;  %v1889_v61 = vmul.f32 %v3386_v24, %v3378_v48  ;;  %v3342_v48 = vld [vmem:[#allocation19] sm:$0xff]   ;;  %v2826_v60 = vld [vmem:[%s4578_s10] ss:$0 sm:$0xff] }
 0x66e   : > { %3063 = vmatpush3.bf16.msra.mxu1 %v4301_v19  ;;  %3064 = vmatprep.mubr.msk.bf16.mxu1 %vm3816_vm1, %v3815_v4 }
 0x66f   : > { %3088 = vmatprep.subr.bf16.mxu1 %v3815_v4  ;;  %v1891_v63 = vpack.c.bf16 %v1889_v61, %v1889_v61 }
 0x670   : > { %v3388_v62 = vpop.eup %3387 }
 0x671   : > { %v1864_v18 = vmul.f32 %v3388_v62, %v3380_v50  ;;  %v3344_v50 = vld [vmem:[#allocation20 + $0x30] sm:$0xff]  }
 0x673   : > { %v1866_v26 = vpack.c.bf16 %v1864_v18, %v1864_v18 }
 0x674   : > { %v3390_v1 = vpop.eup %3389 }
 0x675   : > { %3047 = vmatmul.mubr.msk.bf16.vlgmr.msra.gmra.mxu0 %vm776_vm0, %v1866_v26  ;;  %3065 = vmatmul.mubr.msk.bf16.vlgmr.msra.gmra.mxu1 %vm776_vm0, %v1891_v63  ;;  %v1888_v19 = vmul.f32 %v3390_v1, %v3382_v52  ;;  %v3346_v52 = vld [vmem:[#allocation20 + $0x20] sm:$0xff]  }
 0x676   : > { %3057 = vmatpush3.bf16.msra.mxu0 %v4294_v12  ;;  %3058 = vmatprep.mubr.msk.bf16.mxu0 %vm3816_vm1, %v3815_v4  ;;  %v3323_v12 = vld [vmem:[#allocation17 + $0x30] sm:$0xff]  }
 0x677   : > { %3089 = vmatpush3.bf16.msra.mxu1 %v3319_v0  ;;  %3068 = vmatprep.subr.bf16.mxu0 %v3815_v4  ;;  %v1890_v3 = vpack.c.bf16 %v1888_v19, %v1888_v19 }
 0x678   : > { %3090 = vmatprep.subr.bf16.mxu1 %v3815_v4  ;;  %3104 = vmatprep.mubr.msk.bf16.mxu1 %vm3816_vm1, %v3815_v4 }
 0x67b   : > { %3091 = vmatpush3.bf16.msra.mxu1 %v3320_v2  ;;  %v3348_v2 = vld [vmem:[#allocation20 + $0x10] sm:$0xff]  }
 0x67c   : > { %3092 = vmatprep.subr.bf16.mxu1 %v3815_v4 }
 0x67d   : > { %3059 = vmatmul.mubr.msk.bf16.vlgmr.msra.gmra.mxu0 %vm776_vm0, %v1890_v3  ;;  %v3350_v3 = vld [vmem:[#allocation20] sm:$0xff]  }
 0x67e   : > { %3069 = vmatpush3.bf16.msra.mxu0 %v3321_v21  ;;  %3084 = vmatprep.mubr.msk.bf16.mxu0 %vm3816_vm1, %v3815_v4  ;;  %v3349_v21 = vld [vmem:[#allocation20 + $0x8] sm:$0xff]  }
 0x67f   : > { %3093 = vmatpush3.bf16.msra.mxu1 %v3322_v5  ;;  %3070 = vmatprep.subr.bf16.mxu0 %v3815_v4  ;;  %v2827_v5 = vld [vmem:[%s4579_s24] ss:$0 sm:$0xff] }
 0x680   : > { %3094 = vmatprep.subr.bf16.mxu1 %v3815_v4 }
 0x682   : > { %3071 = vmatpush3.bf16.msra.mxu0 %v3323_v12 }
 0x683   : > { %3095 = vmatpush3.bf16.msra.mxu1 %v3324_v6  ;;  %3072 = vmatprep.subr.bf16.mxu0 %v3815_v4 }
 0x684   : > { %3096 = vmatprep.subr.bf16.mxu1 %v3815_v4 }
 0x686   : > { %3073 = vmatpush3.bf16.msra.mxu0 %v3325_v7 }
 0x687   : > { %3097 = vmatpush3.bf16.msra.mxu1 %v3326_v8  ;;  %3074 = vmatprep.subr.bf16.mxu0 %v3815_v4 }
 0x688   : > { %3098 = vmatprep.subr.bf16.mxu1 %v3815_v4 }
 0x68a   : > { %3075 = vmatpush3.bf16.msra.mxu0 %v3327_v9 }
 0x68b   : > { %3099 = vmatpush3.bf16.msra.mxu1 %v3328_v10  ;;  %3076 = vmatprep.subr.bf16.mxu0 %v3815_v4 }
 0x68c   : > { %3100 = vmatprep.subr.bf16.mxu1 %v3815_v4 }
 0x68e   : > { %3077 = vmatpush3.bf16.msra.mxu0 %v3329_v11 }
 0x68f   : > { %3101 = vmatpush3.bf16.msra.mxu1 %v3330_v13  ;;  %3078 = vmatprep.subr.bf16.mxu0 %v3815_v4 }
 0x690   : > { %3102 = vmatprep.subr.bf16.mxu1 %v3815_v4 }
 0x692   : > { %3079 = vmatpush3.bf16.msra.mxu0 %v3331_v14 }
 0x693   : > { %3103 = vmatpush3.bf16.msra.mxu1 %v3332_v15  ;;  %3080 = vmatprep.subr.bf16.mxu0 %v3815_v4 }
 0x694   : > { %3128 = vmatprep.subr.bf16.mxu1 %v3815_v4 }
 0x696   : > { %3081 = vmatpush3.bf16.msra.mxu0 %v3333_v16 }
 0x697   : > { %3082 = vmatprep.subr.bf16.mxu0 %v3815_v4 }
 0x69a   : > { %3083 = vmatpush3.bf16.msra.mxu0 %v3334_v17 }
 0x69b   : > { %3108 = vmatprep.subr.bf16.mxu0 %v3815_v4 }
 0x72d   : > { %v1980_v20 = vpop.f32.mrf.mxu1 }
 0x72f   : > { %v3054_v22 = vpop.f32.mrf.mxu1 }
 0x731   : > { %v1983_v23 = vpop.f32.mrf.mxu1 }
 0x733   : > { %v3055_v25 = vpop.f32.mrf.mxu1 }
 0x735   : > { %v1934_v27 = vpop.f32.mrf.mxu0  ;;  %v2066_v28 = vpop.f32.mrf.mxu1 }
 0x736   : > { %v2072_v29 = vpack.c.bf16 %v1980_v20, %v1934_v27 }
 0x737   : > { %v3048_v30 = vpop.f32.mrf.mxu0  ;;  %v3066_v31 = vpop.f32.mrf.mxu1 }
 0x738   : > { %3105 = vmatmul.mubr.bf16.vlgmr.msra.gmra.mxu1 %v2072_v29 }
 0x739   : > { %v1937_v32 = vpop.f32.mrf.mxu0  ;;  %v2069_v33 = vpop.f32.mrf.mxu1  ;;  %3144 = vmatprep.mubr.msk.bf16.mxu1 %vm3816_vm1, %v3815_v4  ;;  %3129 = vmatpush3.bf16.msra.mxu1 %v3343_v49 }
 0x73a   : > { %3130 = vmatprep.subr.bf16.mxu1 %v3815_v4 }
 0x73b   : > { %v3049_v34 = vpop.f32.mrf.mxu0  ;;  %v3067_v35 = vpop.f32.mrf.mxu1 }
 0x73d   : > { %v2023_v36 = vpop.f32.mrf.mxu0  ;;  %3131 = vmatpush3.bf16.msra.mxu1 %v3344_v50 }
 0x73e   : > { %v2089_v38 = vpack.c.bf16 %v2066_v28, %v2023_v36  ;;  %3132 = vmatprep.subr.bf16.mxu1 %v3815_v4 }
 0x73f   : > { %v3060_v39 = vpop.f32.mrf.mxu0 }
 0x740   : > { %3085 = vmatmul.mubr.bf16.vlgmr.msra.gmra.mxu0 %v2089_v38 }
 0x741   : > { %v2026_v40 = vpop.f32.mrf.mxu0  ;;  %3109 = vmatpush3.bf16.msra.mxu0 %v3335_v37  ;;  %3124 = vmatprep.mubr.msk.bf16.mxu0 %vm3816_vm1, %v3815_v4 }
 0x742   : > { %3110 = vmatprep.subr.bf16.mxu0 %v3815_v4  ;;  %3133 = vmatpush3.bf16.msra.mxu1 %v3345_v51 }
 0x743   : > { %v3061_v42 = vpop.f32.mrf.mxu0  ;;  %3134 = vmatprep.subr.bf16.mxu1 %v3815_v4 }
 0x745   : > { %3111 = vmatpush3.bf16.msra.mxu0 %v3336_v41 }
 0x746   : > { %3112 = vmatprep.subr.bf16.mxu0 %v3815_v4  ;;  %3135 = vmatpush3.bf16.msra.mxu1 %v3346_v52 }
 0x747   : > { %3136 = vmatprep.subr.bf16.mxu1 %v3815_v4 }
 0x749   : > { %3113 = vmatpush3.bf16.msra.mxu0 %v3337_v43 }
 0x74a   : > { %3114 = vmatprep.subr.bf16.mxu0 %v3815_v4  ;;  %3137 = vmatpush3.bf16.msra.mxu1 %v3347_v53 }
 0x74b   : > { %3138 = vmatprep.subr.bf16.mxu1 %v3815_v4 }
 0x74d   : > { %3115 = vmatpush3.bf16.msra.mxu0 %v3338_v44 }
 0x74e   : > { %3116 = vmatprep.subr.bf16.mxu0 %v3815_v4  ;;  %3139 = vmatpush3.bf16.msra.mxu1 %v3348_v2 }
 0x74f   : > { %3140 = vmatprep.subr.bf16.mxu1 %v3815_v4 }
 0x751   : > { %3117 = vmatpush3.bf16.msra.mxu0 %v3339_v45 }
 0x752   : > { %3118 = vmatprep.subr.bf16.mxu0 %v3815_v4  ;;  %3141 = vmatpush3.bf16.msra.mxu1 %v3349_v21 }
 0x753   : > { %3142 = vmatprep.subr.bf16.mxu1 %v3815_v4 }
 0x755   : > { %3119 = vmatpush3.bf16.msra.mxu0 %v3340_v46 }
 0x756   : > { %3120 = vmatprep.subr.bf16.mxu0 %v3815_v4  ;;  %3143 = vmatpush3.bf16.msra.mxu1 %v3350_v3 }
 0x759   : > { %3121 = vmatpush3.bf16.msra.mxu0 %v3341_v47 }
 0x75a   : > { %3122 = vmatprep.subr.bf16.mxu0 %v3815_v4  ;;  %v2836_v4 = vld [vmem:[%s4580_s6] ss:$0 sm:$0xff] }
 0x75d   : > { %3123 = vmatpush3.bf16.msra.mxu0 %v3342_v48 }
 0x7f8   : > { %v2277_v54 = vpop.f32.mrf.mxu1 }
 0x7fa   : > { %v3106_v55 = vpop.f32.mrf.mxu1 }
 0x7fc   : > { %v2280_v56 = vpop.f32.mrf.mxu1 }
 0x7fe   : > { %v3107_v57 = vpop.f32.mrf.mxu1 }
 0x800   : > { %v2188_v58 = vpop.f32.mrf.mxu0 }
 0x801   : > { %v2278_v59 = vadd.f32 %v2277_v54, %v2188_v58 }
 0x802   : > { %v3086_v24 = vpop.f32.mrf.mxu0 }
 0x803   : > { %v2291_v62 = vadd.f32 %v2826_v60, %v2278_v59 }
 0x804   : > { %v2191_v61 = vpop.f32.mrf.mxu0 }
 0x805   : > { %v2281_v18 = vadd.f32 %v2280_v56, %v2191_v61  ;;  %v2293_v0 = vmax.f32 %v2291_v62, 0.0 }
 0x806   : > { %v3087_v26 = vpop.f32.mrf.mxu0 }
 0x807   : > { %v2292_v63 = vadd.f32 %v2826_v60, %v2281_v18 }
 0x809   : > { %v2294_v1 = vmax.f32 %v2292_v63, 0.0 }
 0x80b   : > { %v2295_v19 = vpack.c.bf16 %v2294_v1, %v2293_v0 }
 0x80d   : > { %3125 = vmatmul.mubr.bf16.vlgmr.msra.gmra.mxu0 %v2295_v19 }
 0x8cd   : > { %v2401_v12 = vpop.f32.mrf.mxu0 }
 0x8ce   : > { %v2402_v7 = vadd.f32 %v2827_v5, %v2401_v12 }
 0x8cf   : > { %v3126_v6 = vpop.f32.mrf.mxu0 }
 0x8d0   : > { %v2408_v11 = vmax.f32 %v2402_v7, 0.0 }
 0x8d1   : > { %v2404_v8 = vpop.f32.mrf.mxu0 }
 0x8d2   : > { %v2405_v9 = vadd.f32 %v2827_v5, %v2404_v8 }
 0x8d3   : > { %v3127_v10 = vpop.f32.mrf.mxu0 }
 0x8d4   : > { %v2409_v13 = vmax.f32 %v2405_v9, 0.0 }
 0x8d6   : > { %v2410_v14 = vpack.c.bf16 %v2409_v13, %v2408_v11 }
 0x8d8   : > { %3145 = vmatmul.mubr.bf16.vlgmr.msra.gmra.mxu1 %v2410_v14 }
 0x998   : > { %v2516_v15 = vpop.f32.mrf.mxu1 }
 0x999   : > { %v2517_v16 = vadd.f32 %v2836_v4, %v2516_v15 }
 0x99a   : > { %v3146_v17 = vpop.f32.mrf.mxu1 }
 0x99b   : > { %2523 = vst [vmem:[%s768_s30] sm:$0xff] %v2517_v16 }
 0x99c   : > { %v2519_v20 = vpop.f32.mrf.mxu1 }
 0x99d   : > { %v2520_v22 = vadd.f32 %v2836_v4, %v2519_v20 }
 0x99e   : > { %v3147_v23 = vpop.f32.mrf.mxu1 }
 0x99f   : > { %2524 = vst [vmem:[%s768_s30 + $0x8] sm:$0xff] %v2520_v22 }
 0x9a0   : > { %3722 = shalt.err (!%p3719_p11)
}
 0x9a1   : > { %s3723_s10 = scalar_lea.hbm %s4436_s1, 256  ;;  %s3727_s24 = scalar_lea.hbm %s4582_s22, 512 }
 0x9a2   : > { %p3724_p2 = scmp.ne.s32.totalorder %s4436_s1, %s3723_s10  ;;  %p3728_p10 = scmp.lt.s32.totalorder %s4436_s1, %s4582_s22 }
 0x9a3   : > { %p3729_p3 = scmp.lt.s32.totalorder %s3727_s24, %s3723_s10 }
 0x9a4   : > { %p3725_p6 = pnand %p3724_p2, %p4583_p5 }
 0x9a5   : > { %p3730_p8 = por %p3729_p3, %p3728_p10 }
 0x9a6   : > { %p3726_p7 = pneg %p3725_p6 }
 0x9a8   : > { %p3731_p0 = pnand %p3730_p8, %p3726_p7 }
 0x9aa   : > { %3734 = shalt.err (!%p3731_p0)
}
 0x9ab   : > { %s3818_s6 = smov 128   ;;  %s3819_s30 = smov 8  }
 0x9ac   : > { %3190 = dma.vmem_to_hbm [thread:$0]  (%p4583_p5), %s4431_s14, 256, %s4436_s1, %s2526_s23, %s3818_s6, %s3818_s6, %s3819_s30  }
 0x9ad PF: > { %s4584_s12 = sld [smem:[#allocation31_spill]] }
 0x9ae   : > { %s4585_s3 = sld [smem:[#allocation36_spill]] }
 0x9af   : > { %s4586_s11 = sld [smem:[#allocation32_spill]] }
 0x9b3   : > { %s2554_s17 = sand.u32 1, %s4584_s12  }
 0x9b4   : > { %p4587_p1 = scmp.ne.s32.totalorder %s4585_s3, 0  ;;  %s2555_s0 = scalar_lea.sflag [#allocation4], %s2554_s17 }
 0x9b5   : > { %p4588_p9 = scmp.ge.s32.totalorder %s4586_s11, 2 }
 0x9b7   : > { %p3231_p12 = pnand %p4588_p9, %p4587_p1 }
 0x9b9   : > { %p3232_p13 = pneg %p3231_p12 }
 0x9bb   : > { %3780 = dma.done.wait (%p3232_p13), %s2555_s0, 256  }
 0x9bc   : > { %3782 = vsyncadd (%p3232_p13), %s2555_s0, 4294967040  ;;  %s4589_s27 = sld [smem:[#allocation33_spill]]  ;;  %s4591_s24 = smov %s3789_s25 }
 0x9bd   : > { %s4590_s18 = sld [smem:[#allocation34_spill]]  ;;  %s4592_s25 = smov %s3793_s26 }
 0x9c2   : > { %p38_p4 = scmp.ge.s32.totalorder %s4589_s27, 4  }
 0x9c3   : > { %s4593_s26 = smov %s4590_s18 }
 0x9c4   :  { %40 = sbr.rel (!%p38_p4) target bundleno = 25 (0x19), region = 193 }
 0x9c9   :  { %2560 = vsyncpa [#allocation3], 1 }
 0x9ca   :  { %2562 = vsyncpa [#allocation3 + $0x1], 1 }
 0x9cb   :  { %2563 = vsyncpa [#allocation6], 1 }
 0x9cc   :  { %2565 = vsyncpa [#allocation6 + $0x1], 1 }
 0x9cd   :  { %2566 = vsyncpa [#allocation9], 1 }
 0x9ce   :  { %2567 = vsyncpa [#allocation12], 1 }
 0x9cf   :  { %2568 = vsyncpa [#allocation15], 1 }
 0x9d0   :  { %2569 = vsyncpa [#allocation18], 1 }
 0x9d1   :  { %2570 = vsyncpa [#allocation21], 1 }
 0x9d2   :  { %2571 = vsyncpa [#allocation4], 1 }
 0x9d3   :  { %2573 = vsyncpa [#allocation4 + $0x1], 1 }

</bundles_post_ra>
